<compile_context>
chip_gen: v7x
topology: tpu7x:2x2x1
jax: 0.10.0
libtpu: 0.0.40
codegen_flags: <defaults>
</compile_context>

<pallas_src>
import functools

import jax
import jax.numpy as jnp
from jax.experimental import pallas as pl
from jax.experimental.pallas import tpu as pltpu

INPUT_DIM = 512
HIDDEN_DIM = 256
OUTPUT_DIM = 128                 # 193,568 weights < max_params, so no rescale
HALF_HIDDEN = HIDDEN_DIM // 2    # 128
NUM_CLASSES = 16
LANES = 128
OUT_SLAB = 3 * LANES             # feat(128) | probs padded(128) | conf padded(128)
NEG_INF = -1e30

_FLOPS_PER_ROW = 2 * (INPUT_DIM * HIDDEN_DIM + HIDDEN_DIM * HALF_HIDDEN
                      + HALF_HIDDEN * OUTPUT_DIM + OUTPUT_DIM * 64 + 64 * 16
                      + HALF_HIDDEN * 32 + 32 * 1)
_PARAM_ELEMS = (INPUT_DIM * HIDDEN_DIM + HIDDEN_DIM
                + HIDDEN_DIM * HALF_HIDDEN + HALF_HIDDEN
                + HALF_HIDDEN * OUTPUT_DIM + OUTPUT_DIM
                + OUTPUT_DIM * 64 + 64
                + 64 * 16 + 16
                + HALF_HIDDEN * 32 + 32
                + 32 * 1 + 1)


def pattern_detector_kernel(
    x_ref,
    w1_ref, b1_ref,        # feature_extractor Linear(512, 256)
    w2_ref, b2_ref,        # feature_extractor Linear(256, 128)
    wc1_ref, bc1_ref,      # classifier Linear(128, 128)
    wc2_ref, bc2_ref,      # classifier Linear(128, 64)   (padded to 128 lanes)
    wc3_ref, bc3_ref,      # classifier Linear(64, 16)    (padded to 128x128)
    wf1_ref, bf1_ref,      # confidence Linear(128, 32)   (padded to 128 lanes)
    wf2_ref, bf2_ref,      # confidence Linear(32, 1)     (padded to 128x128)
    out_ref,               # (TILE_B, 384) lane-dense output slab
    *, dot_dtype,
):
    x = x_ref[...]

    def dense(a, w_ref, b_ref):
        # Cast only the dot inputs (MXU is bf16-native on all chips);
        # accumulate in f32 and keep all elementwise math in f32 (v5e VPU has
        # no bf16).
        return (jnp.dot(a.astype(dot_dtype), w_ref[...],
                        preferred_element_type=jnp.float32)
                + b_ref[...])

    # ---- feature extractor (Dropout == identity in eval mode) ----
    h1 = jnp.maximum(dense(x, w1_ref, b1_ref), 0.0)
    feat = jnp.maximum(dense(h1, w2_ref, b2_ref), 0.0)

    # ---- classifier head (128-lane padded everywhere; pads stay exactly 0) ----
    c1 = jnp.maximum(dense(feat, wc1_ref, bc1_ref), 0.0)
    c2 = jnp.maximum(dense(c1, wc2_ref, bc2_ref), 0.0)
    logits = dense(c2, wc3_ref, bc3_ref)          # real classes in lanes 0:16

    lane = jax.lax.broadcasted_iota(jnp.int32, logits.shape, 1)
    logits = jnp.where(lane < NUM_CLASSES, logits, NEG_INF)
    m = jnp.max(logits, axis=-1, keepdims=True)
    e = jnp.exp(logits - m)                       # padded lanes underflow to 0
    probs = e * pl.reciprocal(jnp.sum(e, axis=-1, keepdims=True), approx=True)

    # ---- confidence head (real logit in lane 0) ----
    f1 = jnp.maximum(dense(feat, wf1_ref, bf1_ref), 0.0)
    conf_logit = dense(f1, wf2_ref, bf2_ref)
    conf = pl.reciprocal(1.0 + jnp.exp(-conf_logit), approx=True)

    # ---- one lane-dense slab: three unmasked, 128-aligned stores ----
    out_ref[:, 0:LANES] = feat
    out_ref[:, LANES:2 * LANES] = probs
    out_ref[:, 2 * LANES:3 * LANES] = conf


def _pad_params(params, dot_dtype):
    """Zero-pad the narrow head weights to 128 lanes; weights -> dot_dtype,
    biases stay f32 (added after the f32-accumulated dot)."""
    (w1, b1, w2, b2, wc1, bc1, wc2, bc2, wc3, bc3, wf1, bf1, wf2, bf2) = params

    def pad_w(w, rows, cols):
        return jnp.pad(
            w, ((0, rows - w.shape[0]), (0, cols - w.shape[1]))).astype(dot_dtype)

    def pad_b(b, cols):
        return jnp.pad(b, ((0, 0), (0, cols - b.shape[1]))).astype(jnp.float32)

    return [
        w1.astype(dot_dtype), b1.astype(jnp.float32),
        w2.astype(dot_dtype), b2.astype(jnp.float32),
        wc1.astype(dot_dtype), bc1.astype(jnp.float32),
        pad_w(wc2, HALF_HIDDEN, LANES), pad_b(bc2, LANES),
        pad_w(wc3, LANES, LANES), pad_b(bc3, LANES),
        pad_w(wf1, HALF_HIDDEN, LANES), pad_b(bf1, LANES),
        pad_w(wf2, LANES, LANES), pad_b(bf2, LANES),
    ]


def pattern_detector_forward(x, params, *, tile_b=256, dot_dtype=jnp.float32):
    """x: (B, INPUT_DIM) f32; params: real (unpadded) weights/biases.

    Returns {'pattern_probs': (B,16), 'confidence': (B,1), 'features': (B,128)}.
    """
    assert tile_b % 8 == 0, "batch tile must be a multiple of 8 sublanes"
    B = x.shape[0]
    padded = _pad_params(params, dot_dtype)

    n_tiles = pl.cdiv(B, tile_b)
    B_pad = n_tiles * tile_b
    if B_pad != B:
        x = jnp.pad(x, ((0, B_pad - B), (0, 0)))   # padded rows sliced off below

    x_spec = pl.BlockSpec((tile_b, INPUT_DIM), lambda i: (i, 0))
    # Weights/biases: full-array blocks, constant index_map -> resident in VMEM.
    param_specs = [pl.BlockSpec(p.shape, lambda i: (0, 0)) for p in padded]
    out_spec = pl.BlockSpec((tile_b, OUT_SLAB), lambda i: (i, 0))

    w_itemsize = jnp.dtype(dot_dtype).itemsize
    cost = pl.CostEstimate(
        flops=_FLOPS_PER_ROW * B_pad,
        transcendentals=19 * B_pad,          # 17 exp + 2 approx reciprocals / row
        bytes_accessed=(B_pad * INPUT_DIM * 4
                        + _PARAM_ELEMS * w_itemsize
                        + B_pad * OUT_SLAB * 4),
    )

    slab = pl.pallas_call(
        functools.partial(pattern_detector_kernel, dot_dtype=dot_dtype),
        out_shape=jax.ShapeDtypeStruct((B_pad, OUT_SLAB), jnp.float32),
        grid=(n_tiles,),
        in_specs=[x_spec] + param_specs,
        out_specs=out_spec,
        compiler_params=pltpu.CompilerParams(
            dimension_semantics=("parallel",),   # megacore on v7x
            vmem_limit_bytes=16 << 20,           # footprint ~5 MiB at tile_b=256
        ),
        cost_estimate=cost,
    )(x, *padded)

    return {
        "pattern_probs": slab[:B, LANES:LANES + NUM_CLASSES],
        "confidence": slab[:B, 2 * LANES:2 * LANES + 1],
        "features": slab[:B, 0:HALF_HIDDEN],
    }


def xavier_uniform(key, fan_in, fan_out):
    # matches nn.init.xavier_uniform_ on a (out, in) weight; stored transposed
    limit = (6.0 / (fan_in + fan_out)) ** 0.5
    return jax.random.uniform(key, (fan_in, fan_out), jnp.float32, -limit, limit)


def init_params(key):
    dims = [
        (INPUT_DIM, HIDDEN_DIM),      # feature_extractor Linear 1
        (HIDDEN_DIM, HALF_HIDDEN),    # feature_extractor Linear 2
        (HALF_HIDDEN, OUTPUT_DIM),    # classifier Linear 1
        (OUTPUT_DIM, 64),             # classifier Linear 2
        (64, 16),                     # classifier Linear 3
        (HALF_HIDDEN, 32),            # confidence Linear 1
        (32, 1),                      # confidence Linear 2
    ]
    keys = jax.random.split(key, len(dims))
    params = []
    for k, (fi, fo) in zip(keys, dims):
        params.append(xavier_uniform(k, fi, fo))
        params.append(jnp.zeros((1, fo), jnp.float32))  # bias as (1, out) row
    return params


def ref_forward(x, p):
    (w1, b1, w2, b2, wc1, bc1, wc2, bc2, wc3, bc3, wf1, bf1, wf2, bf2) = p
    h1 = jnp.maximum(x @ w1 + b1, 0.0)
    feat = jnp.maximum(h1 @ w2 + b2, 0.0)
    c1 = jnp.maximum(feat @ wc1 + bc1, 0.0)
    c2 = jnp.maximum(c1 @ wc2 + bc2, 0.0)
    logits = c2 @ wc3 + bc3
    probs = jax.nn.softmax(logits, axis=-1)
    f1 = jnp.maximum(feat @ wf1 + bf1, 0.0)
    conf = jax.nn.sigmoid(f1 @ wf2 + bf2)
    return probs, conf, feat


if __name__ == "__main__":
    key = jax.random.PRNGKey(0)
    k_params, k_x, k_x2 = jax.random.split(key, 3)
    params = init_params(k_params)

    # --- 1) small batch, f32 path (single grid step, tail padding) ---
    B = 8
    x = jax.random.normal(k_x, (B, INPUT_DIM), jnp.float32)
    out = pattern_detector_forward(x, params)
    jax.block_until_ready(out)

    rp, rc, rf = ref_forward(x, params)
    assert out["pattern_probs"].shape == (B, NUM_CLASSES)
    assert out["confidence"].shape == (B, 1)
    assert out["features"].shape == (B, HALF_HIDDEN)
    assert jnp.allclose(out["features"], rf, atol=1e-4)
    # approx EUP reciprocal in softmax/sigmoid -> slightly relaxed tolerance
    assert jnp.allclose(out["pattern_probs"], rp, atol=5e-3)
    assert jnp.allclose(out["confidence"], rc, atol=5e-3)

    # --- 2) multi-tile grid (3 steps of 128 rows) + padded tail rows ---
    B2 = 260
    x2 = jax.random.normal(k_x2, (B2, INPUT_DIM), jnp.float32)
    out2 = pattern_detector_forward(x2, params, tile_b=128)
    jax.block_until_ready(out2)
    rp2, rc2, rf2 = ref_forward(x2, params)
    assert out2["pattern_probs"].shape == (B2, NUM_CLASSES)
    assert jnp.allclose(out2["features"], rf2, atol=1e-4)
    assert jnp.allclose(out2["pattern_probs"], rp2, atol=5e-3)
    assert jnp.allclose(out2["confidence"], rc2, atol=5e-3)

    # --- 3) bf16 dot inputs (fast MXU path on v5e/v6e/v7x), loose tolerance ---
    out3 = pattern_detector_forward(x, params, dot_dtype=jnp.bfloat16)
    jax.block_until_ready(out3)
    assert jnp.all(jnp.isfinite(out3["pattern_probs"]))
    assert jnp.allclose(jnp.sum(out3["pattern_probs"], axis=-1), 1.0, atol=1e-2)
    assert jnp.allclose(out3["pattern_probs"], rp, atol=5e-2)
    assert jnp.allclose(out3["confidence"], rc, atol=5e-2)

    print("KERNEL_OK")
</pallas_src>

<mosaic_0001>
module attributes {stable_mosaic.version = 11 : i64} {
  func.func @pattern_detector_kernel(%arg0: i32, %arg1: memref<256x512xf32, #tpu.memory_space<vmem>>, %arg2: memref<512x256xf32, #tpu.memory_space<vmem>>, %arg3: memref<1x256xf32, #tpu.memory_space<vmem>>, %arg4: memref<256x128xf32, #tpu.memory_space<vmem>>, %arg5: memref<1x128xf32, #tpu.memory_space<vmem>>, %arg6: memref<128x128xf32, #tpu.memory_space<vmem>>, %arg7: memref<1x128xf32, #tpu.memory_space<vmem>>, %arg8: memref<128x128xf32, #tpu.memory_space<vmem>>, %arg9: memref<1x128xf32, #tpu.memory_space<vmem>>, %arg10: memref<128x128xf32, #tpu.memory_space<vmem>>, %arg11: memref<1x128xf32, #tpu.memory_space<vmem>>, %arg12: memref<128x128xf32, #tpu.memory_space<vmem>>, %arg13: memref<1x128xf32, #tpu.memory_space<vmem>>, %arg14: memref<128x128xf32, #tpu.memory_space<vmem>>, %arg15: memref<1x128xf32, #tpu.memory_space<vmem>>, %arg16: memref<256x384xf32, #tpu.memory_space<vmem>>) attributes {dimension_semantics = [#tpu.dimension_semantics<parallel>], iteration_bounds = array<i64: 1>, scalar_prefetch = 0 : i64, scratch_operands = 0 : i64, tpu.core_type = #tpu.core_type<tc>, window_params = [{transform_indices = @transform_0, window_bounds = array<i64: 256, 512>}, {pipeline_mode = #tpu.pipeline_mode<synchronous>, transform_indices = @transform_1, window_bounds = array<i64: 512, 256>}, {pipeline_mode = #tpu.pipeline_mode<synchronous>, transform_indices = @transform_2, window_bounds = array<i64: 1, 256>}, {pipeline_mode = #tpu.pipeline_mode<synchronous>, transform_indices = @transform_3, window_bounds = array<i64: 256, 128>}, {pipeline_mode = #tpu.pipeline_mode<synchronous>, transform_indices = @transform_4, window_bounds = array<i64: 1, 128>}, {pipeline_mode = #tpu.pipeline_mode<synchronous>, transform_indices = @transform_5, window_bounds = array<i64: 128, 128>}, {pipeline_mode = #tpu.pipeline_mode<synchronous>, transform_indices = @transform_6, window_bounds = array<i64: 1, 128>}, {pipeline_mode = #tpu.pipeline_mode<synchronous>, transform_indices = @transform_7, window_bounds = array<i64: 128, 128>}, {pipeline_mode = #tpu.pipeline_mode<synchronous>, transform_indices = @transform_8, window_bounds = array<i64: 1, 128>}, {pipeline_mode = #tpu.pipeline_mode<synchronous>, transform_indices = @transform_9, window_bounds = array<i64: 128, 128>}, {pipeline_mode = #tpu.pipeline_mode<synchronous>, transform_indices = @transform_10, window_bounds = array<i64: 1, 128>}, {pipeline_mode = #tpu.pipeline_mode<synchronous>, transform_indices = @transform_11, window_bounds = array<i64: 128, 128>}, {pipeline_mode = #tpu.pipeline_mode<synchronous>, transform_indices = @transform_12, window_bounds = array<i64: 1, 128>}, {pipeline_mode = #tpu.pipeline_mode<synchronous>, transform_indices = @transform_13, window_bounds = array<i64: 128, 128>}, {pipeline_mode = #tpu.pipeline_mode<synchronous>, transform_indices = @transform_14, window_bounds = array<i64: 1, 128>}, {transform_indices = @transform_15, window_bounds = array<i64: 256, 384>}]} {
    %c0 = arith.constant 0 : index
    %c0_0 = arith.constant 0 : index
    %0 = vector.load %arg1[%c0, %c0_0] : memref<256x512xf32, #tpu.memory_space<vmem>>, vector<256x512xf32>
    %c0_1 = arith.constant 0 : index
    %c0_2 = arith.constant 0 : index
    %1 = vector.load %arg2[%c0_1, %c0_2] : memref<512x256xf32, #tpu.memory_space<vmem>>, vector<512x256xf32>
    %cst = arith.constant dense<0.000000e+00> : vector<256x256xf32>
    %2 = tpu.matmul %0, %1, %cst {dimension_numbers = #tpu.dot_dimension_numbers<[1], [0], [0], [1], [0, 0, 1, 1], [], []>} : vector<256x512xf32>, vector<512x256xf32>, vector<256x256xf32> -> vector<256x256xf32>
    %c0_3 = arith.constant 0 : index
    %c0_4 = arith.constant 0 : index
    %3 = vector.load %arg3[%c0_3, %c0_4] : memref<1x256xf32, #tpu.memory_space<vmem>>, vector<1x256xf32>
    %4 = vector.broadcast %3 : vector<1x256xf32> to vector<256x256xf32>
    %5 = arith.addf %2, %4 : vector<256x256xf32>
    %cst_5 = arith.constant 0.000000e+00 : f32
    %6 = vector.broadcast %cst_5 : f32 to vector<256x256xf32>
    %7 = arith.maximumf %5, %6 : vector<256x256xf32>
    %c0_6 = arith.constant 0 : index
    %c0_7 = arith.constant 0 : index
    %8 = vector.load %arg4[%c0_6, %c0_7] : memref<256x128xf32, #tpu.memory_space<vmem>>, vector<256x128xf32>
    %cst_8 = arith.constant dense<0.000000e+00> : vector<256x128xf32>
    %9 = tpu.matmul %7, %8, %cst_8 {dimension_numbers = #tpu.dot_dimension_numbers<[1], [0], [0], [1], [0, 0, 1, 1], [], []>} : vector<256x256xf32>, vector<256x128xf32>, vector<256x128xf32> -> vector<256x128xf32>
    %c0_9 = arith.constant 0 : index
    %c0_10 = arith.constant 0 : index
    %10 = vector.load %arg5[%c0_9, %c0_10] : memref<1x128xf32, #tpu.memory_space<vmem>>, vector<1x128xf32>
    %11 = vector.broadcast %10 : vector<1x128xf32> to vector<256x128xf32>
    %12 = arith.addf %9, %11 : vector<256x128xf32>
    %cst_11 = arith.constant 0.000000e+00 : f32
    %13 = vector.broadcast %cst_11 : f32 to vector<256x128xf32>
    %14 = arith.maximumf %12, %13 : vector<256x128xf32>
    %c0_12 = arith.constant 0 : index
    %c0_13 = arith.constant 0 : index
    %15 = vector.load %arg6[%c0_12, %c0_13] : memref<128x128xf32, #tpu.memory_space<vmem>>, vector<128x128xf32>
    %cst_14 = arith.constant dense<0.000000e+00> : vector<256x128xf32>
    %16 = tpu.matmul %14, %15, %cst_14 {dimension_numbers = #tpu.dot_dimension_numbers<[1], [0], [0], [1], [0, 0, 1, 1], [], []>} : vector<256x128xf32>, vector<128x128xf32>, vector<256x128xf32> -> vector<256x128xf32>
    %c0_15 = arith.constant 0 : index
    %c0_16 = arith.constant 0 : index
    %17 = vector.load %arg7[%c0_15, %c0_16] : memref<1x128xf32, #tpu.memory_space<vmem>>, vector<1x128xf32>
    %18 = vector.broadcast %17 : vector<1x128xf32> to vector<256x128xf32>
    %19 = arith.addf %16, %18 : vector<256x128xf32>
    %cst_17 = arith.constant 0.000000e+00 : f32
    %20 = vector.broadcast %cst_17 : f32 to vector<256x128xf32>
    %21 = arith.maximumf %19, %20 : vector<256x128xf32>
    %c0_18 = arith.constant 0 : index
    %c0_19 = arith.constant 0 : index
    %22 = vector.load %arg8[%c0_18, %c0_19] : memref<128x128xf32, #tpu.memory_space<vmem>>, vector<128x128xf32>
    %cst_20 = arith.constant dense<0.000000e+00> : vector<256x128xf32>
    %23 = tpu.matmul %21, %22, %cst_20 {dimension_numbers = #tpu.dot_dimension_numbers<[1], [0], [0], [1], [0, 0, 1, 1], [], []>} : vector<256x128xf32>, vector<128x128xf32>, vector<256x128xf32> -> vector<256x128xf32>
    %c0_21 = arith.constant 0 : index
    %c0_22 = arith.constant 0 : index
    %24 = vector.load %arg9[%c0_21, %c0_22] : memref<1x128xf32, #tpu.memory_space<vmem>>, vector<1x128xf32>
    %25 = vector.broadcast %24 : vector<1x128xf32> to vector<256x128xf32>
    %26 = arith.addf %23, %25 : vector<256x128xf32>
    %cst_23 = arith.constant 0.000000e+00 : f32
    %27 = vector.broadcast %cst_23 : f32 to vector<256x128xf32>
    %28 = arith.maximumf %26, %27 : vector<256x128xf32>
    %c0_24 = arith.constant 0 : index
    %c0_25 = arith.constant 0 : index
    %29 = vector.load %arg10[%c0_24, %c0_25] : memref<128x128xf32, #tpu.memory_space<vmem>>, vector<128x128xf32>
    %cst_26 = arith.constant dense<0.000000e+00> : vector<256x128xf32>
    %30 = tpu.matmul %28, %29, %cst_26 {dimension_numbers = #tpu.dot_dimension_numbers<[1], [0], [0], [1], [0, 0, 1, 1], [], []>} : vector<256x128xf32>, vector<128x128xf32>, vector<256x128xf32> -> vector<256x128xf32>
    %c0_27 = arith.constant 0 : index
    %c0_28 = arith.constant 0 : index
    %31 = vector.load %arg11[%c0_27, %c0_28] : memref<1x128xf32, #tpu.memory_space<vmem>>, vector<1x128xf32>
    %32 = vector.broadcast %31 : vector<1x128xf32> to vector<256x128xf32>
    %33 = arith.addf %30, %32 : vector<256x128xf32>
    %34 = tpu.iota {dimensions = array<i32: 1>} : vector<256x128xi32>
    %c16_i32 = arith.constant 16 : i32
    %35 = vector.broadcast %c16_i32 : i32 to vector<256x128xi32>
    %36 = arith.cmpi slt, %34, %35 : vector<256x128xi32>
    %cst_29 = arith.constant -1.000000e+30 : f32
    %37 = vector.broadcast %cst_29 : f32 to vector<256x128xf32>
    %38 = arith.select %36, %33, %37 : vector<256x128xi1>, vector<256x128xf32>
    %cst_30 = arith.constant dense<0xFF800000> : vector<256xf32>
    %39 = vector.multi_reduction <maximumf>, %38, %cst_30 [1] : vector<256x128xf32> to vector<256xf32>
    %40 = vector.shape_cast %39 : vector<256xf32> to vector<256x1xf32>
    %41 = vector.broadcast %40 : vector<256x1xf32> to vector<256x128xf32>
    %42 = arith.subf %38, %41 : vector<256x128xf32>
    %43 = math.exp %42 : vector<256x128xf32>
    %cst_31 = arith.constant dense<0.000000e+00> : vector<256xf32>
    %44 = vector.multi_reduction <add>, %43, %cst_31 [1] : vector<256x128xf32> to vector<256xf32>
    %45 = vector.shape_cast %44 : vector<256xf32> to vector<256x1xf32>
    %46 = tpu.reciprocal %45 {approx = true} : vector<256x1xf32> -> vector<256x1xf32>
    %47 = vector.broadcast %46 : vector<256x1xf32> to vector<256x128xf32>
    %48 = arith.mulf %43, %47 : vector<256x128xf32>
    %c0_32 = arith.constant 0 : index
    %c0_33 = arith.constant 0 : index
    %49 = vector.load %arg12[%c0_32, %c0_33] : memref<128x128xf32, #tpu.memory_space<vmem>>, vector<128x128xf32>
    %cst_34 = arith.constant dense<0.000000e+00> : vector<256x128xf32>
    %50 = tpu.matmul %14, %49, %cst_34 {dimension_numbers = #tpu.dot_dimension_numbers<[1], [0], [0], [1], [0, 0, 1, 1], [], []>} : vector<256x128xf32>, vector<128x128xf32>, vector<256x128xf32> -> vector<256x128xf32>
    %c0_35 = arith.constant 0 : index
    %c0_36 = arith.constant 0 : index
    %51 = vector.load %arg13[%c0_35, %c0_36] : memref<1x128xf32, #tpu.memory_space<vmem>>, vector<1x128xf32>
    %52 = vector.broadcast %51 : vector<1x128xf32> to vector<256x128xf32>
    %53 = arith.addf %50, %52 : vector<256x128xf32>
    %cst_37 = arith.constant 0.000000e+00 : f32
    %54 = vector.broadcast %cst_37 : f32 to vector<256x128xf32>
    %55 = arith.maximumf %53, %54 : vector<256x128xf32>
    %c0_38 = arith.constant 0 : index
    %c0_39 = arith.constant 0 : index
    %56 = vector.load %arg14[%c0_38, %c0_39] : memref<128x128xf32, #tpu.memory_space<vmem>>, vector<128x128xf32>
    %cst_40 = arith.constant dense<0.000000e+00> : vector<256x128xf32>
    %57 = tpu.matmul %55, %56, %cst_40 {dimension_numbers = #tpu.dot_dimension_numbers<[1], [0], [0], [1], [0, 0, 1, 1], [], []>} : vector<256x128xf32>, vector<128x128xf32>, vector<256x128xf32> -> vector<256x128xf32>
    %c0_41 = arith.constant 0 : index
    %c0_42 = arith.constant 0 : index
    %58 = vector.load %arg15[%c0_41, %c0_42] : memref<1x128xf32, #tpu.memory_space<vmem>>, vector<1x128xf32>
    %59 = vector.broadcast %58 : vector<1x128xf32> to vector<256x128xf32>
    %60 = arith.addf %57, %59 : vector<256x128xf32>
    %cst_43 = arith.constant 0.000000e+00 : f32
    %61 = vector.broadcast %cst_43 : f32 to vector<256x128xf32>
    %62 = arith.subf %61, %60 : vector<256x128xf32>
    %63 = math.exp %62 : vector<256x128xf32>
    %cst_44 = arith.constant 1.000000e+00 : f32
    %64 = vector.broadcast %cst_44 : f32 to vector<256x128xf32>
    %65 = arith.addf %64, %63 : vector<256x128xf32>
    %66 = tpu.reciprocal %65 {approx = true} : vector<256x128xf32> -> vector<256x128xf32>
    %c0_45 = arith.constant 0 : index
    %c0_46 = arith.constant 0 : index
    %67 = vector.load %arg16[%c0_45, %c0_46] : memref<256x384xf32, #tpu.memory_space<vmem>>, vector<256x128xf32>
    tpu.vector_store %arg16[%c0_45, %c0_46], %14 {strides = array<i32>} : memref<256x384xf32, #tpu.memory_space<vmem>>, vector<256x128xf32>,
    %c0_47 = arith.constant 0 : index
    %c128 = arith.constant 128 : index
    %68 = vector.load %arg16[%c0_47, %c128] : memref<256x384xf32, #tpu.memory_space<vmem>>, vector<256x128xf32>
    tpu.vector_store %arg16[%c0_47, %c128], %48 {strides = array<i32>} : memref<256x384xf32, #tpu.memory_space<vmem>>, vector<256x128xf32>,
    %c0_48 = arith.constant 0 : index
    %c256 = arith.constant 256 : index
    %69 = vector.load %arg16[%c0_48, %c256] : memref<256x384xf32, #tpu.memory_space<vmem>>, vector<256x128xf32>
    tpu.vector_store %arg16[%c0_48, %c256], %66 {strides = array<i32>} : memref<256x384xf32, #tpu.memory_space<vmem>>, vector<256x128xf32>,
    return
  }
  func.func @transform_0(%arg0: i32) -> (i32, i32) {
    %c0_i32 = arith.constant 0 : i32
    %c0_i32_0 = arith.constant 0 : i32
    return %arg0, %c0_i32 : i32, i32
  }
  func.func @transform_1(%arg0: i32) -> (i32, i32) {
    %c0_i32 = arith.constant 0 : i32
    %c0_i32_0 = arith.constant 0 : i32
    %c0_i32_1 = arith.constant 0 : i32
    return %c0_i32, %c0_i32_0 : i32, i32
  }
  func.func @transform_2(%arg0: i32) -> (i32, i32) {
    %c0_i32 = arith.constant 0 : i32
    %c0_i32_0 = arith.constant 0 : i32
    %c0_i32_1 = arith.constant 0 : i32
    return %c0_i32, %c0_i32_0 : i32, i32
  }
  func.func @transform_3(%arg0: i32) -> (i32, i32) {
    %c0_i32 = arith.constant 0 : i32
    %c0_i32_0 = arith.constant 0 : i32
    %c0_i32_1 = arith.constant 0 : i32
    return %c0_i32, %c0_i32_0 : i32, i32
  }
  func.func @transform_4(%arg0: i32) -> (i32, i32) {
    %c0_i32 = arith.constant 0 : i32
    %c0_i32_0 = arith.constant 0 : i32
    %c0_i32_1 = arith.constant 0 : i32
    return %c0_i32, %c0_i32_0 : i32, i32
  }
  func.func @transform_5(%arg0: i32) -> (i32, i32) {
    %c0_i32 = arith.constant 0 : i32
    %c0_i32_0 = arith.constant 0 : i32
    %c0_i32_1 = arith.constant 0 : i32
    return %c0_i32, %c0_i32_0 : i32, i32
  }
  func.func @transform_6(%arg0: i32) -> (i32, i32) {
    %c0_i32 = arith.constant 0 : i32
    %c0_i32_0 = arith.constant 0 : i32
    %c0_i32_1 = arith.constant 0 : i32
    return %c0_i32, %c0_i32_0 : i32, i32
  }
  func.func @transform_7(%arg0: i32) -> (i32, i32) {
    %c0_i32 = arith.constant 0 : i32
    %c0_i32_0 = arith.constant 0 : i32
    %c0_i32_1 = arith.constant 0 : i32
    return %c0_i32, %c0_i32_0 : i32, i32
  }
  func.func @transform_8(%arg0: i32) -> (i32, i32) {
    %c0_i32 = arith.constant 0 : i32
    %c0_i32_0 = arith.constant 0 : i32
    %c0_i32_1 = arith.constant 0 : i32
    return %c0_i32, %c0_i32_0 : i32, i32
  }
  func.func @transform_9(%arg0: i32) -> (i32, i32) {
    %c0_i32 = arith.constant 0 : i32
    %c0_i32_0 = arith.constant 0 : i32
    %c0_i32_1 = arith.constant 0 : i32
    return %c0_i32, %c0_i32_0 : i32, i32
  }
  func.func @transform_10(%arg0: i32) -> (i32, i32) {
    %c0_i32 = arith.constant 0 : i32
    %c0_i32_0 = arith.constant 0 : i32
    %c0_i32_1 = arith.constant 0 : i32
    return %c0_i32, %c0_i32_0 : i32, i32
  }
  func.func @transform_11(%arg0: i32) -> (i32, i32) {
    %c0_i32 = arith.constant 0 : i32
    %c0_i32_0 = arith.constant 0 : i32
    %c0_i32_1 = arith.constant 0 : i32
    return %c0_i32, %c0_i32_0 : i32, i32
  }
  func.func @transform_12(%arg0: i32) -> (i32, i32) {
    %c0_i32 = arith.constant 0 : i32
    %c0_i32_0 = arith.constant 0 : i32
    %c0_i32_1 = arith.constant 0 : i32
    return %c0_i32, %c0_i32_0 : i32, i32
  }
  func.func @transform_13(%arg0: i32) -> (i32, i32) {
    %c0_i32 = arith.constant 0 : i32
    %c0_i32_0 = arith.constant 0 : i32
    %c0_i32_1 = arith.constant 0 : i32
    return %c0_i32, %c0_i32_0 : i32, i32
  }
  func.func @transform_14(%arg0: i32) -> (i32, i32) {
    %c0_i32 = arith.constant 0 : i32
    %c0_i32_0 = arith.constant 0 : i32
    %c0_i32_1 = arith.constant 0 : i32
    return %c0_i32, %c0_i32_0 : i32, i32
  }
  func.func @transform_15(%arg0: i32) -> (i32, i32) {
    %c0_i32 = arith.constant 0 : i32
    %c0_i32_0 = arith.constant 0 : i32
    return %arg0, %c0_i32 : i32, i32
  }
}

</mosaic_0001>

<bundles_post_ra>
// kernel: tpu_custom_call.1
= control target key start
LH: loop header
LB: loop body
LE: loop exit
PB: predicated region body
PF: predicated region fallthrough
CT: control target
= control target key end

     0   :  { %s5852_s0 = inlined_call_operand.hbm [shape: f32[256,512], index: 0, kind: input, shape index: {}]   ;;  %s5853_s1 = inlined_call_operand.hbm [shape: f32[512,256], index: 1, kind: input, shape index: {}]   ;;  %s5854_s2 = inlined_call_operand.vmem [shape: f32[1,256], index: 2, kind: input, shape index: {}]   ;;  %s5855_s3 = inlined_call_operand.hbm [shape: f32[256,128], index: 3, kind: input, shape index: {}]   ;;  %s5856_s4 = inlined_call_operand.vmem [shape: f32[1,128], index: 4, kind: input, shape index: {}]   ;;  %s5857_s5 = inlined_call_operand.hbm [shape: f32[128,128], index: 5, kind: input, shape index: {}]   ;;  %s5858_s6 = inlined_call_operand.vmem [shape: f32[1,128], index: 6, kind: input, shape index: {}]   ;;  %s5859_s7 = inlined_call_operand.hbm [shape: f32[128,128], index: 7, kind: input, shape index: {}]   ;;  %s5860_s8 = inlined_call_operand.vmem [shape: f32[1,128], index: 8, kind: input, shape index: {}]   ;;  %s5861_s9 = inlined_call_operand.hbm [shape: f32[128,128], index: 9, kind: input, shape index: {}]   ;;  %s5862_s10 = inlined_call_operand.vmem [shape: f32[1,128], index: 10, kind: input, shape index: {}]   ;;  %s5863_s11 = inlined_call_operand.hbm [shape: f32[128,128], index: 11, kind: input, shape index: {}]   ;;  %s5864_s12 = inlined_call_operand.vmem [shape: f32[1,128], index: 12, kind: input, shape index: {}]   ;;  %s5865_s13 = inlined_call_operand.hbm [shape: f32[128,128], index: 13, kind: input, shape index: {}]   ;;  %s5866_s14 = inlined_call_operand.vmem [shape: f32[1,128], index: 14, kind: input, shape index: {}]   ;;  %s5867_s15 = inlined_call_operand.hbm [shape: f32[256,384], index: 15, kind: output, shape index: {}]  }
   0x1   :  { %5869 = sst [smem:[#allocation23_spill]] %s5867_s15 }
   0x2   :  { %20 = vsyncpa [#allocation3], 0 }
   0x3   :  { %21 = vsyncpa [#allocation6], 0 }
   0x4   :  { %22 = vsyncpa [#allocation9], 0 }
   0x5   :  { %23 = vsyncpa [#allocation12], 0 }
   0x6   :  { %24 = vsyncpa [#allocation15], 0 }
   0x7   :  { %25 = vsyncpa [#allocation4], 0  ;;  %s4856_s18 = smov [#allocation5]   ;;  %s4646_s22 = scalar_lea.hbm %s5853_s1, 16384 }
   0x8   :  { %s43_s19 = sshll.u32 %s4856_s18, 4  ;;  %p4647_p0 = scmp.ne.s32.totalorder %s5853_s1, %s4646_s22  ;;  %s44_s19 = int_to_ptr.vmem [resolvable:$true] %s43_s19 }
   0x9   :  { %p4650_p1 = scmp.lt.u32.totalorder %s4646_s22, %s5853_s1 }
   0xb   :  { %p4652_p2 = pnand %p4650_p1, %p4647_p0 }
   0xd   :  { %4655 = shalt.err (!%p4652_p2)
}
   0xe   :  { %s4656_s27 = scalar_lea.vmem %s44_s19, 16384  ;;  %p4661_p4 = scmp.lt.s32.totalorder %s44_s19, %s44_s19 }
   0xf   :  { %p4657_p3 = scmp.ne.s32.totalorder %s44_s19, %s4656_s27  ;;  %p4662_p5 = scmp.lt.s32.totalorder %s4656_s27, %s4656_s27 }
  0x11   :  { %p4663_p6 = por %p4662_p5, %p4661_p4 }
  0x13   :  { %p4664_p7 = pnand %p4663_p6, %p4657_p3 }
  0x15   :  { %4667 = shalt.err (!%p4664_p7)
}
  0x16   :  { %s4857_s28 = smov 256   ;;  %s4858_s29 = smov 16  }
  0x17   :  { %49 = dma.hbm_to_vmem [thread:$0]  %s5853_s1, 16384, %s44_s19, [#allocation6], %s4857_s28, %s4857_s28, %s4858_s29  }
  0x18   :  { %s4859_s17 = smov [#allocation8]   ;;  %s4860_s20 = smov [#allocation11]  }
  0x19   :  { %s71_s18 = sshll.u32 %s4859_s17, 4  ;;  %s99_s21 = sshll.u32 %s4860_s20, 4  ;;  %s72_s18 = int_to_ptr.vmem [resolvable:$true] %s71_s18  ;;  %s100_s21 = int_to_ptr.vmem [resolvable:$true] %s99_s21 }
  0x1a   :  { %s4668_s24 = scalar_lea.hbm %s5857_s5, 2048 }
  0x1b   :  { %p4669_p8 = scmp.ne.s32.totalorder %s5857_s5, %s4668_s24  ;;  %p4672_p9 = scmp.lt.u32.totalorder %s4668_s24, %s5857_s5 }
  0x1d   :  { %p4674_p10 = pnand %p4672_p9, %p4669_p8 }
  0x1f   :  { %4677 = shalt.err (!%p4674_p10)
}
  0x20   :  { %s4678_s1 = scalar_lea.vmem %s72_s18, 2048  ;;  %p4683_p12 = scmp.lt.s32.totalorder %s72_s18, %s72_s18 }
  0x21   :  { %p4679_p11 = scmp.ne.s32.totalorder %s72_s18, %s4678_s1  ;;  %p4684_p13 = scmp.lt.s32.totalorder %s4678_s1, %s4678_s1 }
  0x23   :  { %p4685_p0 = por %p4684_p13, %p4683_p12 }
  0x25   :  { %p4686_p1 = pnand %p4685_p0, %p4679_p11 }
  0x27   :  { %4689 = shalt.err (!%p4686_p1)
}
  0x28   :  { %s4861_s19 = smov 128   ;;  %s4862_s28 = smov 8  }
  0x29   :  { %77 = dma.hbm_to_vmem [thread:$0]  %s5857_s5, 2048, %s72_s18, [#allocation9], %s4861_s19, %s4861_s19, %s4862_s28  }
  0x2a   :  { %s4690_s17 = scalar_lea.hbm %s5861_s9, 2048 }
  0x2b   :  { %p4691_p2 = scmp.ne.s32.totalorder %s5861_s9, %s4690_s17  ;;  %p4694_p3 = scmp.lt.u32.totalorder %s4690_s17, %s5861_s9 }
  0x2d   :  { %p4696_p4 = pnand %p4694_p3, %p4691_p2 }
  0x2f   :  { %4699 = shalt.err (!%p4696_p4)
}
  0x30   :  { %s4700_s25 = scalar_lea.vmem %s100_s21, 2048  ;;  %p4705_p6 = scmp.lt.s32.totalorder %s100_s21, %s100_s21 }
  0x31   :  { %p4701_p5 = scmp.ne.s32.totalorder %s100_s21, %s4700_s25  ;;  %p4706_p7 = scmp.lt.s32.totalorder %s4700_s25, %s4700_s25 }
  0x33   :  { %p4707_p8 = por %p4706_p7, %p4705_p6 }
  0x35   :  { %p4708_p9 = pnand %p4707_p8, %p4701_p5 }
  0x37   :  { %4711 = shalt.err (!%p4708_p9)
}
  0x38   :  { %105 = dma.hbm_to_vmem [thread:$0]  %s5861_s9, 2048, %s100_s21, [#allocation12], %s4861_s19, %s4861_s19, %s4862_s28  }
  0x39   :  { %s4863_s26 = smov [#allocation2]   ;;  %s4712_s30 = scalar_lea.hbm %s5852_s0, 16384 }
  0x3a   :  { %s31_s27 = sshll.u32 %s4863_s26, 4  ;;  %p4713_p10 = scmp.ne.s32.totalorder %s5852_s0, %s4712_s30  ;;  %s32_s27 = int_to_ptr.vmem [resolvable:$true] %s31_s27 }
  0x3b   :  { %p4716_p11 = scmp.lt.u32.totalorder %s4712_s30, %s5852_s0 }
  0x3d   :  { %p4718_p12 = pnand %p4716_p11, %p4713_p10 }
  0x3f   :  { %4721 = shalt.err (!%p4718_p12)
}
  0x40   :  { %s4722_s22 = scalar_lea.vmem %s32_s27, 16384  ;;  %p4727_p0 = scmp.lt.s32.totalorder %s32_s27, %s32_s27 }
  0x41   :  { %p4723_p13 = scmp.ne.s32.totalorder %s32_s27, %s4722_s22  ;;  %p4728_p1 = scmp.lt.s32.totalorder %s4722_s22, %s4722_s22 }
  0x43   :  { %p4729_p2 = por %p4728_p1, %p4727_p0 }
  0x45   :  { %p4730_p3 = pnand %p4729_p2, %p4723_p13 }
  0x47   :  { %4733 = shalt.err (!%p4730_p3)
}
  0x48   :  { %s4864_s9 = smov 512   ;;  %s4865_s21 = smov 32  }
  0x49   :  { %37 = dma.hbm_to_vmem [thread:$0]  %s5852_s0, 16384, %s32_s27, [#allocation3], %s4864_s9, %s4864_s9, %s4865_s21  }
  0x4a   :  { %s4866_s25 = smov [#allocation7]   ;;  %s4867_s18 = smov [#allocation10]  }
  0x4b   :  { %s57_s5 = sshll.u32 %s4866_s25, 4  ;;  %s85_s26 = sshll.u32 %s4867_s18, 4  ;;  %s58_s5 = int_to_ptr.vmem [resolvable:$true] %s57_s5  ;;  %s5008_s26 = int_to_ptr.vmem [resolvable:$true] %s85_s26 }
  0x4c   :  { %s4734_s30 = scalar_lea.hbm %s5855_s3, 4096 }
  0x4d   :  { %p4735_p4 = scmp.ne.s32.totalorder %s5855_s3, %s4734_s30  ;;  %p4738_p5 = scmp.lt.u32.totalorder %s4734_s30, %s5855_s3 }
  0x4f   :  { %p4740_p6 = pnand %p4738_p5, %p4735_p4 }
  0x51   :  { %4743 = shalt.err (!%p4740_p6)
}
  0x52   :  { %s4744_s0 = scalar_lea.vmem %s58_s5, 4096  ;;  %p4749_p8 = scmp.lt.s32.totalorder %s58_s5, %s58_s5 }
  0x53   :  { %p4745_p7 = scmp.ne.s32.totalorder %s58_s5, %s4744_s0  ;;  %p4750_p9 = scmp.lt.s32.totalorder %s4744_s0, %s4744_s0 }
  0x55   :  { %p4751_p10 = por %p4750_p9, %p4749_p8 }
  0x57   :  { %p4752_p11 = pnand %p4751_p10, %p4745_p7 }
  0x59   :  { %4755 = shalt.err (!%p4752_p11)
}
  0x5a   :  { %63 = dma.hbm_to_vmem [thread:$0]  %s5855_s3, 4096, %s58_s5, [#allocation6], %s4861_s19, %s4861_s19, %s4862_s28  }
  0x5b   :  { %s4756_s23 = scalar_lea.hbm %s5859_s7, 2048 }
  0x5c   :  { %p4757_p12 = scmp.ne.s32.totalorder %s5859_s7, %s4756_s23  ;;  %p4760_p13 = scmp.lt.u32.totalorder %s4756_s23, %s5859_s7 }
  0x5e   :  { %p4762_p0 = pnand %p4760_p13, %p4757_p12 }
  0x60   :  { %4765 = shalt.err (!%p4762_p0)
}
  0x61   :  { %s4766_s29 = scalar_lea.vmem %s5008_s26, 2048  ;;  %p4771_p2 = scmp.lt.s32.totalorder %s5008_s26, %s5008_s26 }
  0x62   :  { %p4767_p1 = scmp.ne.s32.totalorder %s5008_s26, %s4766_s29  ;;  %p4772_p3 = scmp.lt.s32.totalorder %s4766_s29, %s4766_s29 }
  0x64   :  { %p4773_p4 = por %p4772_p3, %p4771_p2 }
  0x66   :  { %p4774_p5 = pnand %p4773_p4, %p4767_p1 }
  0x68   :  { %4777 = shalt.err (!%p4774_p5)
}
  0x69   :  { %91 = dma.hbm_to_vmem [thread:$0]  %s5859_s7, 2048, %s5008_s26, [#allocation9], %s4861_s19, %s4861_s19, %s4862_s28  }
  0x6a   :  { %s4868_s30 = smov [#allocation13]   ;;  %s4869_s16 = smov [#allocation14]  }
  0x6b   :  { %s113_s15 = sshll.u32 %s4868_s30, 4  ;;  %s127_s17 = sshll.u32 %s4869_s16, 4  ;;  %s114_s15 = int_to_ptr.vmem [resolvable:$true] %s113_s15  ;;  %s5045_s17 = int_to_ptr.vmem [resolvable:$true] %s127_s17 }
  0x6c   :  { %s4778_s27 = scalar_lea.hbm %s5863_s11, 2048 }
  0x6d   :  { %p4779_p6 = scmp.ne.s32.totalorder %s5863_s11, %s4778_s27  ;;  %p4782_p7 = scmp.lt.u32.totalorder %s4778_s27, %s5863_s11 }
  0x6f   :  { %p4784_p8 = pnand %p4782_p7, %p4779_p6 }
  0x71   :  { %4787 = shalt.err (!%p4784_p8)
}
  0x72   :  { %s4788_s7 = scalar_lea.vmem %s114_s15, 2048  ;;  %p4793_p10 = scmp.lt.s32.totalorder %s114_s15, %s114_s15 }
  0x73   :  { %p4789_p9 = scmp.ne.s32.totalorder %s114_s15, %s4788_s7  ;;  %p4794_p11 = scmp.lt.s32.totalorder %s4788_s7, %s4788_s7 }
  0x75   :  { %p4795_p12 = por %p4794_p11, %p4793_p10 }
  0x77   :  { %p4796_p13 = pnand %p4795_p12, %p4789_p9 }
  0x79   :  { %4799 = shalt.err (!%p4796_p13)
}
  0x7a   :  { %119 = dma.hbm_to_vmem [thread:$0]  %s5863_s11, 2048, %s114_s15, [#allocation12], %s4861_s19, %s4861_s19, %s4862_s28  }
  0x7b   :  { %s4800_s1 = scalar_lea.hbm %s5865_s13, 2048 }
  0x7c   :  { %p4801_p0 = scmp.ne.s32.totalorder %s5865_s13, %s4800_s1  ;;  %p4804_p1 = scmp.lt.u32.totalorder %s4800_s1, %s5865_s13 }
  0x7e   :  { %p4806_p2 = pnand %p4804_p1, %p4801_p0 }
  0x80   :  { %4809 = shalt.err (!%p4806_p2)
}
  0x81   :  { %s4810_s16 = scalar_lea.vmem %s5045_s17, 2048  ;;  %p4815_p4 = scmp.lt.s32.totalorder %s5045_s17, %s5045_s17 }
  0x82   :  { %p4811_p3 = scmp.ne.s32.totalorder %s5045_s17, %s4810_s16  ;;  %p4816_p5 = scmp.lt.s32.totalorder %s4810_s16, %s4810_s16 }
  0x84   :  { %p4817_p6 = por %p4816_p5, %p4815_p4 }
  0x86   :  { %p4818_p7 = pnand %p4817_p6, %p4811_p3 }
  0x88   :  { %4821 = shalt.err (!%p4818_p7)
}
  0x89   :  { %133 = dma.hbm_to_vmem [thread:$0]  %s5865_s13, 2048, %s5045_s17, [#allocation15], %s4861_s19, %s4861_s19, %s4862_s28  }
  0x8a   :  { %4844 = dma.done.wait [#allocation3], 16384  }
  0x8b   :  { %4845 = vsyncadd [#allocation3], 4294950912 }
  0x8c   :  { %4846 = dma.done.wait [#allocation6], 20480  }
  0x8d   :  { %4847 = vsyncadd [#allocation6], 4294946816 }
  0x8e   :  { %4848 = dma.done.wait [#allocation9], 4096  }
  0x8f   :  { %4849 = vsyncadd [#allocation9], 4294963200 }
  0x90   :  { %4850 = dma.done.wait [#allocation12], 4096  }
  0x91   :  { %4851 = vsyncadd [#allocation12], 4294963200 }
  0x92   :  { %4852 = dma.done.wait [#allocation15], 2048  }
  0x93   :  { %4853 = vsyncadd [#allocation15], 4294965248  ;;  %v289_v0 = vld [vmem:[#allocation5 + $0x8] sm:$0xff]  ;;  %v291_v1 = vld [vmem:[#allocation5 + $0x18] sm:$0xff] }
  0x94   :  { %v288_v2 = vld [vmem:[#allocation5] sm:$0xff]  ;;  %v3884_v3 = vpack.c.bf16 %v291_v1, %v289_v0  ;;  %v290_v4 = vld [vmem:[#allocation5 + $0x10] sm:$0xff]  ;;  %v293_v5 = vld [vmem:[#allocation5 + $0x28] sm:$0xff] }
  0x95   :  { %v295_v6 = vld [vmem:[#allocation5 + $0x38] sm:$0xff]  ;;  %v3886_v7 = vpack.c.bf16 %v290_v4, %v288_v2  ;;  %v292_v9 = vld [vmem:[#allocation5 + $0x20] sm:$0xff]  ;;  %v294_v10 = vld [vmem:[#allocation5 + $0x30] sm:$0xff] }
  0x96   :  { %v3888_v8 = vpack.c.bf16 %v295_v6, %v293_v5  ;;  %v297_v11 = vld [vmem:[#allocation5 + $0x48] sm:$0xff]  ;;  %3885 = vmatprep.subr.bf16.mxu0 %v3884_v3  ;;  %v299_v12 = vld [vmem:[#allocation5 + $0x58] sm:$0xff]  ;;  %v3890_v13 = vpack.c.bf16 %v294_v10, %v292_v9  ;;  %v296_v15 = vld [vmem:[#allocation5 + $0x40] sm:$0xff] }
  0x97   :  { %3887 = vmatpush1.bf16.msra.mxu0 %v3886_v7  ;;  %v3892_v14 = vpack.c.bf16 %v299_v12, %v297_v11  ;;  %v298_v16 = vld [vmem:[#allocation5 + $0x50] sm:$0xff]  ;;  %v301_v17 = vld [vmem:[#allocation5 + $0x68] sm:$0xff]  ;;  %v303_v18 = vld [vmem:[#allocation5 + $0x78] sm:$0xff] }
  0x98   :  { %3889 = vmatprep.subr.bf16.mxu0 %v3888_v8  ;;  %v3894_v19 = vpack.c.bf16 %v298_v16, %v296_v15  ;;  %v3896_v20 = vpack.c.bf16 %v303_v18, %v301_v17  ;;  %v300_v21 = vld [vmem:[#allocation5 + $0x60] sm:$0xff]  ;;  %v302_v22 = vld [vmem:[#allocation5 + $0x70] sm:$0xff]  ;;  %v305_v23 = vld [vmem:[#allocation5 + $0x88] sm:$0xff] }
  0x99   :  { %v307_v24 = vld [vmem:[#allocation5 + $0x98] sm:$0xff]  ;;  %v3898_v25 = vpack.c.bf16 %v302_v22, %v300_v21  ;;  %v304_v27 = vld [vmem:[#allocation5 + $0x80] sm:$0xff]  ;;  %v306_v28 = vld [vmem:[#allocation5 + $0x90] sm:$0xff] }
  0x9a   :  { %v3900_v26 = vpack.c.bf16 %v307_v24, %v305_v23  ;;  %v309_v29 = vld [vmem:[#allocation5 + $0xa8] sm:$0xff]  ;;  %v311_v30 = vld [vmem:[#allocation5 + $0xb8] sm:$0xff]  ;;  %v3902_v31 = vpack.c.bf16 %v306_v28, %v304_v27  ;;  %v308_v33 = vld [vmem:[#allocation5 + $0xa0] sm:$0xff] }
  0x9b   :  { %3891 = vmatpush1.bf16.msra.mxu0 %v3890_v13  ;;  %v3904_v32 = vpack.c.bf16 %v311_v30, %v309_v29  ;;  %v310_v34 = vld [vmem:[#allocation5 + $0xb0] sm:$0xff]  ;;  %v313_v35 = vld [vmem:[#allocation5 + $0xc8] sm:$0xff]  ;;  %v315_v36 = vld [vmem:[#allocation5 + $0xd8] sm:$0xff] }
  0x9c   :  { %3893 = vmatprep.subr.bf16.mxu0 %v3892_v14  ;;  %v3906_v37 = vpack.c.bf16 %v310_v34, %v308_v33  ;;  %v3908_v38 = vpack.c.bf16 %v315_v36, %v313_v35  ;;  %v312_v39 = vld [vmem:[#allocation5 + $0xc0] sm:$0xff]  ;;  %v314_v40 = vld [vmem:[#allocation5 + $0xd0] sm:$0xff]  ;;  %v161_v41 = vld [vmem:[#allocation2 + $0x8] sm:$0xff] }
  0x9d   :  { %v317_v42 = vld [vmem:[#allocation5 + $0xe8] sm:$0xff]  ;;  %v319_v43 = vld [vmem:[#allocation5 + $0xf8] sm:$0xff]  ;;  %492 = vmatprep.mubr.f32.mxu0 %v161_v41  ;;  %v3910_v44 = vpack.c.bf16 %v314_v40, %v312_v39  ;;  %v316_v46 = vld [vmem:[#allocation5 + $0xe0] sm:$0xff] }
  0x9e   :  { %v3912_v45 = vpack.c.bf16 %v319_v43, %v317_v42  ;;  %v318_v47 = vld [vmem:[#allocation5 + $0xf0] sm:$0xff]  ;;  %v321_v48 = vld [vmem:[#allocation5 + $0x108] sm:$0xff]  ;;  %v323_v49 = vld [vmem:[#allocation5 + $0x118] sm:$0xff] }
  0x9f   :  { %3895 = vmatpush1.bf16.msra.mxu0 %v3894_v19  ;;  %v3914_v50 = vpack.c.bf16 %v318_v47, %v316_v46  ;;  %v3916_v51 = vpack.c.bf16 %v323_v49, %v321_v48  ;;  %v320_v52 = vld [vmem:[#allocation5 + $0x100] sm:$0xff]  ;;  %v322_v53 = vld [vmem:[#allocation5 + $0x110] sm:$0xff]  ;;  %v325_v54 = vld [vmem:[#allocation5 + $0x128] sm:$0xff] }
  0xa0   :  { %3897 = vmatprep.subr.bf16.mxu0 %v3896_v20  ;;  %v327_v55 = vld [vmem:[#allocation5 + $0x138] sm:$0xff]  ;;  %v3918_v56 = vpack.c.bf16 %v322_v53, %v320_v52  ;;  %v324_v58 = vld [vmem:[#allocation5 + $0x120] sm:$0xff]  ;;  %v326_v59 = vld [vmem:[#allocation5 + $0x130] sm:$0xff] }
  0xa1   :  { %v3920_v57 = vpack.c.bf16 %v327_v55, %v325_v54  ;;  %v329_v60 = vld [vmem:[#allocation5 + $0x148] sm:$0xff]  ;;  %v331_v61 = vld [vmem:[#allocation5 + $0x158] sm:$0xff]  ;;  %v3922_v62 = vpack.c.bf16 %v326_v59, %v324_v58  ;;  %v328_v0 = vld [vmem:[#allocation5 + $0x140] sm:$0xff] }
  0xa2   :  { %v3924_v63 = vpack.c.bf16 %v331_v61, %v329_v60  ;;  %v330_v1 = vld [vmem:[#allocation5 + $0x150] sm:$0xff]  ;;  %v333_v2 = vld [vmem:[#allocation5 + $0x168] sm:$0xff]  ;;  %v335_v3 = vld [vmem:[#allocation5 + $0x178] sm:$0xff] }
  0xa3   :  { %3899 = vmatpush1.bf16.msra.mxu0 %v3898_v25  ;;  %v3926_v4 = vpack.c.bf16 %v330_v1, %v328_v0  ;;  %v3928_v5 = vpack.c.bf16 %v335_v3, %v333_v2  ;;  %v332_v6 = vld [vmem:[#allocation5 + $0x160] sm:$0xff]  ;;  %v334_v7 = vld [vmem:[#allocation5 + $0x170] sm:$0xff]  ;;  %v337_v8 = vld [vmem:[#allocation5 + $0x188] sm:$0xff] }
  0xa4   :  { %3901 = vmatprep.subr.bf16.mxu0 %v3900_v26  ;;  %v339_v9 = vld [vmem:[#allocation5 + $0x198] sm:$0xff]  ;;  %v3930_v10 = vpack.c.bf16 %v334_v7, %v332_v6  ;;  %v336_v12 = vld [vmem:[#allocation5 + $0x180] sm:$0xff]  ;;  %v338_v13 = vld [vmem:[#allocation5 + $0x190] sm:$0xff] }
  0xa5   :  { %v3932_v11 = vpack.c.bf16 %v339_v9, %v337_v8  ;;  %v341_v14 = vld [vmem:[#allocation5 + $0x1a8] sm:$0xff]  ;;  %v343_v15 = vld [vmem:[#allocation5 + $0x1b8] sm:$0xff]  ;;  %v3934_v16 = vpack.c.bf16 %v338_v13, %v336_v12  ;;  %v340_v18 = vld [vmem:[#allocation5 + $0x1a0] sm:$0xff] }
  0xa6   :  { %v3936_v17 = vpack.c.bf16 %v343_v15, %v341_v14  ;;  %v342_v19 = vld [vmem:[#allocation5 + $0x1b0] sm:$0xff]  ;;  %v345_v20 = vld [vmem:[#allocation5 + $0x1c8] sm:$0xff]  ;;  %v347_v21 = vld [vmem:[#allocation5 + $0x1d8] sm:$0xff] }
  0xa7   :  { %3903 = vmatpush1.bf16.msra.mxu0 %v3902_v31  ;;  %v3938_v22 = vpack.c.bf16 %v342_v19, %v340_v18  ;;  %v3940_v23 = vpack.c.bf16 %v347_v21, %v345_v20  ;;  %v344_v24 = vld [vmem:[#allocation5 + $0x1c0] sm:$0xff]  ;;  %v346_v25 = vld [vmem:[#allocation5 + $0x1d0] sm:$0xff]  ;;  %v349_v26 = vld [vmem:[#allocation5 + $0x1e8] sm:$0xff] }
  0xa8   :  { %3905 = vmatprep.subr.bf16.mxu0 %v3904_v32  ;;  %v351_v27 = vld [vmem:[#allocation5 + $0x1f8] sm:$0xff]  ;;  %v3942_v28 = vpack.c.bf16 %v346_v25, %v344_v24  ;;  %v348_v30 = vld [vmem:[#allocation5 + $0x1e0] sm:$0xff]  ;;  %v350_v31 = vld [vmem:[#allocation5 + $0x1f0] sm:$0xff] }
  0xa9   :  { %v3944_v29 = vpack.c.bf16 %v351_v27, %v349_v26  ;;  %v353_v32 = vld [vmem:[#allocation5 + $0x208] sm:$0xff]  ;;  %v355_v33 = vld [vmem:[#allocation5 + $0x218] sm:$0xff]  ;;  %v3946_v34 = vpack.c.bf16 %v350_v31, %v348_v30  ;;  %v352_v36 = vld [vmem:[#allocation5 + $0x200] sm:$0xff] }
  0xaa   :  { %v3948_v35 = vpack.c.bf16 %v355_v33, %v353_v32  ;;  %v359_v39 = vld [vmem:[#allocation5 + $0x238] sm:$0xff]  ;;  %v160_v40 = vld [vmem:[#allocation2] sm:$0xff]  ;;  %v165_v42 = vld [vmem:[#allocation2 + $0x28] sm:$0xff] }
  0xab   :  { %3907 = vmatpush1.bf16.msra.mxu0 %v3906_v37  ;;  %v354_v37 = vld [vmem:[#allocation5 + $0x210] sm:$0xff]  ;;  %v361_v46 = vld [vmem:[#allocation5 + $0x248] sm:$0xff]  ;;  %v363_v47 = vld [vmem:[#allocation5 + $0x258] sm:$0xff] }
  0xac   :  { %3909 = vmatprep.subr.bf16.mxu0 %v3908_v38  ;;  %v357_v38 = vld [vmem:[#allocation5 + $0x228] sm:$0xff]  ;;  %v3950_v41 = vpack.c.bf16 %v354_v37, %v352_v36  ;;  %v164_v48 = vld [vmem:[#allocation2 + $0x20] sm:$0xff]  ;;  %v362_v53 = vld [vmem:[#allocation5 + $0x250] sm:$0xff] }
  0xad   :  { %v3952_v43 = vpack.c.bf16 %v359_v39, %v357_v38  ;;  %v360_v52 = vld [vmem:[#allocation5 + $0x240] sm:$0xff]  ;;  %v365_v54 = vld [vmem:[#allocation5 + $0x268] sm:$0xff]  ;;  %v367_v55 = vld [vmem:[#allocation5 + $0x278] sm:$0xff] }
  0xae   :  { %v173_v58 = vld [vmem:[#allocation2 + $0x68] sm:$0xff]  ;;  %v3960_v59 = vpack.c.bf16 %v367_v55, %v365_v54  ;;  %v364_v60 = vld [vmem:[#allocation5 + $0x260] sm:$0xff]  ;;  %v366_v61 = vld [vmem:[#allocation5 + $0x270] sm:$0xff] }
  0xaf   :  { %3911 = vmatpush1.bf16.msra.mxu0 %v3910_v44  ;;  %v356_v44 = vld [vmem:[#allocation5 + $0x220] sm:$0xff]  ;;  %v3962_v1 = vpack.c.bf16 %v366_v61, %v364_v60  ;;  %v177_v2 = vld [vmem:[#allocation2 + $0x88] sm:$0xff]  ;;  %v375_v7 = vld [vmem:[#allocation5 + $0x2b8] sm:$0xff] }
  0xb0   :  { %3913 = vmatprep.subr.bf16.mxu0 %v3912_v45  ;;  %v358_v45 = vld [vmem:[#allocation5 + $0x230] sm:$0xff]  ;;  %v172_v0 = vld [vmem:[#allocation2 + $0x60] sm:$0xff]  ;;  %v373_v6 = vld [vmem:[#allocation5 + $0x2a8] sm:$0xff] }
  0xb1   :  { %v3954_v49 = vpack.c.bf16 %v358_v45, %v356_v44  ;;  %v176_v8 = vld [vmem:[#allocation2 + $0x80] sm:$0xff]  ;;  %v374_v13 = vld [vmem:[#allocation5 + $0x2b0] sm:$0xff]  ;;  %v377_v14 = vld [vmem:[#allocation5 + $0x2c8] sm:$0xff] }
  0xb2   :  { %v372_v12 = vld [vmem:[#allocation5 + $0x2a0] sm:$0xff]  ;;  %v379_v15 = vld [vmem:[#allocation5 + $0x2d8] sm:$0xff]  ;;  %v185_v18 = vld [vmem:[#allocation2 + $0xc8] sm:$0xff] }
  0xb3   :  { %3915 = vmatpush1.bf16.msra.mxu0 %v3914_v50  ;;  %v169_v50 = vld [vmem:[#allocation2 + $0x48] sm:$0xff]  ;;  %v3972_v19 = vpack.c.bf16 %v379_v15, %v377_v14  ;;  %v376_v20 = vld [vmem:[#allocation5 + $0x2c0] sm:$0xff]  ;;  %v378_v21 = vld [vmem:[#allocation5 + $0x2d0] sm:$0xff] }
  0xb4   :  { %3917 = vmatprep.subr.bf16.mxu0 %v3916_v51  ;;  %v3956_v51 = vpack.c.bf16 %v363_v47, %v361_v46  ;;  %v184_v24 = vld [vmem:[#allocation2 + $0xc0] sm:$0xff]  ;;  %v3974_v25 = vpack.c.bf16 %v378_v21, %v376_v20  ;;  %v189_v26 = vld [vmem:[#allocation2 + $0xe8] sm:$0xff]  ;;  %v387_v31 = vld [vmem:[#allocation5 + $0x318] sm:$0xff] }
  0xb5   :  { %v385_v30 = vld [vmem:[#allocation5 + $0x308] sm:$0xff]  ;;  %v188_v32 = vld [vmem:[#allocation2 + $0xe0] sm:$0xff]  ;;  %v386_v37 = vld [vmem:[#allocation5 + $0x310] sm:$0xff] }
  0xb6   :  { %v384_v36 = vld [vmem:[#allocation5 + $0x300] sm:$0xff]  ;;  %v389_v38 = vld [vmem:[#allocation5 + $0x328] sm:$0xff]  ;;  %v391_v39 = vld [vmem:[#allocation5 + $0x338] sm:$0xff] }
  0xb7   :  { %3919 = vmatpush1.bf16.msra.mxu0 %v3918_v56  ;;  %v168_v56 = vld [vmem:[#allocation2 + $0x40] sm:$0xff]  ;;  %v390_v45 = vld [vmem:[#allocation5 + $0x330] sm:$0xff]  ;;  %v393_v46 = vld [vmem:[#allocation5 + $0x348] sm:$0xff] }
  0xb8   :  { %3921 = vmatprep.subr.bf16.mxu0 %v3920_v57  ;;  %v3958_v57 = vpack.c.bf16 %v362_v53, %v360_v52  ;;  %v388_v44 = vld [vmem:[#allocation5 + $0x320] sm:$0xff]  ;;  %v395_v47 = vld [vmem:[#allocation5 + $0x358] sm:$0xff]  ;;  %v394_v53 = vld [vmem:[#allocation5 + $0x350] sm:$0xff] }
  0xb9   :  { %v392_v52 = vld [vmem:[#allocation5 + $0x340] sm:$0xff]  ;;  %v397_v54 = vld [vmem:[#allocation5 + $0x368] sm:$0xff]  ;;  %v399_v55 = vld [vmem:[#allocation5 + $0x378] sm:$0xff] }
  0xba   :  { %v396_v60 = vld [vmem:[#allocation5 + $0x360] sm:$0xff]  ;;  %v398_v61 = vld [vmem:[#allocation5 + $0x370] sm:$0xff]  ;;  %v409_v14 = vld [vmem:[#allocation5 + $0x3c8] sm:$0xff] }
  0xbb   :  { %3923 = vmatpush1.bf16.msra.mxu0 %v3922_v62  ;;  %v369_v62 = vld [vmem:[#allocation5 + $0x288] sm:$0xff]  ;;  %v411_v15 = vld [vmem:[#allocation5 + $0x3d8] sm:$0xff]  ;;  %v408_v20 = vld [vmem:[#allocation5 + $0x3c0] sm:$0xff] }
  0xbc   :  { %3925 = vmatprep.subr.bf16.mxu0 %v3924_v63  ;;  %v371_v63 = vld [vmem:[#allocation5 + $0x298] sm:$0xff]  ;;  %v410_v21 = vld [vmem:[#allocation5 + $0x3d0] sm:$0xff] }
  0xbd   :  { %v3964_v3 = vpack.c.bf16 %v371_v63, %v369_v62  ;;  %v401_v62 = vld [vmem:[#allocation5 + $0x388] sm:$0xff]  ;;  %v403_v63 = vld [vmem:[#allocation5 + $0x398] sm:$0xff] }
  0xbf   :  { %3927 = vmatpush1.bf16.msra.mxu0 %v3926_v4  ;;  %v368_v4 = vld [vmem:[#allocation5 + $0x280] sm:$0xff] }
  0xc0   :  { %3929 = vmatprep.subr.bf16.mxu0 %v3928_v5  ;;  %v370_v5 = vld [vmem:[#allocation5 + $0x290] sm:$0xff] }
  0xc1   :  { %v3966_v9 = vpack.c.bf16 %v370_v5, %v368_v4  ;;  %v400_v4 = vld [vmem:[#allocation5 + $0x380] sm:$0xff]  ;;  %v402_v5 = vld [vmem:[#allocation5 + $0x390] sm:$0xff] }
  0xc3   :  { %3931 = vmatpush1.bf16.msra.mxu0 %v3930_v10  ;;  %v181_v10 = vld [vmem:[#allocation2 + $0xa8] sm:$0xff] }
  0xc4   :  { %3933 = vmatprep.subr.bf16.mxu0 %v3932_v11  ;;  %v3968_v11 = vpack.c.bf16 %v375_v7, %v373_v6  ;;  %v405_v6 = vld [vmem:[#allocation5 + $0x3a8] sm:$0xff]  ;;  %v407_v7 = vld [vmem:[#allocation5 + $0x3b8] sm:$0xff] }
  0xc7   :  { %3935 = vmatpush1.bf16.msra.mxu0 %v3934_v16  ;;  %v180_v16 = vld [vmem:[#allocation2 + $0xa0] sm:$0xff] }
  0xc8   :  { %3937 = vmatprep.subr.bf16.mxu0 %v3936_v17  ;;  %v3970_v17 = vpack.c.bf16 %v374_v13, %v372_v12  ;;  %v404_v12 = vld [vmem:[#allocation5 + $0x3a0] sm:$0xff]  ;;  %v406_v13 = vld [vmem:[#allocation5 + $0x3b0] sm:$0xff] }
  0xcb   :  { %3939 = vmatpush1.bf16.msra.mxu0 %v3938_v22  ;;  %v381_v22 = vld [vmem:[#allocation5 + $0x2e8] sm:$0xff] }
  0xcc   :  { %3941 = vmatprep.subr.bf16.mxu0 %v3940_v23  ;;  %v383_v23 = vld [vmem:[#allocation5 + $0x2f8] sm:$0xff] }
  0xcd   :  { %v3976_v27 = vpack.c.bf16 %v383_v23, %v381_v22  ;;  %v413_v22 = vld [vmem:[#allocation5 + $0x3e8] sm:$0xff]  ;;  %v415_v23 = vld [vmem:[#allocation5 + $0x3f8] sm:$0xff] }
  0xcf   :  { %3943 = vmatpush1.bf16.msra.mxu0 %v3942_v28  ;;  %v380_v28 = vld [vmem:[#allocation5 + $0x2e0] sm:$0xff] }
  0xd0   :  { %3945 = vmatprep.subr.bf16.mxu0 %v3944_v29  ;;  %v382_v29 = vld [vmem:[#allocation5 + $0x2f0] sm:$0xff] }
  0xd1   :  { %v3978_v33 = vpack.c.bf16 %v382_v29, %v380_v28  ;;  %v412_v28 = vld [vmem:[#allocation5 + $0x3e0] sm:$0xff]  ;;  %v414_v29 = vld [vmem:[#allocation5 + $0x3f0] sm:$0xff] }
  0xd3   :  { %3947 = vmatpush1.bf16.msra.mxu0 %v3946_v34  ;;  %v193_v34 = vld [vmem:[#allocation2 + $0x108] sm:$0xff] }
  0xd4   :  { %3949 = vmatprep.subr.bf16.mxu0 %v3948_v35  ;;  %v3980_v35 = vpack.c.bf16 %v387_v31, %v385_v30  ;;  %v220_v30 = vld [vmem:[#allocation2 + $0x1e0] sm:$0xff]  ;;  %v4010_v31 = vpack.c.bf16 %v414_v29, %v412_v28  ;;  %v183_v28 = vld [vmem:[#allocation2 + $0xb8] sm:$0xff] }
  0xd6   :  { %493 = vmatmul.mubr.f32.vlgmr.msra.gmra.mrb[0].mxu0 %v160_v40  ;;  %v192_v40 = vld [vmem:[#allocation2 + $0x100] sm:$0xff] }
  0xd7   :  { %3951 = vmatpush1.bf16.msra.mxu0 %v3950_v41  ;;  %498 = vmatprep.mubr.f32.mxu0 %v165_v42  ;;  %v3982_v41 = vpack.c.bf16 %v386_v37, %v384_v36  ;;  %v197_v42 = vld [vmem:[#allocation2 + $0x128] sm:$0xff]  ;;  %v232_v37 = vld [vmem:[#allocation2 + $0x240] sm:$0xff] }
  0xd8   :  { %3953 = vmatprep.subr.bf16.mxu0 %v3952_v43  ;;  %v3984_v43 = vpack.c.bf16 %v391_v39, %v389_v38  ;;  %v233_v36 = vld [vmem:[#allocation2 + $0x248] sm:$0xff]  ;;  %v236_v39 = vld [vmem:[#allocation2 + $0x260] sm:$0xff] }
  0xd9   :  { %v237_v38 = vld [vmem:[#allocation2 + $0x268] sm:$0xff] }
  0xda   :  { %499 = vmatmul.mubr.f32.gmra.mrb[2].mxu0 %v164_v48  ;;  %v196_v48 = vld [vmem:[#allocation2 + $0x120] sm:$0xff] }
  0xdb   :  { %504 = vmatprep.mubr.f32.mxu0 %v169_v50  ;;  %3955 = vmatpush1.bf16.msra.mxu0 %v3954_v49  ;;  %v3986_v49 = vpack.c.bf16 %v390_v45, %v388_v44  ;;  %v201_v50 = vld [vmem:[#allocation2 + $0x148] sm:$0xff]  ;;  %v248_v45 = vld [vmem:[#allocation2 + $0x2c0] sm:$0xff] }
  0xdc   :  { %3957 = vmatprep.subr.bf16.mxu0 %v3956_v51  ;;  %v3988_v51 = vpack.c.bf16 %v395_v47, %v393_v46  ;;  %v249_v44 = vld [vmem:[#allocation2 + $0x2c8] sm:$0xff]  ;;  %v252_v47 = vld [vmem:[#allocation2 + $0x2e0] sm:$0xff] }
  0xdd   :  { %v253_v46 = vld [vmem:[#allocation2 + $0x2e8] sm:$0xff] }
  0xde   :  { %505 = vmatmul.mubr.f32.gmra.mrb[4].mxu0 %v168_v56  ;;  %v200_v56 = vld [vmem:[#allocation2 + $0x140] sm:$0xff] }
  0xdf   :  { %510 = vmatprep.mubr.f32.mxu0 %v173_v58  ;;  %3959 = vmatpush1.bf16.msra.mxu0 %v3958_v57  ;;  %v3990_v57 = vpack.c.bf16 %v394_v53, %v392_v52  ;;  %v205_v58 = vld [vmem:[#allocation2 + $0x168] sm:$0xff]  ;;  %v264_v53 = vld [vmem:[#allocation2 + $0x340] sm:$0xff] }
  0xe0   :  { %3961 = vmatprep.subr.bf16.mxu0 %v3960_v59  ;;  %v3992_v59 = vpack.c.bf16 %v399_v55, %v397_v54  ;;  %v265_v52 = vld [vmem:[#allocation2 + $0x348] sm:$0xff]  ;;  %v268_v55 = vld [vmem:[#allocation2 + $0x360] sm:$0xff] }
  0xe1   :  { %v269_v54 = vld [vmem:[#allocation2 + $0x368] sm:$0xff] }
  0xe2   :  { %511 = vmatmul.mubr.f32.gmra.mrb[6].mxu0 %v172_v0  ;;  %v204_v0 = vld [vmem:[#allocation2 + $0x160] sm:$0xff] }
  0xe3   :  { %516 = vmatprep.mubr.f32.mxu0 %v177_v2  ;;  %3963 = vmatpush1.bf16.msra.mxu0 %v3962_v1  ;;  %v3994_v1 = vpack.c.bf16 %v398_v61, %v396_v60  ;;  %v209_v2 = vld [vmem:[#allocation2 + $0x188] sm:$0xff]  ;;  %v280_v61 = vld [vmem:[#allocation2 + $0x3c0] sm:$0xff] }
  0xe4   :  { %3965 = vmatprep.subr.bf16.mxu0 %v3964_v3  ;;  %v3996_v3 = vpack.c.bf16 %v403_v63, %v401_v62  ;;  %v281_v60 = vld [vmem:[#allocation2 + $0x3c8] sm:$0xff]  ;;  %v284_v63 = vld [vmem:[#allocation2 + $0x3e0] sm:$0xff] }
  0xe5   :  { %v285_v62 = vld [vmem:[#allocation2 + $0x3e8] sm:$0xff] }
  0xe6   :  { %517 = vmatmul.mubr.f32.gmra.mrb[8].mxu0 %v176_v8  ;;  %v208_v8 = vld [vmem:[#allocation2 + $0x180] sm:$0xff] }
  0xe7   :  { %522 = vmatprep.mubr.f32.mxu0 %v181_v10  ;;  %3967 = vmatpush1.bf16.msra.mxu0 %v3966_v9  ;;  %v3998_v9 = vpack.c.bf16 %v402_v5, %v400_v4  ;;  %v213_v10 = vld [vmem:[#allocation2 + $0x1a8] sm:$0xff]  ;;  %v162_v4 = vld [vmem:[#allocation2 + $0x10] sm:$0xff]  ;;  %v4870_v5 = vmov 0.0|0.0  }
  0xe8   :  { %3969 = vmatprep.subr.bf16.mxu0 %v3968_v11  ;;  %v4000_v11 = vpack.c.bf16 %v407_v7, %v405_v6  ;;  %4012 = vmatprep.subr.bf16.mxu1 %v4870_v5  ;;  %v1009_v7 = vld [vmem:[#allocation7 + $0x18] sm:$0xff] }
  0xea   :  { %523 = vmatmul.mubr.f32.gmra.mrb[10].mxu0 %v180_v16  ;;  %v212_v16 = vld [vmem:[#allocation2 + $0x1a0] sm:$0xff] }
  0xeb   :  { %528 = vmatprep.mubr.f32.mxu0 %v185_v18  ;;  %3971 = vmatpush1.bf16.msra.mxu0 %v3970_v17  ;;  %v4002_v17 = vpack.c.bf16 %v406_v13, %v404_v12  ;;  %v217_v18 = vld [vmem:[#allocation2 + $0x1c8] sm:$0xff]  ;;  %v166_v12 = vld [vmem:[#allocation2 + $0x30] sm:$0xff]  ;;  %v171_v13 = vld [vmem:[#allocation2 + $0x58] sm:$0xff] }
  0xec   :  { %3973 = vmatprep.subr.bf16.mxu0 %v3972_v19  ;;  %v4004_v19 = vpack.c.bf16 %v411_v15, %v409_v14  ;;  %v1012_v15 = vld [vmem:[#allocation7 + $0x30] sm:$0xff] }
  0xee   :  { %529 = vmatmul.mubr.f32.gmra.mrb[12].mxu0 %v184_v24  ;;  %v216_v24 = vld [vmem:[#allocation2 + $0x1c0] sm:$0xff] }
  0xef   :  { %534 = vmatprep.mubr.f32.mxu0 %v189_v26  ;;  %3975 = vmatpush1.bf16.msra.mxu0 %v3974_v25  ;;  %v4006_v25 = vpack.c.bf16 %v410_v21, %v408_v20  ;;  %v221_v26 = vld [vmem:[#allocation2 + $0x1e8] sm:$0xff]  ;;  %v1014_v20 = vld [vmem:[#allocation7 + $0x40] sm:$0xff] }
  0xf0   :  { %3977 = vmatprep.subr.bf16.mxu0 %v3976_v27  ;;  %v4008_v27 = vpack.c.bf16 %v415_v23, %v413_v22  ;;  %v1015_v21 = vld [vmem:[#allocation7 + $0x48] sm:$0xff]  ;;  %v174_v22 = vld [vmem:[#allocation2 + $0x70] sm:$0xff]  ;;  %v179_v23 = vld [vmem:[#allocation2 + $0x98] sm:$0xff] }
  0xf2   :  { %535 = vmatmul.mubr.f32.gmra.mrb[14].mxu0 %v188_v32  ;;  %v225_v32 = vld [vmem:[#allocation2 + $0x208] sm:$0xff] }
  0xf3   :  { %540 = vmatprep.mubr.f32.mxu0 %v193_v34  ;;  %3979 = vmatpush1.bf16.msra.mxu0 %v3978_v33  ;;  %v224_v33 = vld [vmem:[#allocation2 + $0x200] sm:$0xff]  ;;  %v229_v34 = vld [vmem:[#allocation2 + $0x228] sm:$0xff] }
  0xf4   :  { %3981 = vmatprep.subr.bf16.mxu0 %v3980_v35  ;;  %v228_v35 = vld [vmem:[#allocation2 + $0x220] sm:$0xff] }
  0xf6   :  { %541 = vmatmul.mubr.f32.gmra.mrb[16].mxu0 %v192_v40  ;;  %v241_v40 = vld [vmem:[#allocation2 + $0x288] sm:$0xff] }
  0xf7   :  { %546 = vmatprep.mubr.f32.mxu0 %v197_v42  ;;  %3983 = vmatpush1.bf16.msra.mxu0 %v3982_v41  ;;  %v240_v41 = vld [vmem:[#allocation2 + $0x280] sm:$0xff]  ;;  %v245_v42 = vld [vmem:[#allocation2 + $0x2a8] sm:$0xff] }
  0xf8   :  { %3985 = vmatprep.subr.bf16.mxu0 %v3984_v43  ;;  %v244_v43 = vld [vmem:[#allocation2 + $0x2a0] sm:$0xff] }
  0xfa   :  { %547 = vmatmul.mubr.f32.gmra.mrb[18].mxu0 %v196_v48  ;;  %v257_v48 = vld [vmem:[#allocation2 + $0x308] sm:$0xff] }
  0xfb   :  { %552 = vmatprep.mubr.f32.mxu0 %v201_v50  ;;  %3987 = vmatpush1.bf16.msra.mxu0 %v3986_v49  ;;  %v256_v49 = vld [vmem:[#allocation2 + $0x300] sm:$0xff]  ;;  %v261_v50 = vld [vmem:[#allocation2 + $0x328] sm:$0xff] }
  0xfc   :  { %3989 = vmatprep.subr.bf16.mxu0 %v3988_v51  ;;  %v260_v51 = vld [vmem:[#allocation2 + $0x320] sm:$0xff] }
  0xfe   :  { %553 = vmatmul.mubr.f32.gmra.mrb[20].mxu0 %v200_v56  ;;  %v273_v56 = vld [vmem:[#allocation2 + $0x388] sm:$0xff] }
  0xff   :  { %558 = vmatprep.mubr.f32.mxu0 %v205_v58  ;;  %3991 = vmatpush1.bf16.msra.mxu0 %v3990_v57  ;;  %v272_v57 = vld [vmem:[#allocation2 + $0x380] sm:$0xff]  ;;  %v277_v58 = vld [vmem:[#allocation2 + $0x3a8] sm:$0xff] }
 0x100   :  { %3993 = vmatprep.subr.bf16.mxu0 %v3992_v59  ;;  %v276_v59 = vld [vmem:[#allocation2 + $0x3a0] sm:$0xff] }
 0x102   :  { %559 = vmatmul.mubr.f32.gmra.mrb[22].mxu0 %v204_v0  ;;  %v163_v0 = vld [vmem:[#allocation2 + $0x18] sm:$0xff] }
 0x103   :  { %564 = vmatprep.mubr.f32.mxu0 %v209_v2  ;;  %3995 = vmatpush1.bf16.msra.mxu0 %v3994_v1  ;;  %v1006_v1 = vld [vmem:[#allocation7] sm:$0xff]  ;;  %v1007_v2 = vld [vmem:[#allocation7 + $0x8] sm:$0xff] }
 0x104   :  { %3997 = vmatprep.subr.bf16.mxu0 %v3996_v3  ;;  %v1008_v3 = vld [vmem:[#allocation7 + $0x10] sm:$0xff]  ;;  %v4013_v6 = vpack.c.bf16 %v1007_v2, %v1006_v1  ;;  %v1033_v2 = vld [vmem:[#allocation7 + $0xd8] sm:$0xff] }
 0x105   :  { %v1032_v1 = vld [vmem:[#allocation7 + $0xd0] sm:$0xff] }
 0x106   :  { %565 = vmatmul.mubr.f32.gmra.mrb[24].mxu0 %v208_v8  ;;  %v167_v8 = vld [vmem:[#allocation2 + $0x38] sm:$0xff]  ;;  %4014 = vmatpush1.bf16.msra.mxu1 %v4013_v6  ;;  %v4052_v6 = vpack.c.bf16 %v1033_v2, %v1032_v1 }
 0x107   :  { %570 = vmatprep.mubr.f32.mxu0 %v213_v10  ;;  %3999 = vmatpush1.bf16.msra.mxu0 %v3998_v9  ;;  %v4016_v9 = vpack.c.bf16 %v1009_v7, %v1008_v3  ;;  %v1010_v10 = vld [vmem:[#allocation7 + $0x20] sm:$0xff]  ;;  %v210_v3 = vld [vmem:[#allocation2 + $0x190] sm:$0xff]  ;;  %v1305_v2 = vld [vmem:[#allocation8 + $0x18] sm:$0xff] }
 0x108   :  { %4001 = vmatprep.subr.bf16.mxu0 %v4000_v11  ;;  %4015 = vmatprep.subr.bf16.mxu1 %v4870_v5  ;;  %v1011_v11 = vld [vmem:[#allocation7 + $0x28] sm:$0xff]  ;;  %v214_v7 = vld [vmem:[#allocation2 + $0x1b0] sm:$0xff] }
 0x109   :  { %v4019_v14 = vpack.c.bf16 %v1011_v11, %v1010_v10  ;;  %v223_v10 = vld [vmem:[#allocation2 + $0x1f8] sm:$0xff]  ;;  %v222_v11 = vld [vmem:[#allocation2 + $0x1f0] sm:$0xff] }
 0x10a   :  { %571 = vmatmul.mubr.f32.gmra.mrb[26].mxu0 %v212_v16  ;;  %4017 = vmatpush1.bf16.msra.mxu1 %v4016_v9  ;;  %v1013_v16 = vld [vmem:[#allocation7 + $0x38] sm:$0xff]  ;;  %v218_v9 = vld [vmem:[#allocation2 + $0x1d0] sm:$0xff] }
 0x10b   :  { %576 = vmatprep.mubr.f32.mxu0 %v217_v18  ;;  %4003 = vmatpush1.bf16.msra.mxu0 %v4002_v17  ;;  %v170_v17 = vld [vmem:[#allocation2 + $0x50] sm:$0xff]  ;;  %v175_v18 = vld [vmem:[#allocation2 + $0x78] sm:$0xff] }
 0x10c   :  { %4005 = vmatprep.subr.bf16.mxu0 %v4004_v19  ;;  %4018 = vmatprep.subr.bf16.mxu1 %v4870_v5  ;;  %v4022_v19 = vpack.c.bf16 %v1013_v16, %v1012_v15  ;;  %v230_v15 = vld [vmem:[#allocation2 + $0x230] sm:$0xff]  ;;  %v235_v16 = vld [vmem:[#allocation2 + $0x258] sm:$0xff] }
 0x10e   :  { %577 = vmatmul.mubr.f32.gmra.mrb[28].mxu0 %v216_v24  ;;  %4020 = vmatpush1.bf16.msra.mxu1 %v4019_v14  ;;  %v4025_v24 = vpack.c.bf16 %v1015_v21, %v1014_v20  ;;  %v231_v14 = vld [vmem:[#allocation2 + $0x238] sm:$0xff]  ;;  %v242_v21 = vld [vmem:[#allocation2 + $0x290] sm:$0xff] }
 0x10f   :  { %582 = vmatprep.mubr.f32.mxu0 %v221_v26  ;;  %4007 = vmatpush1.bf16.msra.mxu0 %v4006_v25  ;;  %v1016_v25 = vld [vmem:[#allocation7 + $0x50] sm:$0xff]  ;;  %v1017_v26 = vld [vmem:[#allocation7 + $0x58] sm:$0xff] }
 0x110   :  { %4009 = vmatprep.subr.bf16.mxu0 %v4008_v27  ;;  %4021 = vmatprep.subr.bf16.mxu1 %v4870_v5  ;;  %v178_v27 = vld [vmem:[#allocation2 + $0x90] sm:$0xff]  ;;  %v4028_v29 = vpack.c.bf16 %v1017_v26, %v1016_v25  ;;  %v243_v20 = vld [vmem:[#allocation2 + $0x298] sm:$0xff] }
 0x111   :  { %v246_v25 = vld [vmem:[#allocation2 + $0x2b0] sm:$0xff] }
 0x112   :  { %583 = vmatmul.mubr.f32.gmra.mrb[30].mxu0 %v220_v30  ;;  %4023 = vmatpush1.bf16.msra.mxu1 %v4022_v19  ;;  %v1018_v30 = vld [vmem:[#allocation7 + $0x60] sm:$0xff]  ;;  %v238_v19 = vld [vmem:[#allocation2 + $0x270] sm:$0xff] }
 0x113   :  { %588 = vmatprep.mubr.f32.mxu0 %v225_v32  ;;  %4011 = vmatpush1.bf16.msra.mxu0 %v4010_v31  ;;  %v1019_v31 = vld [vmem:[#allocation7 + $0x68] sm:$0xff]  ;;  %v182_v32 = vld [vmem:[#allocation2 + $0xb0] sm:$0xff] }
 0x114   :  { %4024 = vmatprep.subr.bf16.mxu1 %v4870_v5 }
 0x116   :  { %589 = vmatmul.mubr.f32.gmra.mrb[32].mxu0 %v224_v33  ;;  %4026 = vmatpush1.bf16.msra.mxu1 %v4025_v24  ;;  %v187_v33 = vld [vmem:[#allocation2 + $0xd8] sm:$0xff]  ;;  %v1035_v24 = vld [vmem:[#allocation7 + $0xe8] sm:$0xff] }
 0x117   :  { %594 = vmatprep.mubr.f32.mxu0 %v229_v34  ;;  %4027 = vmatprep.subr.bf16.mxu1 %v4870_v5  ;;  %v4031_v34 = vpack.c.bf16 %v1019_v31, %v1018_v30  ;;  %v250_v30 = vld [vmem:[#allocation2 + $0x2d0] sm:$0xff] }
 0x11a   :  { %595 = vmatmul.mubr.f32.gmra.mrb[34].mxu0 %v228_v35  ;;  %4029 = vmatpush1.bf16.msra.mxu1 %v4028_v29  ;;  %v1020_v35 = vld [vmem:[#allocation7 + $0x70] sm:$0xff]  ;;  %v1037_v29 = vld [vmem:[#allocation7 + $0xf8] sm:$0xff] }
 0x11b   :  { %600 = vmatprep.mubr.f32.mxu0 %v233_v36  ;;  %4030 = vmatprep.subr.bf16.mxu1 %v4870_v5  ;;  %v1021_v36 = vld [vmem:[#allocation7 + $0x78] sm:$0xff] }
 0x11e   :  { %601 = vmatmul.mubr.f32.gmra.mrb[36].mxu0 %v232_v37  ;;  %v186_v37 = vld [vmem:[#allocation2 + $0xd0] sm:$0xff]  ;;  %4032 = vmatpush1.bf16.msra.mxu1 %v4031_v34  ;;  %v259_v34 = vld [vmem:[#allocation2 + $0x318] sm:$0xff] }
 0x11f   :  { %606 = vmatprep.mubr.f32.mxu0 %v237_v38  ;;  %v191_v38 = vld [vmem:[#allocation2 + $0xf8] sm:$0xff]  ;;  %4033 = vmatprep.subr.bf16.mxu1 %v4870_v5 }
 0x122   :  { %607 = vmatmul.mubr.f32.gmra.mrb[38].mxu0 %v236_v39  ;;  %v4034_v39 = vpack.c.bf16 %v1021_v36, %v1020_v35  ;;  %v258_v35 = vld [vmem:[#allocation2 + $0x310] sm:$0xff]  ;;  %v263_v36 = vld [vmem:[#allocation2 + $0x338] sm:$0xff] }
 0x123   :  { %612 = vmatprep.mubr.f32.mxu0 %v241_v40  ;;  %v1022_v40 = vld [vmem:[#allocation7 + $0x80] sm:$0xff] }
 0x124   :  { %4035 = vmatpush1.bf16.msra.mxu1 %v4034_v39  ;;  %v271_v39 = vld [vmem:[#allocation2 + $0x378] sm:$0xff] }
 0x125   :  { %4036 = vmatprep.subr.bf16.mxu1 %v4870_v5 }
 0x126   :  { %613 = vmatmul.mubr.f32.gmra.mrb[40].mxu0 %v240_v41  ;;  %v1023_v41 = vld [vmem:[#allocation7 + $0x88] sm:$0xff] }
 0x127   :  { %618 = vmatprep.mubr.f32.mxu0 %v245_v42  ;;  %v190_v42 = vld [vmem:[#allocation2 + $0xf0] sm:$0xff] }
 0x12a   :  { %619 = vmatmul.mubr.f32.gmra.mrb[42].mxu0 %v244_v43  ;;  %v195_v43 = vld [vmem:[#allocation2 + $0x118] sm:$0xff] }
 0x12b   :  { %624 = vmatprep.mubr.f32.mxu0 %v249_v44  ;;  %v4037_v44 = vpack.c.bf16 %v1023_v41, %v1022_v40  ;;  %v270_v40 = vld [vmem:[#allocation2 + $0x370] sm:$0xff]  ;;  %v275_v41 = vld [vmem:[#allocation2 + $0x398] sm:$0xff] }
 0x12d   :  { %4038 = vmatpush1.bf16.msra.mxu1 %v4037_v44  ;;  %v278_v44 = vld [vmem:[#allocation2 + $0x3b0] sm:$0xff] }
 0x12e   :  { %625 = vmatmul.mubr.f32.gmra.mrb[44].mxu0 %v248_v45  ;;  %v1024_v45 = vld [vmem:[#allocation7 + $0x90] sm:$0xff]  ;;  %4039 = vmatprep.subr.bf16.mxu1 %v4870_v5 }
 0x12f   :  { %630 = vmatprep.mubr.f32.mxu0 %v253_v46  ;;  %v1025_v46 = vld [vmem:[#allocation7 + $0x98] sm:$0xff] }
 0x132   :  { %631 = vmatmul.mubr.f32.gmra.mrb[46].mxu0 %v252_v47  ;;  %v194_v47 = vld [vmem:[#allocation2 + $0x110] sm:$0xff] }
 0x133   :  { %636 = vmatprep.mubr.f32.mxu0 %v257_v48  ;;  %v199_v48 = vld [vmem:[#allocation2 + $0x138] sm:$0xff] }
 0x136   :  { %637 = vmatmul.mubr.f32.gmra.mrb[48].mxu0 %v256_v49  ;;  %v4040_v49 = vpack.c.bf16 %v1025_v46, %v1024_v45  ;;  %v283_v45 = vld [vmem:[#allocation2 + $0x3d8] sm:$0xff]  ;;  %v282_v46 = vld [vmem:[#allocation2 + $0x3d0] sm:$0xff] }
 0x137   :  { %642 = vmatprep.mubr.f32.mxu0 %v261_v50  ;;  %v1026_v50 = vld [vmem:[#allocation7 + $0xa0] sm:$0xff] }
 0x138   :  { %4041 = vmatpush1.bf16.msra.mxu1 %v4040_v49  ;;  %v418_v49 = vlaneseq }
 0x139   :  { %4042 = vmatprep.subr.bf16.mxu1 %v4870_v5 }
 0x13a   :  { %643 = vmatmul.mubr.f32.gmra.mrb[50].mxu0 %v260_v51  ;;  %v1027_v51 = vld [vmem:[#allocation7 + $0xa8] sm:$0xff] }
 0x13b   :  { %648 = vmatprep.mubr.f32.mxu0 %v265_v52  ;;  %v198_v52 = vld [vmem:[#allocation2 + $0x130] sm:$0xff] }
 0x13e   :  { %649 = vmatmul.mubr.f32.gmra.mrb[52].mxu0 %v264_v53  ;;  %v203_v53 = vld [vmem:[#allocation2 + $0x158] sm:$0xff] }
 0x13f   :  { %654 = vmatprep.mubr.f32.mxu0 %v269_v54  ;;  %v4043_v54 = vpack.c.bf16 %v1027_v51, %v1026_v50  ;;  %v419_v50 = vshrl.u32 %v418_v49, 7 }
 0x141   :  { %4044 = vmatpush1.bf16.msra.mxu1 %v4043_v54  ;;  %v420_v51 = vsub.s32 0, %v419_v50 }
 0x142   :  { %655 = vmatmul.mubr.f32.gmra.mrb[54].mxu0 %v268_v55  ;;  %v1028_v55 = vld [vmem:[#allocation7 + $0xb0] sm:$0xff]  ;;  %4045 = vmatprep.subr.bf16.mxu1 %v4870_v5 }
 0x143   :  { %660 = vmatprep.mubr.f32.mxu0 %v273_v56  ;;  %v1029_v56 = vld [vmem:[#allocation7 + $0xb8] sm:$0xff] }
 0x146   :  { %661 = vmatmul.mubr.f32.gmra.mrb[56].mxu0 %v272_v57  ;;  %v202_v57 = vld [vmem:[#allocation2 + $0x150] sm:$0xff] }
 0x147   :  { %666 = vmatprep.mubr.f32.mxu0 %v277_v58  ;;  %v207_v58 = vld [vmem:[#allocation2 + $0x178] sm:$0xff] }
 0x14a   :  { %667 = vmatmul.mubr.f32.gmra.mrb[58].mxu0 %v276_v59  ;;  %v4046_v59 = vpack.c.bf16 %v1029_v56, %v1028_v55 }
 0x14b   :  { %672 = vmatprep.mubr.f32.mxu0 %v281_v60  ;;  %v1030_v60 = vld [vmem:[#allocation7 + $0xc0] sm:$0xff] }
 0x14c   :  { %4047 = vmatpush1.bf16.msra.mxu1 %v4046_v59 }
 0x14d   :  { %4048 = vmatprep.subr.bf16.mxu1 %v4870_v5 }
 0x14e   :  { %673 = vmatmul.mubr.f32.gmra.mrb[60].mxu0 %v280_v61  ;;  %v1031_v61 = vld [vmem:[#allocation7 + $0xc8] sm:$0xff] }
 0x14f   :  { %678 = vmatprep.mubr.f32.mxu0 %v285_v62  ;;  %v206_v62 = vld [vmem:[#allocation2 + $0x170] sm:$0xff] }
 0x152   :  { %679 = vmatmul.mubr.f32.gmra.mrb[62].mxu0 %v284_v63  ;;  %v211_v63 = vld [vmem:[#allocation2 + $0x198] sm:$0xff] }
 0x153   :  { %749 = vmatprep.mubr.f32.mxu0 %v163_v0  ;;  %v4049_v0 = vpack.c.bf16 %v1031_v61, %v1030_v60  ;;  %v1302_v60 = vld [vmem:[#allocation8] sm:$0xff]  ;;  %v1303_v61 = vld [vmem:[#allocation8 + $0x8] sm:$0xff] }
 0x154   :  { %v4060_v1 = vpack.c.bf16 %v1303_v61, %v1302_v60 }
 0x155   :  { %4050 = vmatpush1.bf16.msra.mxu1 %v4049_v0 }
 0x156   :  { %750 = vmatmul.mubr.f32.vlgmr.msra.gmra.mrb[0].mxu0 %v162_v4  ;;  %v215_v4 = vld [vmem:[#allocation2 + $0x1b8] sm:$0xff]  ;;  %4051 = vmatprep.subr.bf16.mxu1 %v4870_v5 }
 0x157   :  { %755 = vmatprep.mubr.f32.mxu0 %v167_v8  ;;  %v219_v8 = vld [vmem:[#allocation2 + $0x1d8] sm:$0xff] }
 0x159   :  { %4053 = vmatpush1.bf16.msra.mxu1 %v4052_v6 }
 0x15a   :  { %756 = vmatmul.mubr.f32.gmra.mrb[2].mxu0 %v166_v12  ;;  %4054 = vmatprep.subr.bf16.mxu1 %v4870_v5  ;;  %v227_v12 = vld [vmem:[#allocation2 + $0x218] sm:$0xff] }
 0x15b   :  { %761 = vmatprep.mubr.f32.mxu0 %v171_v13  ;;  %v226_v13 = vld [vmem:[#allocation2 + $0x210] sm:$0xff] }
 0x15e   :  { %762 = vmatmul.mubr.f32.gmra.mrb[4].mxu0 %v170_v17  ;;  %v234_v17 = vld [vmem:[#allocation2 + $0x250] sm:$0xff] }
 0x15f   :  { %767 = vmatprep.mubr.f32.mxu0 %v175_v18  ;;  %v239_v18 = vld [vmem:[#allocation2 + $0x278] sm:$0xff] }
 0x162   :  { %768 = vmatmul.mubr.f32.gmra.mrb[6].mxu0 %v174_v22  ;;  %v247_v22 = vld [vmem:[#allocation2 + $0x2b8] sm:$0xff] }
 0x163   :  { %773 = vmatprep.mubr.f32.mxu0 %v179_v23  ;;  %v1034_v23 = vld [vmem:[#allocation7 + $0xe0] sm:$0xff] }
 0x164   :  { %v4055_v26 = vpack.c.bf16 %v1035_v24, %v1034_v23 }
 0x166   :  { %774 = vmatmul.mubr.f32.gmra.mrb[8].mxu0 %v178_v27  ;;  %v251_v27 = vld [vmem:[#allocation2 + $0x2d8] sm:$0xff]  ;;  %4056 = vmatpush1.bf16.msra.mxu1 %v4055_v26 }
 0x167   :  { %779 = vmatprep.mubr.f32.mxu0 %v183_v28  ;;  %4057 = vmatprep.subr.bf16.mxu1 %v4870_v5  ;;  %v1036_v28 = vld [vmem:[#allocation7 + $0xf0] sm:$0xff] }
 0x168   :  { %v4058_v31 = vpack.c.bf16 %v1037_v29, %v1036_v28  ;;  %v266_v5 = vld [vmem:[#allocation2 + $0x350] sm:$0xff]  ;;  %v1311_v28 = vld [vmem:[#allocation8 + $0x48] sm:$0xff] }
 0x16a   :  { %780 = vmatmul.mubr.f32.gmra.mrb[10].mxu0 %v182_v32  ;;  %v255_v32 = vld [vmem:[#allocation2 + $0x2f8] sm:$0xff]  ;;  %4059 = vmatpush1.bf16.msra.mxu1 %v4058_v31 }
 0x16b   :  { %785 = vmatprep.mubr.f32.mxu0 %v187_v33  ;;  %v254_v33 = vld [vmem:[#allocation2 + $0x2f0] sm:$0xff]  ;;  %4061 = vmatprep.subr.bf16.mxu1 %v4060_v1 }
 0x16e   :  { %786 = vmatmul.mubr.f32.gmra.mrb[12].mxu0 %v186_v37  ;;  %v262_v37 = vld [vmem:[#allocation2 + $0x330] sm:$0xff] }
 0x16f   :  { %791 = vmatprep.mubr.f32.mxu0 %v191_v38  ;;  %v267_v38 = vld [vmem:[#allocation2 + $0x358] sm:$0xff] }
 0x172   :  { %792 = vmatmul.mubr.f32.gmra.mrb[14].mxu0 %v190_v42  ;;  %v274_v42 = vld [vmem:[#allocation2 + $0x390] sm:$0xff] }
 0x173   :  { %797 = vmatprep.mubr.f32.mxu0 %v195_v43  ;;  %v279_v43 = vld [vmem:[#allocation2 + $0x3b8] sm:$0xff] }
 0x176   :  { %798 = vmatmul.mubr.f32.gmra.mrb[16].mxu0 %v194_v47  ;;  %v287_v47 = vld [vmem:[#allocation2 + $0x3f8] sm:$0xff] }
 0x177   :  { %803 = vmatprep.mubr.f32.mxu0 %v199_v48  ;;  %v286_v48 = vld [vmem:[#allocation2 + $0x3f0] sm:$0xff] }
 0x17a   :  { %804 = vmatmul.mubr.f32.gmra.mrb[18].mxu0 %v198_v52  ;;  %v416_v52 = vld [vmem:[%s5854_s2] sm:$0x3] }
 0x17b   :  { %809 = vmatprep.mubr.f32.mxu0 %v203_v53  ;;  %v424_v53 = vsub.s32 1, %v419_v50  ;;  %v5102_v54 = vrot.slane %v416_v52, %v420_v51 }
 0x17d   :  { %v5104_v55 = vrot.slane %v416_v52, %v424_v53 }
 0x17e   :  { %810 = vmatmul.mubr.f32.gmra.mrb[20].mxu0 %v202_v57 }
 0x17f   :  { %815 = vmatprep.mubr.f32.mxu0 %v207_v58 }
 0x182   :  { %816 = vmatmul.mubr.f32.gmra.mrb[22].mxu0 %v206_v62  ;;  %v1304_v62 = vld [vmem:[#allocation8 + $0x10] sm:$0xff] }
 0x183   :  { %821 = vmatprep.mubr.f32.mxu0 %v211_v63 }
 0x186   :  { %822 = vmatmul.mubr.f32.gmra.mrb[24].mxu0 %v210_v3 }
 0x187   :  { %827 = vmatprep.mubr.f32.mxu0 %v215_v4 }
 0x18a   :  { %828 = vmatmul.mubr.f32.gmra.mrb[26].mxu0 %v214_v7  ;;  %v4064_v7 = vpack.c.bf16 %v1305_v2, %v1304_v62 }
 0x18b   :  { %833 = vmatprep.mubr.f32.mxu0 %v219_v8 }
 0x18e   :  { %834 = vmatmul.mubr.f32.gmra.mrb[28].mxu0 %v218_v9  ;;  %v1306_v9 = vld [vmem:[#allocation8 + $0x20] sm:$0xff] }
 0x18f   :  { %839 = vmatprep.mubr.f32.mxu0 %v223_v10  ;;  %v1307_v10 = vld [vmem:[#allocation8 + $0x28] sm:$0xff] }
 0x192   :  { %840 = vmatmul.mubr.f32.gmra.mrb[30].mxu0 %v222_v11 }
 0x193   :  { %845 = vmatprep.mubr.f32.mxu0 %v227_v12 }
 0x196   :  { %846 = vmatmul.mubr.f32.gmra.mrb[32].mxu0 %v226_v13 }
 0x197   :  { %851 = vmatprep.mubr.f32.mxu0 %v231_v14 }
 0x19a   :  { %852 = vmatmul.mubr.f32.gmra.mrb[34].mxu0 %v230_v15 }
 0x19b   :  { %857 = vmatprep.mubr.f32.mxu0 %v235_v16  ;;  %v4068_v16 = vpack.c.bf16 %v1307_v10, %v1306_v9 }
 0x19e   :  { %858 = vmatmul.mubr.f32.gmra.mrb[36].mxu0 %v234_v17 }
 0x19f   :  { %863 = vmatprep.mubr.f32.mxu0 %v239_v18  ;;  %v1308_v18 = vld [vmem:[#allocation8 + $0x30] sm:$0xff] }
 0x1a2   :  { %864 = vmatmul.mubr.f32.gmra.mrb[38].mxu0 %v238_v19  ;;  %v1309_v19 = vld [vmem:[#allocation8 + $0x38] sm:$0xff] }
 0x1a3   :  { %869 = vmatprep.mubr.f32.mxu0 %v243_v20 }
 0x1a6   :  { %870 = vmatmul.mubr.f32.gmra.mrb[40].mxu0 %v242_v21 }
 0x1a7   :  { %875 = vmatprep.mubr.f32.mxu0 %v247_v22 }
 0x1aa   :  { %876 = vmatmul.mubr.f32.gmra.mrb[42].mxu0 %v246_v25  ;;  %v4072_v25 = vpack.c.bf16 %v1309_v19, %v1308_v18 }
 0x1ab   :  { %881 = vmatprep.mubr.f32.mxu0 %v251_v27  ;;  %v1310_v27 = vld [vmem:[#allocation8 + $0x40] sm:$0xff] }
 0x1ae   :  { %882 = vmatmul.mubr.f32.gmra.mrb[44].mxu0 %v250_v30 }
 0x1af   :  { %887 = vmatprep.mubr.f32.mxu0 %v255_v32 }
 0x1b2   :  { %888 = vmatmul.mubr.f32.gmra.mrb[46].mxu0 %v254_v33 }
 0x1b3   :  { %893 = vmatprep.mubr.f32.mxu0 %v259_v34  ;;  %v4076_v34 = vpack.c.bf16 %v1311_v28, %v1310_v27 }
 0x1b6   :  { %894 = vmatmul.mubr.f32.gmra.mrb[48].mxu0 %v258_v35 }
 0x1b7   :  { %899 = vmatprep.mubr.f32.mxu0 %v263_v36  ;;  %v1312_v36 = vld [vmem:[#allocation8 + $0x50] sm:$0xff] }
 0x1ba   :  { %900 = vmatmul.mubr.f32.gmra.mrb[50].mxu0 %v262_v37  ;;  %v1313_v37 = vld [vmem:[#allocation8 + $0x58] sm:$0xff] }
 0x1bb   :  { %905 = vmatprep.mubr.f32.mxu0 %v267_v38 }
 0x1be   :  { %906 = vmatmul.mubr.f32.gmra.mrb[52].mxu0 %v266_v5 }
 0x1bf   :  { %911 = vmatprep.mubr.f32.mxu0 %v271_v39 }
 0x1c2   :  { %912 = vmatmul.mubr.f32.gmra.mrb[54].mxu0 %v270_v40 }
 0x1c3   :  { %917 = vmatprep.mubr.f32.mxu0 %v275_v41 }
 0x1c6   :  { %918 = vmatmul.mubr.f32.gmra.mrb[56].mxu0 %v274_v42  ;;  %v4080_v42 = vpack.c.bf16 %v1313_v37, %v1312_v36 }
 0x1c7   :  { %923 = vmatprep.mubr.f32.mxu0 %v279_v43 }
 0x1ca   :  { %924 = vmatmul.mubr.f32.gmra.mrb[58].mxu0 %v278_v44 }
 0x1cb   :  { %929 = vmatprep.mubr.f32.mxu0 %v283_v45 }
 0x1ce   :  { %930 = vmatmul.mubr.f32.gmra.mrb[60].mxu0 %v282_v46 }
 0x1cf   :  { %935 = vmatprep.mubr.f32.mxu0 %v287_v47 }
 0x1d2   :  { %936 = vmatmul.mubr.f32.gmra.mrb[62].mxu0 %v286_v48 }
 0x229   :  { %v751_v56 = vpop.f32.mrb[0].mxu0 }
 0x22a   :  { %v4236_v57 = vadd.f32 %v751_v56, %v5102_v54  ;;  %v753_v58 = vpop.f32.mrb[1].mxu0 }
 0x22b   :  { %v4237_v59 = vadd.f32 %v753_v58, %v5104_v55 }
 0x22c   :  { %v942_v3 = vmax.f32 %v4236_v57, 0.0 }
 0x22d   :  { %v757_v63 = vpop.f32.mrb[2].mxu0  ;;  %v943_v0 = vmax.f32 %v4237_v59, 0.0 }
 0x22e   :  { %v4238_v4 = vadd.f32 %v757_v63, %v5102_v54  ;;  %v759_v6 = vpop.f32.mrb[3].mxu0 }
 0x22f   :  { %v4239_v8 = vadd.f32 %v759_v6, %v5104_v55  ;;  %1109 = vmatprep.mubr.f32.mxu1 %v943_v0 }
 0x230   :  { %1110 = vmatmul.mubr.f32.vlgmr.msra.gmra.mrb[0].mxu1 %v942_v3  ;;  %v944_v13 = vmax.f32 %v4238_v4, 0.0 }
 0x231   :  { %v945_v11 = vmax.f32 %v4239_v8, 0.0  ;;  %v763_v12 = vpop.f32.mrb[4].mxu0  ;;  %4063 = vmatpush3.bf16.msra.mxu1 %v4060_v1 }
 0x232   :  { %v4240_v14 = vadd.f32 %v763_v12, %v5102_v54  ;;  %v765_v15 = vpop.f32.mrb[5].mxu0  ;;  %4065 = vmatprep.subr.bf16.mxu1 %v4064_v7 }
 0x233   :  { %v4241_v17 = vadd.f32 %v765_v15, %v5104_v55  ;;  %1114 = vmatprep.mubr.f32.mxu1 %v945_v11 }
 0x234   :  { %1115 = vmatmul.mubr.f32.gmra.mrb[2].mxu1 %v944_v13  ;;  %v946_v22 = vmax.f32 %v4240_v14, 0.0 }
 0x235   :  { %v947_v20 = vmax.f32 %v4241_v17, 0.0  ;;  %v769_v21 = vpop.f32.mrb[6].mxu0  ;;  %4067 = vmatpush3.bf16.msra.mxu1 %v4064_v7 }
 0x236   :  { %v4242_v23 = vadd.f32 %v769_v21, %v5102_v54  ;;  %v771_v24 = vpop.f32.mrb[7].mxu0  ;;  %4069 = vmatprep.subr.bf16.mxu1 %v4068_v16 }
 0x237   :  { %v4243_v26 = vadd.f32 %v771_v24, %v5104_v55  ;;  %1119 = vmatprep.mubr.f32.mxu1 %v947_v20 }
 0x238   :  { %1120 = vmatmul.mubr.f32.gmra.mrb[4].mxu1 %v946_v22  ;;  %v948_v31 = vmax.f32 %v4242_v23, 0.0 }
 0x239   :  { %v949_v29 = vmax.f32 %v4243_v26, 0.0  ;;  %v775_v30 = vpop.f32.mrb[8].mxu0  ;;  %4071 = vmatpush3.bf16.msra.mxu1 %v4068_v16 }
 0x23a   :  { %v4244_v32 = vadd.f32 %v775_v30, %v5102_v54  ;;  %v777_v33 = vpop.f32.mrb[9].mxu0  ;;  %4073 = vmatprep.subr.bf16.mxu1 %v4072_v25 }
 0x23b   :  { %v4245_v35 = vadd.f32 %v777_v33, %v5104_v55  ;;  %1124 = vmatprep.mubr.f32.mxu1 %v949_v29 }
 0x23c   :  { %1125 = vmatmul.mubr.f32.gmra.mrb[6].mxu1 %v948_v31  ;;  %v950_v39 = vmax.f32 %v4244_v32, 0.0 }
 0x23d   :  { %v951_v38 = vmax.f32 %v4245_v35, 0.0  ;;  %v781_v5 = vpop.f32.mrb[10].mxu0  ;;  %4075 = vmatpush3.bf16.msra.mxu1 %v4072_v25 }
 0x23e   :  { %v4246_v40 = vadd.f32 %v781_v5, %v5102_v54  ;;  %v783_v41 = vpop.f32.mrb[11].mxu0  ;;  %4077 = vmatprep.subr.bf16.mxu1 %v4076_v34 }
 0x23f   :  { %v4247_v43 = vadd.f32 %v783_v41, %v5104_v55  ;;  %1129 = vmatprep.mubr.f32.mxu1 %v951_v38 }
 0x240   :  { %1130 = vmatmul.mubr.f32.gmra.mrb[8].mxu1 %v950_v39  ;;  %v952_v46 = vmax.f32 %v4246_v40, 0.0 }
 0x241   :  { %v953_v44 = vmax.f32 %v4247_v43, 0.0  ;;  %v787_v45 = vpop.f32.mrb[12].mxu0  ;;  %4079 = vmatpush3.bf16.msra.mxu1 %v4076_v34 }
 0x242   :  { %v4248_v47 = vadd.f32 %v787_v45, %v5102_v54  ;;  %v789_v48 = vpop.f32.mrb[13].mxu0  ;;  %4081 = vmatprep.subr.bf16.mxu1 %v4080_v42 }
 0x243   :  { %v4249_v50 = vadd.f32 %v789_v48, %v5104_v55  ;;  %1134 = vmatprep.mubr.f32.mxu1 %v953_v44 }
 0x244   :  { %1135 = vmatmul.mubr.f32.gmra.mrb[10].mxu1 %v952_v46  ;;  %v954_v53 = vmax.f32 %v4248_v47, 0.0 }
 0x245   :  { %v955_v51 = vmax.f32 %v4249_v50, 0.0  ;;  %v793_v52 = vpop.f32.mrb[14].mxu0  ;;  %4083 = vmatpush3.bf16.msra.mxu1 %v4080_v42 }
 0x246   :  { %v4250_v56 = vadd.f32 %v793_v52, %v5102_v54  ;;  %v795_v57 = vpop.f32.mrb[15].mxu0 }
 0x247   :  { %v4251_v58 = vadd.f32 %v795_v57, %v5104_v55  ;;  %1139 = vmatprep.mubr.f32.mxu1 %v955_v51 }
 0x248   :  { %1140 = vmatmul.mubr.f32.gmra.mrb[12].mxu1 %v954_v53  ;;  %v956_v61 = vmax.f32 %v4250_v56, 0.0 }
 0x249   :  { %v957_v59 = vmax.f32 %v4251_v58, 0.0  ;;  %v799_v60 = vpop.f32.mrb[16].mxu0 }
 0x24a   :  { %v4252_v62 = vadd.f32 %v799_v60, %v5102_v54  ;;  %v801_v63 = vpop.f32.mrb[17].mxu0 }
 0x24b   :  { %v4253_v0 = vadd.f32 %v801_v63, %v5104_v55  ;;  %1144 = vmatprep.mubr.f32.mxu1 %v957_v59 }
 0x24c   :  { %1145 = vmatmul.mubr.f32.gmra.mrb[14].mxu1 %v956_v61  ;;  %v958_v3 = vmax.f32 %v4252_v62, 0.0 }
 0x24d   :  { %v959_v1 = vmax.f32 %v4253_v0, 0.0  ;;  %v805_v2 = vpop.f32.mrb[18].mxu0 }
 0x24e   :  { %v4254_v4 = vadd.f32 %v805_v2, %v5102_v54  ;;  %v807_v6 = vpop.f32.mrb[19].mxu0 }
 0x24f   :  { %v4255_v7 = vadd.f32 %v807_v6, %v5104_v55  ;;  %1149 = vmatprep.mubr.f32.mxu1 %v959_v1 }
 0x250   :  { %1150 = vmatmul.mubr.f32.gmra.mrb[16].mxu1 %v958_v3  ;;  %v960_v10 = vmax.f32 %v4254_v4, 0.0 }
 0x251   :  { %v961_v8 = vmax.f32 %v4255_v7, 0.0  ;;  %v811_v9 = vpop.f32.mrb[20].mxu0 }
 0x252   :  { %v4256_v11 = vadd.f32 %v811_v9, %v5102_v54  ;;  %v813_v12 = vpop.f32.mrb[21].mxu0 }
 0x253   :  { %v4257_v13 = vadd.f32 %v813_v12, %v5104_v55  ;;  %1154 = vmatprep.mubr.f32.mxu1 %v961_v8 }
 0x254   :  { %1155 = vmatmul.mubr.f32.gmra.mrb[18].mxu1 %v960_v10  ;;  %v962_v16 = vmax.f32 %v4256_v11, 0.0 }
 0x255   :  { %v963_v14 = vmax.f32 %v4257_v13, 0.0  ;;  %v817_v15 = vpop.f32.mrb[22].mxu0 }
 0x256   :  { %v4258_v17 = vadd.f32 %v817_v15, %v5102_v54  ;;  %v819_v18 = vpop.f32.mrb[23].mxu0 }
 0x257   :  { %v4259_v19 = vadd.f32 %v819_v18, %v5104_v55  ;;  %1159 = vmatprep.mubr.f32.mxu1 %v963_v14 }
 0x258   :  { %1160 = vmatmul.mubr.f32.gmra.mrb[20].mxu1 %v962_v16  ;;  %v964_v22 = vmax.f32 %v4258_v17, 0.0 }
 0x259   :  { %v965_v20 = vmax.f32 %v4259_v19, 0.0  ;;  %v823_v21 = vpop.f32.mrb[24].mxu0 }
 0x25a   :  { %v4260_v23 = vadd.f32 %v823_v21, %v5102_v54  ;;  %v825_v24 = vpop.f32.mrb[25].mxu0  ;;  %v1314_v21 = vld [vmem:[#allocation8 + $0x60] sm:$0xff] }
 0x25b   :  { %v4261_v25 = vadd.f32 %v825_v24, %v5104_v55  ;;  %1164 = vmatprep.mubr.f32.mxu1 %v965_v20 }
 0x25c   :  { %1165 = vmatmul.mubr.f32.gmra.mrb[22].mxu1 %v964_v22  ;;  %v966_v28 = vmax.f32 %v4260_v23, 0.0  ;;  %v1315_v22 = vld [vmem:[#allocation8 + $0x68] sm:$0xff] }
 0x25d   :  { %v967_v26 = vmax.f32 %v4261_v25, 0.0  ;;  %v829_v27 = vpop.f32.mrb[26].mxu0 }
 0x25e   :  { %v4262_v29 = vadd.f32 %v829_v27, %v5102_v54  ;;  %v831_v30 = vpop.f32.mrb[27].mxu0 }
 0x25f   :  { %v4263_v31 = vadd.f32 %v831_v30, %v5104_v55  ;;  %1169 = vmatprep.mubr.f32.mxu1 %v967_v26  ;;  %v4084_v26 = vpack.c.bf16 %v1315_v22, %v1314_v21  ;;  %v1316_v30 = vld [vmem:[#allocation8 + $0x70] sm:$0xff] }
 0x260   :  { %1170 = vmatmul.mubr.f32.gmra.mrb[24].mxu1 %v966_v28  ;;  %v968_v34 = vmax.f32 %v4262_v29, 0.0 }
 0x261   :  { %v969_v32 = vmax.f32 %v4263_v31, 0.0  ;;  %v835_v33 = vpop.f32.mrb[28].mxu0  ;;  %4085 = vmatprep.subr.bf16.mxu1 %v4084_v26  ;;  %v1317_v31 = vld [vmem:[#allocation8 + $0x78] sm:$0xff] }
 0x262   :  { %v4264_v35 = vadd.f32 %v835_v33, %v5102_v54  ;;  %v837_v36 = vpop.f32.mrb[29].mxu0  ;;  %4087 = vmatpush3.bf16.msra.mxu1 %v4084_v26  ;;  %v5173_v26 = vld [vmem:[%s5856_s4] ss:$0 sm:$0xff] }
 0x263   :  { %v4265_v37 = vadd.f32 %v837_v36, %v5104_v55  ;;  %1174 = vmatprep.mubr.f32.mxu1 %v969_v32 }
 0x264   :  { %1175 = vmatmul.mubr.f32.gmra.mrb[26].mxu1 %v968_v34  ;;  %v970_v39 = vmax.f32 %v4264_v35, 0.0  ;;  %v4088_v35 = vpack.c.bf16 %v1317_v31, %v1316_v30  ;;  %v1582_v30 = vld [vmem:[#allocation10] sm:$0xff] }
 0x265   :  { %v971_v38 = vmax.f32 %v4265_v37, 0.0  ;;  %v841_v5 = vpop.f32.mrb[30].mxu0 }
 0x266   :  { %v4266_v40 = vadd.f32 %v841_v5, %v5102_v54  ;;  %v843_v41 = vpop.f32.mrb[31].mxu0  ;;  %4089 = vmatprep.subr.bf16.mxu1 %v4088_v35 }
 0x267   :  { %v4267_v42 = vadd.f32 %v843_v41, %v5104_v55  ;;  %1179 = vmatprep.mubr.f32.mxu1 %v971_v38  ;;  %4091 = vmatpush3.bf16.msra.mxu1 %v4088_v35 }
 0x268   :  { %1180 = vmatmul.mubr.f32.gmra.mrb[28].mxu1 %v970_v39  ;;  %v972_v45 = vmax.f32 %v4266_v40, 0.0 }
 0x269   :  { %v973_v43 = vmax.f32 %v4267_v42, 0.0  ;;  %v847_v44 = vpop.f32.mrb[32].mxu0 }
 0x26a   :  { %v4268_v46 = vadd.f32 %v847_v44, %v5102_v54  ;;  %v849_v47 = vpop.f32.mrb[33].mxu0 }
 0x26b   :  { %v4269_v48 = vadd.f32 %v849_v47, %v5104_v55  ;;  %1184 = vmatprep.mubr.f32.mxu1 %v973_v43 }
 0x26c   :  { %1185 = vmatmul.mubr.f32.gmra.mrb[30].mxu1 %v972_v45  ;;  %v974_v52 = vmax.f32 %v4268_v46, 0.0 }
 0x26d   :  { %v975_v50 = vmax.f32 %v4269_v48, 0.0  ;;  %v853_v51 = vpop.f32.mrb[34].mxu0 }
 0x26e   :  { %v4270_v53 = vadd.f32 %v853_v51, %v5102_v54  ;;  %v855_v56 = vpop.f32.mrb[35].mxu0 }
 0x26f   :  { %v4271_v57 = vadd.f32 %v855_v56, %v5104_v55  ;;  %1189 = vmatprep.mubr.f32.mxu1 %v975_v50 }
 0x270   :  { %1190 = vmatmul.mubr.f32.gmra.mrb[32].mxu1 %v974_v52  ;;  %v976_v60 = vmax.f32 %v4270_v53, 0.0 }
 0x271   :  { %v977_v58 = vmax.f32 %v4271_v57, 0.0  ;;  %v859_v59 = vpop.f32.mrb[36].mxu0 }
 0x272   :  { %v4272_v61 = vadd.f32 %v859_v59, %v5102_v54  ;;  %v861_v62 = vpop.f32.mrb[37].mxu0 }
 0x273   :  { %v4273_v63 = vadd.f32 %v861_v62, %v5104_v55  ;;  %1194 = vmatprep.mubr.f32.mxu1 %v977_v58 }
 0x274   :  { %1195 = vmatmul.mubr.f32.gmra.mrb[34].mxu1 %v976_v60  ;;  %v978_v2 = vmax.f32 %v4272_v61, 0.0 }
 0x275   :  { %v979_v0 = vmax.f32 %v4273_v63, 0.0  ;;  %v865_v1 = vpop.f32.mrb[38].mxu0 }
 0x276   :  { %v4274_v3 = vadd.f32 %v865_v1, %v5102_v54  ;;  %v867_v4 = vpop.f32.mrb[39].mxu0 }
 0x277   :  { %v4275_v6 = vadd.f32 %v867_v4, %v5104_v55  ;;  %1199 = vmatprep.mubr.f32.mxu1 %v979_v0 }
 0x278   :  { %1200 = vmatmul.mubr.f32.gmra.mrb[36].mxu1 %v978_v2  ;;  %v980_v9 = vmax.f32 %v4274_v3, 0.0 }
 0x279   :  { %v981_v7 = vmax.f32 %v4275_v6, 0.0  ;;  %v871_v8 = vpop.f32.mrb[40].mxu0 }
 0x27a   :  { %v4276_v10 = vadd.f32 %v871_v8, %v5102_v54  ;;  %v873_v11 = vpop.f32.mrb[41].mxu0 }
 0x27b   :  { %v4277_v12 = vadd.f32 %v873_v11, %v5104_v55  ;;  %1204 = vmatprep.mubr.f32.mxu1 %v981_v7 }
 0x27c   :  { %1205 = vmatmul.mubr.f32.gmra.mrb[38].mxu1 %v980_v9  ;;  %v982_v15 = vmax.f32 %v4276_v10, 0.0 }
 0x27d   :  { %v983_v13 = vmax.f32 %v4277_v12, 0.0  ;;  %v877_v14 = vpop.f32.mrb[42].mxu0 }
 0x27e   :  { %v4278_v16 = vadd.f32 %v877_v14, %v5102_v54  ;;  %v879_v17 = vpop.f32.mrb[43].mxu0 }
 0x27f   :  { %v4279_v18 = vadd.f32 %v879_v17, %v5104_v55  ;;  %1209 = vmatprep.mubr.f32.mxu1 %v983_v13 }
 0x280   :  { %1210 = vmatmul.mubr.f32.gmra.mrb[40].mxu1 %v982_v15  ;;  %v984_v23 = vmax.f32 %v4278_v16, 0.0 }
 0x281   :  { %v985_v19 = vmax.f32 %v4279_v18, 0.0  ;;  %v883_v20 = vpop.f32.mrb[44].mxu0 }
 0x282   :  { %v4280_v24 = vadd.f32 %v883_v20, %v5102_v54  ;;  %v885_v25 = vpop.f32.mrb[45].mxu0 }
 0x283   :  { %v4281_v27 = vadd.f32 %v885_v25, %v5104_v55  ;;  %1214 = vmatprep.mubr.f32.mxu1 %v985_v19 }
 0x284   :  { %1215 = vmatmul.mubr.f32.gmra.mrb[42].mxu1 %v984_v23  ;;  %v986_v32 = vmax.f32 %v4280_v24, 0.0 }
 0x285   :  { %v987_v28 = vmax.f32 %v4281_v27, 0.0  ;;  %v889_v29 = vpop.f32.mrb[46].mxu0 }
 0x286   :  { %v4282_v33 = vadd.f32 %v889_v29, %v5102_v54  ;;  %v891_v34 = vpop.f32.mrb[47].mxu0 }
 0x287   :  { %v4283_v36 = vadd.f32 %v891_v34, %v5104_v55  ;;  %1219 = vmatprep.mubr.f32.mxu1 %v987_v28  ;;  %v1585_v34 = vld [vmem:[#allocation10 + $0x18] sm:$0xff] }
 0x288   :  { %1220 = vmatmul.mubr.f32.gmra.mrb[44].mxu1 %v986_v32  ;;  %v988_v5 = vmax.f32 %v4282_v33, 0.0  ;;  %v1584_v33 = vld [vmem:[#allocation10 + $0x10] sm:$0xff] }
 0x289   :  { %v989_v37 = vmax.f32 %v4283_v36, 0.0  ;;  %v895_v38 = vpop.f32.mrb[48].mxu0 }
 0x28a   :  { %v4284_v39 = vadd.f32 %v895_v38, %v5102_v54  ;;  %v897_v40 = vpop.f32.mrb[49].mxu0  ;;  %v4096_v38 = vpack.c.bf16 %v1585_v34, %v1584_v33 }
 0x28b   :  { %v4285_v41 = vadd.f32 %v897_v40, %v5104_v55  ;;  %1224 = vmatprep.mubr.f32.mxu1 %v989_v37  ;;  %v1587_v40 = vld [vmem:[#allocation10 + $0x28] sm:$0xff] }
 0x28c   :  { %1225 = vmatmul.mubr.f32.gmra.mrb[46].mxu1 %v988_v5  ;;  %v990_v44 = vmax.f32 %v4284_v39, 0.0  ;;  %v1586_v39 = vld [vmem:[#allocation10 + $0x20] sm:$0xff] }
 0x28d   :  { %v991_v42 = vmax.f32 %v4285_v41, 0.0  ;;  %v901_v43 = vpop.f32.mrb[50].mxu0 }
 0x28e   :  { %v4286_v45 = vadd.f32 %v901_v43, %v5102_v54  ;;  %v903_v46 = vpop.f32.mrb[51].mxu0 }
 0x28f   :  { %v4287_v47 = vadd.f32 %v903_v46, %v5104_v55  ;;  %1229 = vmatprep.mubr.f32.mxu1 %v991_v42  ;;  %v1588_v46 = vld [vmem:[#allocation10 + $0x30] sm:$0xff] }
 0x290   :  { %1230 = vmatmul.mubr.f32.gmra.mrb[48].mxu1 %v990_v44  ;;  %v992_v51 = vmax.f32 %v4286_v45, 0.0  ;;  %v4100_v44 = vpack.c.bf16 %v1587_v40, %v1586_v39 }
 0x291   :  { %v993_v48 = vmax.f32 %v4287_v47, 0.0  ;;  %v907_v50 = vpop.f32.mrb[52].mxu0  ;;  %v1589_v47 = vld [vmem:[#allocation10 + $0x38] sm:$0xff] }
 0x292   :  { %v4288_v52 = vadd.f32 %v907_v50, %v5102_v54  ;;  %v909_v53 = vpop.f32.mrb[53].mxu0 }
 0x293   :  { %v4289_v56 = vadd.f32 %v909_v53, %v5104_v55  ;;  %1234 = vmatprep.mubr.f32.mxu1 %v993_v48 }
 0x294   :  { %1235 = vmatmul.mubr.f32.gmra.mrb[50].mxu1 %v992_v51  ;;  %v994_v59 = vmax.f32 %v4288_v52, 0.0  ;;  %v4104_v52 = vpack.c.bf16 %v1589_v47, %v1588_v46 }
 0x295   :  { %v995_v57 = vmax.f32 %v4289_v56, 0.0  ;;  %v913_v58 = vpop.f32.mrb[54].mxu0  ;;  %v1590_v56 = vld [vmem:[#allocation10 + $0x40] sm:$0xff] }
 0x296   :  { %v4290_v60 = vadd.f32 %v913_v58, %v5102_v54  ;;  %v915_v61 = vpop.f32.mrb[55].mxu0 }
 0x297   :  { %v4291_v62 = vadd.f32 %v915_v61, %v5104_v55  ;;  %1239 = vmatprep.mubr.f32.mxu1 %v995_v57  ;;  %v1591_v57 = vld [vmem:[#allocation10 + $0x48] sm:$0xff] }
 0x298   :  { %1240 = vmatmul.mubr.f32.gmra.mrb[52].mxu1 %v994_v59  ;;  %v996_v1 = vmax.f32 %v4290_v60, 0.0  ;;  %v4108_v61 = vpack.c.bf16 %v1591_v57, %v1590_v56 }
 0x299   :  { %v997_v63 = vmax.f32 %v4291_v62, 0.0  ;;  %v919_v0 = vpop.f32.mrb[56].mxu0 }
 0x29a   :  { %v4292_v2 = vadd.f32 %v919_v0, %v5102_v54  ;;  %v921_v3 = vpop.f32.mrb[57].mxu0  ;;  %v1593_v0 = vld [vmem:[#allocation10 + $0x58] sm:$0xff] }
 0x29b   :  { %v4293_v4 = vadd.f32 %v921_v3, %v5104_v55  ;;  %1244 = vmatprep.mubr.f32.mxu1 %v997_v63  ;;  %v1592_v63 = vld [vmem:[#allocation10 + $0x50] sm:$0xff] }
 0x29c   :  { %1245 = vmatmul.mubr.f32.gmra.mrb[54].mxu1 %v996_v1  ;;  %v998_v8 = vmax.f32 %v4292_v2, 0.0 }
 0x29d   :  { %v999_v6 = vmax.f32 %v4293_v4, 0.0  ;;  %v925_v7 = vpop.f32.mrb[58].mxu0  ;;  %v4112_v4 = vpack.c.bf16 %v1593_v0, %v1592_v63 }
 0x29e   :  { %v4294_v9 = vadd.f32 %v925_v7, %v5102_v54  ;;  %v927_v10 = vpop.f32.mrb[59].mxu0  ;;  %v1594_v7 = vld [vmem:[#allocation10 + $0x60] sm:$0xff] }
 0x29f   :  { %v4295_v11 = vadd.f32 %v927_v10, %v5104_v55  ;;  %1249 = vmatprep.mubr.f32.mxu1 %v999_v6 }
 0x2a0   :  { %1250 = vmatmul.mubr.f32.gmra.mrb[56].mxu1 %v998_v8  ;;  %v1000_v14 = vmax.f32 %v4294_v9, 0.0  ;;  %v1595_v8 = vld [vmem:[#allocation10 + $0x68] sm:$0xff] }
 0x2a1   :  { %v1001_v12 = vmax.f32 %v4295_v11, 0.0  ;;  %v931_v13 = vpop.f32.mrb[60].mxu0 }
 0x2a2   :  { %v4296_v15 = vadd.f32 %v931_v13, %v5102_v54  ;;  %v933_v16 = vpop.f32.mrb[61].mxu0 }
 0x2a3   :  { %v4297_v17 = vadd.f32 %v933_v16, %v5104_v55  ;;  %1254 = vmatprep.mubr.f32.mxu1 %v1001_v12  ;;  %v4116_v12 = vpack.c.bf16 %v1595_v8, %v1594_v7 }
 0x2a4   :  { %1255 = vmatmul.mubr.f32.gmra.mrb[58].mxu1 %v1000_v14  ;;  %v1002_v20 = vmax.f32 %v4296_v15, 0.0 }
 0x2a5   :  { %v1003_v18 = vmax.f32 %v4297_v17, 0.0  ;;  %v937_v19 = vpop.f32.mrb[62].mxu0 }
 0x2a6   :  { %v4298_v21 = vadd.f32 %v937_v19, %v5102_v54  ;;  %v939_v22 = vpop.f32.mrb[63].mxu0  ;;  %v1583_v54 = vld [vmem:[#allocation10 + $0x8] sm:$0xff] }
 0x2a7   :  { %v4299_v23 = vadd.f32 %v939_v22, %v5104_v55  ;;  %1259 = vmatprep.mubr.f32.mxu1 %v1003_v18  ;;  %v4092_v31 = vpack.c.bf16 %v1583_v54, %v1582_v30 }
 0x2a8   :  { %1260 = vmatmul.mubr.f32.gmra.mrb[60].mxu1 %v1002_v20  ;;  %v1004_v25 = vmax.f32 %v4298_v21, 0.0 }
 0x2a9   :  { %v1005_v24 = vmax.f32 %v4299_v23, 0.0  ;;  %4093 = vmatprep.subr.bf16.mxu1 %v4092_v31 }
 0x2ab   :  { %1264 = vmatprep.mubr.f32.mxu1 %v1005_v24 }
 0x2ac   :  { %1265 = vmatmul.mubr.f32.gmra.mrb[62].mxu1 %v1004_v25 }
 0x303   :  { %v1111_v27 = vpop.f32.mrb[0].mxu1 }
 0x304   :  { %v1112_v28 = vadd.f32 %v5173_v26, %v1111_v27  ;;  %v1113_v29 = vpop.f32.mrb[1].mxu1 }
 0x306   :  { %v1270_v32 = vmax.f32 %v1112_v28, 0.0 }
 0x307   :  { %v1116_v55 = vpop.f32.mrb[2].mxu1 }
 0x308   :  { %3121 = vst [vmem:[#allocation16] sm:$0xff] %v1270_v32  ;;  %v1117_v35 = vadd.f32 %v5173_v26, %v1116_v55  ;;  %v1118_v36 = vpop.f32.mrb[3].mxu1  ;;  %3516 = vmatprep.mubr.f32.mxu1 %v1270_v32 }
 0x30a   :  { %v1271_v37 = vmax.f32 %v1117_v35, 0.0 }
 0x30b   :  { %v1121_v5 = vpop.f32.mrb[4].mxu1 }
 0x30c   :  { %3122 = vst [vmem:[#allocation16 + $0x18] sm:$0xff] %v1271_v37  ;;  %v1122_v41 = vadd.f32 %v5173_v26, %v1121_v5  ;;  %v1123_v42 = vpop.f32.mrb[5].mxu1  ;;  %3517 = vmatmul.mubr.f32.vlgmr.msra.gmra.mrb[64].mxu1 %v1271_v37 }
 0x30d   :  { %4095 = vmatpush3.bf16.msra.mxu1 %v4092_v31 }
 0x30e   :  { %v1272_v43 = vmax.f32 %v1122_v41, 0.0  ;;  %4097 = vmatprep.subr.bf16.mxu1 %v4096_v38 }
 0x30f   :  { %v1126_v45 = vpop.f32.mrb[6].mxu1 }
 0x310   :  { %3123 = vst [vmem:[#allocation16 + $0x30] sm:$0xff] %v1272_v43  ;;  %v1127_v48 = vadd.f32 %v5173_v26, %v1126_v45  ;;  %v1128_v50 = vpop.f32.mrb[7].mxu1  ;;  %3519 = vmatprep.mubr.f32.mxu1 %v1272_v43 }
 0x311   :  { %4099 = vmatpush3.bf16.msra.mxu1 %v4096_v38 }
 0x312   :  { %v1273_v51 = vmax.f32 %v1127_v48, 0.0  ;;  %4101 = vmatprep.subr.bf16.mxu1 %v4100_v44 }
 0x313   :  { %v1131_v53 = vpop.f32.mrb[8].mxu1 }
 0x314   :  { %3124 = vst [vmem:[#allocation16 + $0x48] sm:$0xff] %v1273_v51  ;;  %v1132_v58 = vadd.f32 %v5173_v26, %v1131_v53  ;;  %v1133_v59 = vpop.f32.mrb[9].mxu1  ;;  %3520 = vmatmul.mubr.f32.gmra.mrb[66].mxu1 %v1273_v51 }
 0x315   :  { %4103 = vmatpush3.bf16.msra.mxu1 %v4100_v44 }
 0x316   :  { %v1274_v60 = vmax.f32 %v1132_v58, 0.0  ;;  %4105 = vmatprep.subr.bf16.mxu1 %v4104_v52 }
 0x317   :  { %v1136_v62 = vpop.f32.mrb[10].mxu1 }
 0x318   :  { %3125 = vst [vmem:[#allocation16 + $0x60] sm:$0xff] %v1274_v60  ;;  %v1137_v1 = vadd.f32 %v5173_v26, %v1136_v62  ;;  %v1138_v2 = vpop.f32.mrb[11].mxu1  ;;  %3522 = vmatprep.mubr.f32.mxu1 %v1274_v60 }
 0x319   :  { %4107 = vmatpush3.bf16.msra.mxu1 %v4104_v52 }
 0x31a   :  { %v1275_v3 = vmax.f32 %v1137_v1, 0.0  ;;  %4109 = vmatprep.subr.bf16.mxu1 %v4108_v61 }
 0x31b   :  { %v1141_v6 = vpop.f32.mrb[12].mxu1 }
 0x31c   :  { %3126 = vst [vmem:[#allocation16 + $0x78] sm:$0xff] %v1275_v3  ;;  %v1142_v9 = vadd.f32 %v5173_v26, %v1141_v6  ;;  %v1143_v10 = vpop.f32.mrb[13].mxu1  ;;  %3523 = vmatmul.mubr.f32.gmra.mrb[68].mxu1 %v1275_v3 }
 0x31d   :  { %4111 = vmatpush3.bf16.msra.mxu1 %v4108_v61 }
 0x31e   :  { %v1276_v11 = vmax.f32 %v1142_v9, 0.0  ;;  %4113 = vmatprep.subr.bf16.mxu1 %v4112_v4 }
 0x31f   :  { %v1146_v13 = vpop.f32.mrb[14].mxu1 }
 0x320   :  { %3127 = vst [vmem:[#allocation16 + $0x90] sm:$0xff] %v1276_v11  ;;  %v1147_v14 = vadd.f32 %v5173_v26, %v1146_v13  ;;  %v1148_v15 = vpop.f32.mrb[15].mxu1  ;;  %3525 = vmatprep.mubr.f32.mxu1 %v1276_v11 }
 0x321   :  { %4115 = vmatpush3.bf16.msra.mxu1 %v4112_v4 }
 0x322   :  { %v1277_v16 = vmax.f32 %v1147_v14, 0.0  ;;  %4117 = vmatprep.subr.bf16.mxu1 %v4116_v12 }
 0x323   :  { %v1151_v17 = vpop.f32.mrb[16].mxu1 }
 0x324   :  { %3128 = vst [vmem:[#allocation16 + $0xa8] sm:$0xff] %v1277_v16  ;;  %v1152_v18 = vadd.f32 %v5173_v26, %v1151_v17  ;;  %v1153_v19 = vpop.f32.mrb[17].mxu1  ;;  %3526 = vmatmul.mubr.f32.gmra.mrb[70].mxu1 %v1277_v16  ;;  %v1596_v16 = vld [vmem:[#allocation10 + $0x70] sm:$0xff]  ;;  %v1597_v17 = vld [vmem:[#allocation10 + $0x78] sm:$0xff] }
 0x325   :  { %4119 = vmatpush3.bf16.msra.mxu1 %v4116_v12 }
 0x326   :  { %v5184_v20 = vmax.f32 %v1152_v18, 0.0 }
 0x327   :  { %v1156_v21 = vpop.f32.mrb[18].mxu1 }
 0x328   :  { %3129 = vst [vmem:[#allocation16 + $0xc0] sm:$0xff] %v5184_v20  ;;  %v1157_v22 = vadd.f32 %v5173_v26, %v1156_v21  ;;  %v1158_v23 = vpop.f32.mrb[19].mxu1  ;;  %3528 = vmatprep.mubr.f32.mxu1 %v5184_v20  ;;  %v4120_v21 = vpack.c.bf16 %v1597_v17, %v1596_v16  ;;  %v1866_v16 = vld [vmem:[#allocation11 + $0x20] sm:$0xff]  ;;  %v1867_v17 = vld [vmem:[#allocation11 + $0x28] sm:$0xff] }
 0x32a   :  { %v5189_v24 = vmax.f32 %v1157_v22, 0.0  ;;  %4121 = vmatprep.subr.bf16.mxu1 %v4120_v21 }
 0x32b   :  { %v1161_v25 = vpop.f32.mrb[20].mxu1  ;;  %4123 = vmatpush3.bf16.msra.mxu1 %v4120_v21  ;;  %v4132_v21 = vpack.c.bf16 %v1867_v17, %v1866_v16 }
 0x32c   :  { %3130 = vst [vmem:[#allocation16 + $0xd8] sm:$0xff] %v5189_v24  ;;  %v1162_v27 = vadd.f32 %v5173_v26, %v1161_v25  ;;  %v1163_v28 = vpop.f32.mrb[21].mxu1  ;;  %3529 = vmatmul.mubr.f32.gmra.mrb[72].mxu1 %v5189_v24 }
 0x32e   :  { %v5194_v29 = vmax.f32 %v1162_v27, 0.0 }
 0x32f   :  { %v1166_v30 = vpop.f32.mrb[22].mxu1 }
 0x330   :  { %3131 = vst [vmem:[#allocation16 + $0xf0] sm:$0xff] %v5194_v29  ;;  %v1167_v54 = vadd.f32 %v5173_v26, %v1166_v30  ;;  %v1168_v31 = vpop.f32.mrb[23].mxu1  ;;  %3531 = vmatprep.mubr.f32.mxu1 %v5194_v29 }
 0x332   :  { %v5199_v32 = vmax.f32 %v1167_v54, 0.0 }
 0x333   :  { %v1171_v55 = vpop.f32.mrb[24].mxu1 }
 0x334   :  { %3132 = vst [vmem:[#allocation16 + $0x108] sm:$0xff] %v5199_v32  ;;  %v1172_v33 = vadd.f32 %v5173_v26, %v1171_v55  ;;  %v1173_v34 = vpop.f32.mrb[25].mxu1  ;;  %3532 = vmatmul.mubr.f32.gmra.mrb[74].mxu1 %v5199_v32 }
 0x336   :  { %v5204_v35 = vmax.f32 %v1172_v33, 0.0 }
 0x337   :  { %v1176_v36 = vpop.f32.mrb[26].mxu1 }
 0x338   :  { %3133 = vst [vmem:[#allocation16 + $0x120] sm:$0xff] %v5204_v35  ;;  %v1177_v37 = vadd.f32 %v5173_v26, %v1176_v36  ;;  %v1178_v38 = vpop.f32.mrb[27].mxu1  ;;  %3534 = vmatprep.mubr.f32.mxu1 %v5204_v35 }
 0x33a   :  { %v5209_v5 = vmax.f32 %v1177_v37, 0.0 }
 0x33b   :  { %v1181_v39 = vpop.f32.mrb[28].mxu1 }
 0x33c   :  { %3134 = vst [vmem:[#allocation16 + $0x138] sm:$0xff] %v5209_v5  ;;  %v1182_v40 = vadd.f32 %v5173_v26, %v1181_v39  ;;  %v1183_v41 = vpop.f32.mrb[29].mxu1  ;;  %3535 = vmatmul.mubr.f32.gmra.mrb[76].mxu1 %v5209_v5 }
 0x33e   :  { %v5214_v42 = vmax.f32 %v1182_v40, 0.0 }
 0x33f   :  { %v1186_v43 = vpop.f32.mrb[30].mxu1 }
 0x340   :  { %3135 = vst [vmem:[#allocation16 + $0x150] sm:$0xff] %v5214_v42  ;;  %v1187_v44 = vadd.f32 %v5173_v26, %v1186_v43  ;;  %v1188_v45 = vpop.f32.mrb[31].mxu1  ;;  %3537 = vmatprep.mubr.f32.mxu1 %v5214_v42 }
 0x342   :  { %v5219_v46 = vmax.f32 %v1187_v44, 0.0 }
 0x343   :  { %v1191_v47 = vpop.f32.mrb[32].mxu1 }
 0x344   :  { %3136 = vst [vmem:[#allocation16 + $0x168] sm:$0xff] %v5219_v46  ;;  %v1192_v48 = vadd.f32 %v5173_v26, %v1191_v47  ;;  %v1193_v50 = vpop.f32.mrb[33].mxu1  ;;  %3538 = vmatmul.mubr.f32.gmra.mrb[78].mxu1 %v5219_v46 }
 0x346   :  { %v5224_v51 = vmax.f32 %v1192_v48, 0.0 }
 0x347   :  { %v1196_v52 = vpop.f32.mrb[34].mxu1 }
 0x348   :  { %3137 = vst [vmem:[#allocation16 + $0x180] sm:$0xff] %v5224_v51  ;;  %v1197_v53 = vadd.f32 %v5173_v26, %v1196_v52  ;;  %v1198_v56 = vpop.f32.mrb[35].mxu1  ;;  %3540 = vmatprep.mubr.f32.mxu1 %v5224_v51 }
 0x34a   :  { %v5229_v57 = vmax.f32 %v1197_v53, 0.0 }
 0x34b   :  { %v1201_v58 = vpop.f32.mrb[36].mxu1 }
 0x34c   :  { %3138 = vst [vmem:[#allocation16 + $0x198] sm:$0xff] %v5229_v57  ;;  %v1202_v59 = vadd.f32 %v5173_v26, %v1201_v58  ;;  %v1203_v60 = vpop.f32.mrb[37].mxu1  ;;  %3541 = vmatmul.mubr.f32.gmra.mrb[80].mxu1 %v5229_v57 }
 0x34e   :  { %v5234_v61 = vmax.f32 %v1202_v59, 0.0 }
 0x34f   :  { %v1206_v62 = vpop.f32.mrb[38].mxu1 }
 0x350   :  { %3139 = vst [vmem:[#allocation16 + $0x1b0] sm:$0xff] %v5234_v61  ;;  %v1207_v63 = vadd.f32 %v5173_v26, %v1206_v62  ;;  %v1208_v0 = vpop.f32.mrb[39].mxu1  ;;  %3543 = vmatprep.mubr.f32.mxu1 %v5234_v61 }
 0x352   :  { %v5239_v1 = vmax.f32 %v1207_v63, 0.0 }
 0x353   :  { %v1211_v2 = vpop.f32.mrb[40].mxu1 }
 0x354   :  { %3140 = vst [vmem:[#allocation16 + $0x1c8] sm:$0xff] %v5239_v1  ;;  %v1212_v3 = vadd.f32 %v5173_v26, %v1211_v2  ;;  %v1213_v4 = vpop.f32.mrb[41].mxu1  ;;  %3544 = vmatmul.mubr.f32.gmra.mrb[82].mxu1 %v5239_v1 }
 0x355   :  { %v1862_v4 = vld [vmem:[#allocation11] sm:$0xff] }
 0x356   :  { %v5244_v6 = vmax.f32 %v1212_v3, 0.0  ;;  %v5306_v3 = vld [vmem:[%s5858_s6] ss:$0 sm:$0xff] }
 0x357   :  { %v1216_v7 = vpop.f32.mrb[42].mxu1 }
 0x358   :  { %3141 = vst [vmem:[#allocation16 + $0x1e0] sm:$0xff] %v5244_v6  ;;  %v1217_v8 = vadd.f32 %v5173_v26, %v1216_v7  ;;  %v1218_v9 = vpop.f32.mrb[43].mxu1  ;;  %3546 = vmatprep.mubr.f32.mxu1 %v5244_v6  ;;  %v1863_v7 = vld [vmem:[#allocation11 + $0x8] sm:$0xff] }
 0x35a   :  { %v5249_v10 = vmax.f32 %v1217_v8, 0.0  ;;  %v1864_v8 = vld [vmem:[#allocation11 + $0x10] sm:$0xff] }
 0x35b   :  { %v1221_v11 = vpop.f32.mrb[44].mxu1 }
 0x35c   :  { %3142 = vst [vmem:[#allocation16 + $0x1f8] sm:$0xff] %v5249_v10  ;;  %v1222_v12 = vadd.f32 %v5173_v26, %v1221_v11  ;;  %v1223_v13 = vpop.f32.mrb[45].mxu1  ;;  %3547 = vmatmul.mubr.f32.gmra.mrb[84].mxu1 %v5249_v10  ;;  %v4124_v11 = vpack.c.bf16 %v1863_v7, %v1862_v4 }
 0x35e   :  { %v5254_v14 = vmax.f32 %v1222_v12, 0.0  ;;  %4125 = vmatprep.subr.bf16.mxu0 %v4124_v11  ;;  %4220 = vmatprep.subr.bf16.mxu1 %v4124_v11 }
 0x35f   :  { %v1226_v15 = vpop.f32.mrb[46].mxu1  ;;  %4127 = vmatpush3.bf16.msra.mxu0 %v4124_v11 }
 0x360   :  { %3143 = vst [vmem:[#allocation16 + $0x210] sm:$0xff] %v5254_v14  ;;  %v1227_v18 = vadd.f32 %v5173_v26, %v1226_v15  ;;  %v1228_v19 = vpop.f32.mrb[47].mxu1  ;;  %3549 = vmatprep.mubr.f32.mxu1 %v5254_v14 }
 0x362   :  { %v5259_v22 = vmax.f32 %v1227_v18, 0.0 }
 0x363   :  { %v1231_v23 = vpop.f32.mrb[48].mxu1 }
 0x364   :  { %3144 = vst [vmem:[#allocation16 + $0x228] sm:$0xff] %v5259_v22  ;;  %v1232_v25 = vadd.f32 %v5173_v26, %v1231_v23  ;;  %v1233_v27 = vpop.f32.mrb[49].mxu1  ;;  %3550 = vmatmul.mubr.f32.gmra.mrb[86].mxu1 %v5259_v22 }
 0x365   :  { %v1869_v27 = vld [vmem:[#allocation11 + $0x38] sm:$0xff] }
 0x366   :  { %v5264_v28 = vmax.f32 %v1232_v25, 0.0  ;;  %v1868_v25 = vld [vmem:[#allocation11 + $0x30] sm:$0xff] }
 0x367   :  { %v1236_v30 = vpop.f32.mrb[50].mxu1 }
 0x368   :  { %3145 = vst [vmem:[#allocation16 + $0x240] sm:$0xff] %v5264_v28  ;;  %v1237_v54 = vadd.f32 %v5173_v26, %v1236_v30  ;;  %v1238_v31 = vpop.f32.mrb[51].mxu1  ;;  %3552 = vmatprep.mubr.f32.mxu1 %v5264_v28 }
 0x36a   :  { %v5269_v55 = vmax.f32 %v1237_v54, 0.0  ;;  %v4136_v54 = vpack.c.bf16 %v1869_v27, %v1868_v25 }
 0x36b   :  { %v1241_v33 = vpop.f32.mrb[52].mxu1 }
 0x36c   :  { %3146 = vst [vmem:[#allocation16 + $0x258] sm:$0xff] %v5269_v55  ;;  %v1242_v34 = vadd.f32 %v5173_v26, %v1241_v33  ;;  %v1243_v36 = vpop.f32.mrb[53].mxu1  ;;  %3553 = vmatmul.mubr.f32.gmra.mrb[88].mxu1 %v5269_v55 }
 0x36d   :  { %v1871_v36 = vld [vmem:[#allocation11 + $0x48] sm:$0xff] }
 0x36e   :  { %v5274_v37 = vmax.f32 %v1242_v34, 0.0  ;;  %v1870_v34 = vld [vmem:[#allocation11 + $0x40] sm:$0xff] }
 0x36f   :  { %v1246_v38 = vpop.f32.mrb[54].mxu1 }
 0x370   :  { %3147 = vst [vmem:[#allocation16 + $0x270] sm:$0xff] %v5274_v37  ;;  %v1247_v39 = vadd.f32 %v5173_v26, %v1246_v38  ;;  %v1248_v40 = vpop.f32.mrb[55].mxu1  ;;  %3555 = vmatprep.mubr.f32.mxu1 %v5274_v37 }
 0x371   :  { %v4140_v40 = vpack.c.bf16 %v1871_v36, %v1870_v34 }
 0x372   :  { %v5279_v41 = vmax.f32 %v1247_v39, 0.0 }
 0x373   :  { %v1251_v43 = vpop.f32.mrb[56].mxu1 }
 0x374   :  { %3148 = vst [vmem:[#allocation16 + $0x288] sm:$0xff] %v5279_v41  ;;  %v1252_v44 = vadd.f32 %v5173_v26, %v1251_v43  ;;  %v1253_v45 = vpop.f32.mrb[57].mxu1  ;;  %3556 = vmatmul.mubr.f32.gmra.mrb[90].mxu1 %v5279_v41 }
 0x375   :  { %v1873_v45 = vld [vmem:[#allocation11 + $0x58] sm:$0xff] }
 0x376   :  { %v5284_v47 = vmax.f32 %v1252_v44, 0.0  ;;  %v1872_v44 = vld [vmem:[#allocation11 + $0x50] sm:$0xff] }
 0x377   :  { %v1256_v48 = vpop.f32.mrb[58].mxu1 }
 0x378   :  { %3149 = vst [vmem:[#allocation16 + $0x2a0] sm:$0xff] %v5284_v47  ;;  %v1257_v50 = vadd.f32 %v5173_v26, %v1256_v48  ;;  %v1258_v52 = vpop.f32.mrb[59].mxu1  ;;  %3558 = vmatprep.mubr.f32.mxu1 %v5284_v47 }
 0x37a   :  { %v5289_v53 = vmax.f32 %v1257_v50, 0.0  ;;  %v4144_v50 = vpack.c.bf16 %v1873_v45, %v1872_v44 }
 0x37b   :  { %v1261_v56 = vpop.f32.mrb[60].mxu1 }
 0x37c   :  { %3150 = vst [vmem:[#allocation16 + $0x2b8] sm:$0xff] %v5289_v53  ;;  %v1262_v58 = vadd.f32 %v5173_v26, %v1261_v56  ;;  %v1263_v59 = vpop.f32.mrb[61].mxu1  ;;  %3559 = vmatmul.mubr.f32.gmra.mrb[92].mxu1 %v5289_v53 }
 0x37d   :  { %v1875_v59 = vld [vmem:[#allocation11 + $0x68] sm:$0xff] }
 0x37e   :  { %v5294_v60 = vmax.f32 %v1262_v58, 0.0  ;;  %v1874_v58 = vld [vmem:[#allocation11 + $0x60] sm:$0xff] }
 0x37f   :  { %v1266_v62 = vpop.f32.mrb[62].mxu1 }
 0x380   :  { %3151 = vst [vmem:[#allocation16 + $0x2d0] sm:$0xff] %v5294_v60  ;;  %v1267_v63 = vadd.f32 %v5173_v26, %v1266_v62  ;;  %v1268_v0 = vpop.f32.mrb[63].mxu1  ;;  %3561 = vmatprep.mubr.f32.mxu1 %v5294_v60  ;;  %v1865_v26 = vld [vmem:[#allocation11 + $0x18] sm:$0xff] }
 0x381   :  { %v4128_v15 = vpack.c.bf16 %v1865_v26, %v1864_v8  ;;  %v4148_v0 = vpack.c.bf16 %v1875_v59, %v1874_v58 }
 0x382   :  { %v5299_v2 = vmax.f32 %v1267_v63, 0.0 }
 0x383   :  { %4129 = vmatprep.subr.bf16.mxu0 %v4128_v15 }
 0x384   :  { %3152 = vst [vmem:[#allocation16 + $0x2e8] sm:$0xff] %v5299_v2  ;;  %3562 = vmatmul.mubr.f32.gmra.mrb[94].mxu1 %v5299_v2  ;;  %4131 = vmatpush3.bf16.msra.mxu0 %v4128_v15 }
 0x385   :  { %4133 = vmatprep.subr.bf16.mxu0 %v4132_v21 }
 0x388   :  { %4135 = vmatpush3.bf16.msra.mxu0 %v4132_v21 }
 0x389   :  { %4137 = vmatprep.subr.bf16.mxu0 %v4136_v54 }
 0x38c   :  { %4139 = vmatpush3.bf16.msra.mxu0 %v4136_v54 }
 0x38d   :  { %4141 = vmatprep.subr.bf16.mxu0 %v4140_v40 }
 0x390   :  { %4143 = vmatpush3.bf16.msra.mxu0 %v4140_v40 }
 0x391   :  { %4145 = vmatprep.subr.bf16.mxu0 %v4144_v50 }
 0x394   :  { %4147 = vmatpush3.bf16.msra.mxu0 %v4144_v50 }
 0x395   :  { %4149 = vmatprep.subr.bf16.mxu0 %v4148_v0 }
 0x398   :  { %4151 = vmatpush3.bf16.msra.mxu0 %v4148_v0 }
 0x3df   :  { %v3518_v9 = vpop.f32.mrb[64].mxu1 }
 0x3e0   :  { %v1397_v12 = vadd.f32 %v3518_v9, %v5306_v3  ;;  %v1391_v13 = vpop.f32.mrb[65].mxu1 }
 0x3e1   :  { %v1392_v18 = vadd.f32 %v5306_v3, %v1391_v13 }
 0x3e2   :  { %v1551_v23 = vmax.f32 %v1397_v12, 0.0 }
 0x3e3   :  { %v1550_v19 = vmax.f32 %v1392_v18, 0.0 }
 0x3e5   :  { %3596 = vmatprep.mubr.f32.mxu1 %v1550_v19 }
 0x3e6   :  { %3597 = vmatmul.mubr.f32.vlgmr.msra.gmra.mrb[96].mxu1 %v1551_v23 }
 0x3e7   :  { %v3521_v30 = vpop.f32.mrb[66].mxu1  ;;  %4228 = vmatpush3.bf16.msra.mxu1 %v4124_v11 }
 0x3e8   :  { %v1407_v31 = vadd.f32 %v3521_v30, %v5306_v3  ;;  %v1401_v33 = vpop.f32.mrb[67].mxu1  ;;  %4221 = vmatprep.subr.bf16.mxu1 %v4128_v15 }
 0x3e9   :  { %v1402_v38 = vadd.f32 %v5306_v3, %v1401_v33 }
 0x3ea   :  { %v1553_v43 = vmax.f32 %v1407_v31, 0.0 }
 0x3eb   :  { %v1552_v39 = vmax.f32 %v1402_v38, 0.0  ;;  %4229 = vmatpush3.bf16.msra.mxu1 %v4128_v15 }
 0x3ec   :  { %4222 = vmatprep.subr.bf16.mxu1 %v4132_v21 }
 0x3ed   :  { %3599 = vmatprep.mubr.f32.mxu1 %v1552_v39 }
 0x3ee   :  { %3600 = vmatmul.mubr.f32.gmra.mrb[98].mxu1 %v1553_v43 }
 0x3ef   :  { %v3524_v48 = vpop.f32.mrb[68].mxu1  ;;  %4230 = vmatpush3.bf16.msra.mxu1 %v4132_v21 }
 0x3f0   :  { %v1417_v52 = vadd.f32 %v3524_v48, %v5306_v3  ;;  %v1411_v56 = vpop.f32.mrb[69].mxu1  ;;  %4223 = vmatprep.subr.bf16.mxu1 %v4136_v54 }
 0x3f1   :  { %v1412_v62 = vadd.f32 %v5306_v3, %v1411_v56 }
 0x3f2   :  { %v1555_v4 = vmax.f32 %v1417_v52, 0.0 }
 0x3f3   :  { %v1554_v63 = vmax.f32 %v1412_v62, 0.0  ;;  %4231 = vmatpush3.bf16.msra.mxu1 %v4136_v54 }
 0x3f4   :  { %4224 = vmatprep.subr.bf16.mxu1 %v4140_v40 }
 0x3f5   :  { %3602 = vmatprep.mubr.f32.mxu1 %v1554_v63 }
 0x3f6   :  { %3603 = vmatmul.mubr.f32.gmra.mrb[100].mxu1 %v1555_v4 }
 0x3f7   :  { %v3527_v7 = vpop.f32.mrb[70].mxu1  ;;  %4232 = vmatpush3.bf16.msra.mxu1 %v4140_v40 }
 0x3f8   :  { %v1427_v8 = vadd.f32 %v3527_v7, %v5306_v3  ;;  %v1421_v9 = vpop.f32.mrb[71].mxu1  ;;  %4225 = vmatprep.subr.bf16.mxu1 %v4144_v50 }
 0x3f9   :  { %v1422_v11 = vadd.f32 %v5306_v3, %v1421_v9 }
 0x3fa   :  { %v1557_v12 = vmax.f32 %v1427_v8, 0.0 }
 0x3fb   :  { %v1556_v26 = vmax.f32 %v1422_v11, 0.0  ;;  %4233 = vmatpush3.bf16.msra.mxu1 %v4144_v50 }
 0x3fc   :  { %4226 = vmatprep.subr.bf16.mxu1 %v4148_v0 }
 0x3fd   :  { %3605 = vmatprep.mubr.f32.mxu1 %v1556_v26 }
 0x3fe   :  { %3606 = vmatmul.mubr.f32.gmra.mrb[102].mxu1 %v1557_v12 }
 0x3ff   :  { %v3530_v13 = vpop.f32.mrb[72].mxu1  ;;  %4234 = vmatpush3.bf16.msra.mxu1 %v4148_v0 }
 0x400   :  { %v1437_v15 = vadd.f32 %v3530_v13, %v5306_v3  ;;  %v1431_v16 = vpop.f32.mrb[73].mxu1 }
 0x401   :  { %v1432_v17 = vadd.f32 %v5306_v3, %v1431_v16 }
 0x402   :  { %v1559_v19 = vmax.f32 %v1437_v15, 0.0 }
 0x403   :  { %v1558_v18 = vmax.f32 %v1432_v17, 0.0 }
 0x405   :  { %3608 = vmatprep.mubr.f32.mxu1 %v1558_v18 }
 0x406   :  { %3609 = vmatmul.mubr.f32.gmra.mrb[104].mxu1 %v1559_v19 }
 0x407   :  { %v3533_v21 = vpop.f32.mrb[74].mxu1 }
 0x408   :  { %v1447_v23 = vadd.f32 %v3533_v21, %v5306_v3  ;;  %v1441_v25 = vpop.f32.mrb[75].mxu1 }
 0x409   :  { %v1442_v27 = vadd.f32 %v5306_v3, %v1441_v25  ;;  %v1876_v25 = vld [vmem:[#allocation11 + $0x70] sm:$0xff] }
 0x40a   :  { %v1561_v54 = vmax.f32 %v1447_v23, 0.0 }
 0x40b   :  { %v1560_v30 = vmax.f32 %v1442_v27, 0.0  ;;  %v1877_v27 = vld [vmem:[#allocation11 + $0x78] sm:$0xff] }
 0x40d   :  { %3611 = vmatprep.mubr.f32.mxu1 %v1560_v30  ;;  %v4152_v30 = vpack.c.bf16 %v1877_v27, %v1876_v25 }
 0x40e   :  { %3612 = vmatmul.mubr.f32.gmra.mrb[106].mxu1 %v1561_v54 }
 0x40f   :  { %v3536_v31 = vpop.f32.mrb[76].mxu1  ;;  %4153 = vmatprep.subr.bf16.mxu0 %v4152_v30  ;;  %4227 = vmatprep.subr.bf16.mxu1 %v4152_v30 }
 0x410   :  { %v1457_v33 = vadd.f32 %v3536_v31, %v5306_v3  ;;  %v1451_v34 = vpop.f32.mrb[77].mxu1  ;;  %4155 = vmatpush3.bf16.msra.mxu0 %v4152_v30  ;;  %4235 = vmatpush3.bf16.msra.mxu1 %v4152_v30 }
 0x411   :  { %v1452_v36 = vadd.f32 %v5306_v3, %v1451_v34 }
 0x412   :  { %v1563_v39 = vmax.f32 %v1457_v33, 0.0 }
 0x413   :  { %v1562_v38 = vmax.f32 %v1452_v36, 0.0 }
 0x415   :  { %3614 = vmatprep.mubr.f32.mxu1 %v1562_v38 }
 0x416   :  { %3615 = vmatmul.mubr.f32.gmra.mrb[108].mxu1 %v1563_v39 }
 0x417   :  { %v3539_v40 = vpop.f32.mrb[78].mxu1 }
 0x418   :  { %v1467_v43 = vadd.f32 %v3539_v40, %v5306_v3  ;;  %v1461_v44 = vpop.f32.mrb[79].mxu1 }
 0x419   :  { %v1462_v45 = vadd.f32 %v5306_v3, %v1461_v44 }
 0x41a   :  { %v1565_v50 = vmax.f32 %v1467_v43, 0.0 }
 0x41b   :  { %v1564_v48 = vmax.f32 %v1462_v45, 0.0 }
 0x41d   :  { %3617 = vmatprep.mubr.f32.mxu1 %v1564_v48 }
 0x41e   :  { %3618 = vmatmul.mubr.f32.gmra.mrb[110].mxu1 %v1565_v50 }
 0x41f   :  { %v3542_v52 = vpop.f32.mrb[80].mxu1 }
 0x420   :  { %v1477_v56 = vadd.f32 %v3542_v52, %v5306_v3  ;;  %v1471_v58 = vpop.f32.mrb[81].mxu1 }
 0x421   :  { %v1472_v59 = vadd.f32 %v5306_v3, %v1471_v58 }
 0x422   :  { %v1567_v63 = vmax.f32 %v1477_v56, 0.0 }
 0x423   :  { %v1566_v62 = vmax.f32 %v1472_v59, 0.0 }
 0x425   :  { %3620 = vmatprep.mubr.f32.mxu1 %v1566_v62 }
 0x426   :  { %3621 = vmatmul.mubr.f32.gmra.mrb[112].mxu1 %v1567_v63 }
 0x427   :  { %v3545_v0 = vpop.f32.mrb[82].mxu1 }
 0x428   :  { %v1487_v4 = vadd.f32 %v3545_v0, %v5306_v3  ;;  %v1481_v7 = vpop.f32.mrb[83].mxu1 }
 0x429   :  { %v1482_v8 = vadd.f32 %v5306_v3, %v1481_v7 }
 0x42a   :  { %v1569_v11 = vmax.f32 %v1487_v4, 0.0 }
 0x42b   :  { %v1568_v9 = vmax.f32 %v1482_v8, 0.0 }
 0x42d   :  { %3623 = vmatprep.mubr.f32.mxu1 %v1568_v9 }
 0x42e   :  { %3624 = vmatmul.mubr.f32.gmra.mrb[114].mxu1 %v1569_v11 }
 0x42f   :  { %v3548_v26 = vpop.f32.mrb[84].mxu1 }
 0x430   :  { %v1497_v12 = vadd.f32 %v3548_v26, %v5306_v3  ;;  %v1491_v13 = vpop.f32.mrb[85].mxu1 }
 0x431   :  { %v1492_v15 = vadd.f32 %v5306_v3, %v1491_v13  ;;  %v2434_v13 = vld [vmem:[#allocation13 + $0x8] sm:$0xff] }
 0x432   :  { %v1571_v17 = vmax.f32 %v1497_v12, 0.0  ;;  %v2433_v12 = vld [vmem:[#allocation13] sm:$0xff] }
 0x433   :  { %v1570_v16 = vmax.f32 %v1492_v15, 0.0  ;;  %v5340_v15 = vpack.c.bf16 %v2434_v13, %v2433_v12 }
 0x435   :  { %3626 = vmatprep.mubr.f32.mxu1 %v1570_v16  ;;  %4157 = vmatprep.subr.bf16.mxu1 %v5340_v15  ;;  %v5346_v16 = vld [vmem:[%s5860_s8] ss:$0 sm:$0xff] }
 0x436   :  { %3627 = vmatmul.mubr.f32.gmra.mrb[116].mxu1 %v1571_v17 }
 0x437   :  { %v3551_v18 = vpop.f32.mrb[86].mxu1 }
 0x438   :  { %v1507_v19 = vadd.f32 %v3551_v18, %v5306_v3  ;;  %v1501_v21 = vpop.f32.mrb[87].mxu1 }
 0x439   :  { %v1502_v23 = vadd.f32 %v5306_v3, %v1501_v21 }
 0x43a   :  { %v1573_v31 = vmax.f32 %v1507_v19, 0.0 }
 0x43b   :  { %v1572_v54 = vmax.f32 %v1502_v23, 0.0 }
 0x43d   :  { %3629 = vmatprep.mubr.f32.mxu1 %v1572_v54 }
 0x43e   :  { %3630 = vmatmul.mubr.f32.gmra.mrb[118].mxu1 %v1573_v31 }
 0x43f   :  { %v3554_v33 = vpop.f32.mrb[88].mxu1 }
 0x440   :  { %v1517_v34 = vadd.f32 %v3554_v33, %v5306_v3  ;;  %v1511_v36 = vpop.f32.mrb[89].mxu1 }
 0x441   :  { %v1512_v38 = vadd.f32 %v5306_v3, %v1511_v36 }
 0x442   :  { %v1575_v40 = vmax.f32 %v1517_v34, 0.0 }
 0x443   :  { %v1574_v39 = vmax.f32 %v1512_v38, 0.0 }
 0x445   :  { %3632 = vmatprep.mubr.f32.mxu1 %v1574_v39 }
 0x446   :  { %3633 = vmatmul.mubr.f32.gmra.mrb[120].mxu1 %v1575_v40 }
 0x447   :  { %v3557_v43 = vpop.f32.mrb[90].mxu1 }
 0x448   :  { %v1527_v44 = vadd.f32 %v3557_v43, %v5306_v3  ;;  %v1521_v45 = vpop.f32.mrb[91].mxu1 }
 0x449   :  { %v1522_v48 = vadd.f32 %v5306_v3, %v1521_v45 }
 0x44a   :  { %v1577_v52 = vmax.f32 %v1527_v44, 0.0 }
 0x44b   :  { %v1576_v50 = vmax.f32 %v1522_v48, 0.0 }
 0x44d   :  { %3635 = vmatprep.mubr.f32.mxu1 %v1576_v50 }
 0x44e   :  { %3636 = vmatmul.mubr.f32.gmra.mrb[122].mxu1 %v1577_v52 }
 0x44f   :  { %v3560_v56 = vpop.f32.mrb[92].mxu1 }
 0x450   :  { %v1537_v58 = vadd.f32 %v3560_v56, %v5306_v3  ;;  %v1531_v59 = vpop.f32.mrb[93].mxu1 }
 0x451   :  { %v1532_v62 = vadd.f32 %v5306_v3, %v1531_v59 }
 0x452   :  { %v1579_v0 = vmax.f32 %v1537_v58, 0.0 }
 0x453   :  { %v1578_v63 = vmax.f32 %v1532_v62, 0.0 }
 0x455   :  { %3638 = vmatprep.mubr.f32.mxu1 %v1578_v63 }
 0x456   :  { %3639 = vmatmul.mubr.f32.gmra.mrb[124].mxu1 %v1579_v0 }
 0x457   :  { %v3563_v4 = vpop.f32.mrb[94].mxu1 }
 0x458   :  { %v1547_v7 = vadd.f32 %v3563_v4, %v5306_v3  ;;  %v1541_v8 = vpop.f32.mrb[95].mxu1 }
 0x459   :  { %v1542_v9 = vadd.f32 %v5306_v3, %v1541_v8 }
 0x45a   :  { %v1581_v26 = vmax.f32 %v1547_v7, 0.0 }
 0x45b   :  { %v1580_v11 = vmax.f32 %v1542_v9, 0.0 }
 0x45d   :  { %3641 = vmatprep.mubr.f32.mxu1 %v1580_v11 }
 0x45e   :  { %3642 = vmatmul.mubr.f32.gmra.mrb[126].mxu1 %v1581_v26 }
 0x4b9   :  { %v3598_v17 = vpop.f32.mrb[96].mxu1 }
 0x4ba   :  { %v1677_v18 = vadd.f32 %v3598_v17, %v5346_v16  ;;  %v1671_v19 = vpop.f32.mrb[97].mxu1 }
 0x4bb   :  { %v1672_v3 = vadd.f32 %v5346_v16, %v1671_v19 }
 0x4bc   :  { %v1831_v23 = vmax.f32 %v1677_v18, 0.0 }
 0x4bd   :  { %v1830_v21 = vmax.f32 %v1672_v3, 0.0 }
 0x4bf   :  { %3676 = vmatprep.mubr.f32.mxu0 %v1830_v21 }
 0x4c0   :  { %3677 = vmatmul.mubr.f32.vlgmr.msra.gmra.mrb[64].mxu0 %v1831_v23 }
 0x4c1   :  { %v3601_v25 = vpop.f32.mrb[98].mxu1 }
 0x4c2   :  { %v1687_v27 = vadd.f32 %v3601_v25, %v5346_v16  ;;  %v1681_v30 = vpop.f32.mrb[99].mxu1 }
 0x4c3   :  { %v1682_v54 = vadd.f32 %v5346_v16, %v1681_v30 }
 0x4c4   :  { %v1833_v33 = vmax.f32 %v1687_v27, 0.0 }
 0x4c5   :  { %v1832_v31 = vmax.f32 %v1682_v54, 0.0 }
 0x4c7   :  { %3679 = vmatprep.mubr.f32.mxu0 %v1832_v31 }
 0x4c8   :  { %3680 = vmatmul.mubr.f32.gmra.mrb[66].mxu0 %v1833_v33 }
 0x4c9   :  { %v3604_v34 = vpop.f32.mrb[100].mxu1 }
 0x4ca   :  { %v1697_v36 = vadd.f32 %v3604_v34, %v5346_v16  ;;  %v1691_v38 = vpop.f32.mrb[101].mxu1 }
 0x4cb   :  { %v1692_v39 = vadd.f32 %v5346_v16, %v1691_v38 }
 0x4cc   :  { %v1835_v43 = vmax.f32 %v1697_v36, 0.0 }
 0x4cd   :  { %v1834_v40 = vmax.f32 %v1692_v39, 0.0  ;;  %v2435_v39 = vld [vmem:[#allocation13 + $0x10] sm:$0xff] }
 0x4cf   :  { %3682 = vmatprep.mubr.f32.mxu0 %v1834_v40  ;;  %v2436_v40 = vld [vmem:[#allocation13 + $0x18] sm:$0xff] }
 0x4d0   :  { %3683 = vmatmul.mubr.f32.gmra.mrb[68].mxu0 %v1835_v43 }
 0x4d1   :  { %v3607_v44 = vpop.f32.mrb[102].mxu1 }
 0x4d2   :  { %v1707_v45 = vadd.f32 %v3607_v44, %v5346_v16  ;;  %v1701_v48 = vpop.f32.mrb[103].mxu1 }
 0x4d3   :  { %v1702_v50 = vadd.f32 %v5346_v16, %v1701_v48  ;;  %v2437_v48 = vld [vmem:[#allocation13 + $0x20] sm:$0xff] }
 0x4d4   :  { %v1837_v56 = vmax.f32 %v1707_v45, 0.0  ;;  %v4160_v45 = vpack.c.bf16 %v2436_v40, %v2435_v39 }
 0x4d5   :  { %v1836_v52 = vmax.f32 %v1702_v50, 0.0  ;;  %v2438_v50 = vld [vmem:[#allocation13 + $0x28] sm:$0xff] }
 0x4d7   :  { %3685 = vmatprep.mubr.f32.mxu0 %v1836_v52 }
 0x4d8   :  { %3686 = vmatmul.mubr.f32.gmra.mrb[70].mxu0 %v1837_v56 }
 0x4d9   :  { %v3610_v58 = vpop.f32.mrb[104].mxu1 }
 0x4da   :  { %v1717_v59 = vadd.f32 %v3610_v58, %v5346_v16  ;;  %v1711_v62 = vpop.f32.mrb[105].mxu1 }
 0x4db   :  { %v1712_v63 = vadd.f32 %v5346_v16, %v1711_v62 }
 0x4dc   :  { %v1839_v4 = vmax.f32 %v1717_v59, 0.0  ;;  %v4164_v59 = vpack.c.bf16 %v2438_v50, %v2437_v48 }
 0x4dd   :  { %v1838_v0 = vmax.f32 %v1712_v63, 0.0  ;;  %v2439_v63 = vld [vmem:[#allocation13 + $0x30] sm:$0xff] }
 0x4df   :  { %3688 = vmatprep.mubr.f32.mxu0 %v1838_v0  ;;  %v2440_v0 = vld [vmem:[#allocation13 + $0x38] sm:$0xff] }
 0x4e0   :  { %3689 = vmatmul.mubr.f32.gmra.mrb[72].mxu0 %v1839_v4 }
 0x4e1   :  { %v3613_v7 = vpop.f32.mrb[106].mxu1 }
 0x4e2   :  { %v1727_v8 = vadd.f32 %v3613_v7, %v5346_v16  ;;  %v1721_v9 = vpop.f32.mrb[107].mxu1 }
 0x4e3   :  { %v1722_v11 = vadd.f32 %v5346_v16, %v1721_v9  ;;  %v2441_v9 = vld [vmem:[#allocation13 + $0x40] sm:$0xff] }
 0x4e4   :  { %v1841_v12 = vmax.f32 %v1727_v8, 0.0  ;;  %v4168_v8 = vpack.c.bf16 %v2440_v0, %v2439_v63 }
 0x4e5   :  { %v1840_v26 = vmax.f32 %v1722_v11, 0.0  ;;  %v2442_v11 = vld [vmem:[#allocation13 + $0x48] sm:$0xff] }
 0x4e7   :  { %3691 = vmatprep.mubr.f32.mxu0 %v1840_v26 }
 0x4e8   :  { %3692 = vmatmul.mubr.f32.gmra.mrb[74].mxu0 %v1841_v12 }
 0x4e9   :  { %v3616_v13 = vpop.f32.mrb[108].mxu1 }
 0x4ea   :  { %v1737_v17 = vadd.f32 %v3616_v13, %v5346_v16  ;;  %v1731_v18 = vpop.f32.mrb[109].mxu1  ;;  %v4172_v13 = vpack.c.bf16 %v2442_v11, %v2441_v9 }
 0x4eb   :  { %v1732_v19 = vadd.f32 %v5346_v16, %v1731_v18  ;;  %v2443_v18 = vld [vmem:[#allocation13 + $0x50] sm:$0xff] }
 0x4ec   :  { %v1843_v21 = vmax.f32 %v1737_v17, 0.0 }
 0x4ed   :  { %v1842_v3 = vmax.f32 %v1732_v19, 0.0  ;;  %v2444_v19 = vld [vmem:[#allocation13 + $0x58] sm:$0xff] }
 0x4ef   :  { %3694 = vmatprep.mubr.f32.mxu0 %v1842_v3 }
 0x4f0   :  { %3695 = vmatmul.mubr.f32.gmra.mrb[76].mxu0 %v1843_v21 }
 0x4f1   :  { %v3619_v23 = vpop.f32.mrb[110].mxu1 }
 0x4f2   :  { %v1747_v25 = vadd.f32 %v3619_v23, %v5346_v16  ;;  %v1741_v27 = vpop.f32.mrb[111].mxu1  ;;  %v4176_v23 = vpack.c.bf16 %v2444_v19, %v2443_v18 }
 0x4f3   :  { %v1742_v30 = vadd.f32 %v5346_v16, %v1741_v27  ;;  %v2446_v27 = vld [vmem:[#allocation13 + $0x68] sm:$0xff] }
 0x4f4   :  { %v1845_v31 = vmax.f32 %v1747_v25, 0.0  ;;  %v2445_v25 = vld [vmem:[#allocation13 + $0x60] sm:$0xff] }
 0x4f5   :  { %v1844_v54 = vmax.f32 %v1742_v30, 0.0 }
 0x4f7   :  { %3697 = vmatprep.mubr.f32.mxu0 %v1844_v54 }
 0x4f8   :  { %3698 = vmatmul.mubr.f32.gmra.mrb[78].mxu0 %v1845_v31 }
 0x4f9   :  { %v3622_v33 = vpop.f32.mrb[112].mxu1 }
 0x4fa   :  { %v1757_v34 = vadd.f32 %v3622_v33, %v5346_v16  ;;  %v1751_v36 = vpop.f32.mrb[113].mxu1  ;;  %v4180_v33 = vpack.c.bf16 %v2446_v27, %v2445_v25  ;;  %v4640_v25 = vld [vmem:[#allocation16 + $0x30] sm:$0xff]  ;;  %v4641_v27 = vld [vmem:[#allocation16 + $0x48] sm:$0xff] }
 0x4fb   :  { %v1752_v38 = vadd.f32 %v5346_v16, %v1751_v36  ;;  %v2447_v36 = vld [vmem:[#allocation13 + $0x70] sm:$0xff] }
 0x4fc   :  { %v1847_v44 = vmax.f32 %v1757_v34, 0.0 }
 0x4fd   :  { %v1846_v43 = vmax.f32 %v1752_v38, 0.0  ;;  %v2448_v38 = vld [vmem:[#allocation13 + $0x78] sm:$0xff] }
 0x4ff   :  { %3700 = vmatprep.mubr.f32.mxu1 %v1846_v43  ;;  %v4184_v43 = vpack.c.bf16 %v2448_v38, %v2447_v36 }
 0x500   :  { %3701 = vmatmul.mubr.f32.vlgmr.msra.gmra.mrb[128].mxu1 %v1847_v44 }
 0x501   :  { %v3625_v52 = vpop.f32.mrb[114].mxu1  ;;  %4159 = vmatpush3.bf16.msra.mxu1 %v5340_v15 }
 0x502   :  { %v1767_v56 = vadd.f32 %v3625_v52, %v5346_v16  ;;  %v1761_v58 = vpop.f32.mrb[115].mxu1  ;;  %4161 = vmatprep.subr.bf16.mxu1 %v4160_v45 }
 0x503   :  { %v1762_v62 = vadd.f32 %v5346_v16, %v1761_v58 }
 0x504   :  { %v1849_v7 = vmax.f32 %v1767_v56, 0.0 }
 0x505   :  { %v1848_v4 = vmax.f32 %v1762_v62, 0.0  ;;  %4163 = vmatpush3.bf16.msra.mxu1 %v4160_v45 }
 0x506   :  { %4165 = vmatprep.subr.bf16.mxu1 %v4164_v59 }
 0x507   :  { %3703 = vmatprep.mubr.f32.mxu1 %v1848_v4 }
 0x508   :  { %3704 = vmatmul.mubr.f32.gmra.mrb[130].mxu1 %v1849_v7 }
 0x509   :  { %v3628_v26 = vpop.f32.mrb[116].mxu1  ;;  %4167 = vmatpush3.bf16.msra.mxu1 %v4164_v59 }
 0x50a   :  { %v1777_v15 = vadd.f32 %v3628_v26, %v5346_v16  ;;  %v1771_v12 = vpop.f32.mrb[117].mxu1  ;;  %4169 = vmatprep.subr.bf16.mxu1 %v4168_v8 }
 0x50b   :  { %v1772_v17 = vadd.f32 %v5346_v16, %v1771_v12 }
 0x50c   :  { %v1851_v21 = vmax.f32 %v1777_v15, 0.0 }
 0x50d   :  { %v1850_v3 = vmax.f32 %v1772_v17, 0.0  ;;  %4171 = vmatpush3.bf16.msra.mxu1 %v4168_v8 }
 0x50e   :  { %4173 = vmatprep.subr.bf16.mxu1 %v4172_v13 }
 0x50f   :  { %3706 = vmatprep.mubr.f32.mxu1 %v1850_v3 }
 0x510   :  { %3707 = vmatmul.mubr.f32.gmra.mrb[132].mxu1 %v1851_v21  ;;  %v4638_v21 = vld [vmem:[#allocation16] sm:$0xff] }
 0x511   :  { %v3631_v30 = vpop.f32.mrb[118].mxu1  ;;  %4175 = vmatpush3.bf16.msra.mxu1 %v4172_v13 }
 0x512   :  { %v1787_v54 = vadd.f32 %v3631_v30, %v5346_v16  ;;  %v1781_v31 = vpop.f32.mrb[119].mxu1  ;;  %4177 = vmatprep.subr.bf16.mxu1 %v4176_v23  ;;  %v4642_v30 = vld [vmem:[#allocation16 + $0x60] sm:$0xff] }
 0x513   :  { %v1782_v34 = vadd.f32 %v5346_v16, %v1781_v31  ;;  %v4644_v31 = vld [vmem:[#allocation16 + $0x90] sm:$0xff] }
 0x514   :  { %v1853_v40 = vmax.f32 %v1787_v54, 0.0  ;;  %v4643_v54 = vld [vmem:[#allocation16 + $0x78] sm:$0xff] }
 0x515   :  { %v1852_v39 = vmax.f32 %v1782_v34, 0.0  ;;  %4179 = vmatpush3.bf16.msra.mxu1 %v4176_v23  ;;  %v4639_v23 = vld [vmem:[#allocation16 + $0x18] sm:$0xff]  ;;  %v5411_v34 = vld [vmem:[%s5862_s10] ss:$0 sm:$0xff] }
 0x516   :  { %4181 = vmatprep.subr.bf16.mxu1 %v4180_v33 }
 0x517   :  { %3709 = vmatprep.mubr.f32.mxu1 %v1852_v39 }
 0x518   :  { %3710 = vmatmul.mubr.f32.gmra.mrb[134].mxu1 %v1853_v40 }
 0x519   :  { %v3634_v44 = vpop.f32.mrb[120].mxu1  ;;  %4183 = vmatpush3.bf16.msra.mxu1 %v4180_v33  ;;  %v4645_v33 = vld [vmem:[#allocation16 + $0xa8] sm:$0xff] }
 0x51a   :  { %v1797_v45 = vadd.f32 %v3634_v44, %v5346_v16  ;;  %v1791_v48 = vpop.f32.mrb[121].mxu1  ;;  %4185 = vmatprep.subr.bf16.mxu1 %v4184_v43 }
 0x51b   :  { %v1792_v50 = vadd.f32 %v5346_v16, %v1791_v48 }
 0x51c   :  { %v1855_v56 = vmax.f32 %v1797_v45, 0.0 }
 0x51d   :  { %v1854_v52 = vmax.f32 %v1792_v50, 0.0  ;;  %4187 = vmatpush3.bf16.msra.mxu1 %v4184_v43 }
 0x51f   :  { %3712 = vmatprep.mubr.f32.mxu1 %v1854_v52 }
 0x520   :  { %3713 = vmatmul.mubr.f32.gmra.mrb[136].mxu1 %v1855_v56 }
 0x521   :  { %v3637_v58 = vpop.f32.mrb[122].mxu1 }
 0x522   :  { %v1807_v59 = vadd.f32 %v3637_v58, %v5346_v16  ;;  %v1801_v62 = vpop.f32.mrb[123].mxu1 }
 0x523   :  { %v1802_v63 = vadd.f32 %v5346_v16, %v1801_v62 }
 0x524   :  { %v1857_v4 = vmax.f32 %v1807_v59, 0.0 }
 0x525   :  { %v1856_v0 = vmax.f32 %v1802_v63, 0.0 }
 0x527   :  { %3715 = vmatprep.mubr.f32.mxu1 %v1856_v0 }
 0x528   :  { %3716 = vmatmul.mubr.f32.gmra.mrb[138].mxu1 %v1857_v4 }
 0x529   :  { %v3640_v7 = vpop.f32.mrb[124].mxu1 }
 0x52a   :  { %v1817_v8 = vadd.f32 %v3640_v7, %v5346_v16  ;;  %v1811_v9 = vpop.f32.mrb[125].mxu1 }
 0x52b   :  { %v1812_v11 = vadd.f32 %v5346_v16, %v1811_v9 }
 0x52c   :  { %v1859_v15 = vmax.f32 %v1817_v8, 0.0 }
 0x52d   :  { %v1858_v26 = vmax.f32 %v1812_v11, 0.0 }
 0x52f   :  { %3718 = vmatprep.mubr.f32.mxu1 %v1858_v26 }
 0x530   :  { %3719 = vmatmul.mubr.f32.gmra.mrb[140].mxu1 %v1859_v15 }
 0x531   :  { %v3643_v12 = vpop.f32.mrb[126].mxu1 }
 0x532   :  { %v1827_v13 = vadd.f32 %v3643_v12, %v5346_v16  ;;  %v1821_v17 = vpop.f32.mrb[127].mxu1 }
 0x533   :  { %v1822_v18 = vadd.f32 %v5346_v16, %v1821_v17 }
 0x534   :  { %v1861_v3 = vmax.f32 %v1827_v13, 0.0 }
 0x535   :  { %v1860_v19 = vmax.f32 %v1822_v18, 0.0 }
 0x537   :  { %3721 = vmatprep.mubr.f32.mxu1 %v1860_v19 }
 0x538   :  { %3722 = vmatmul.mubr.f32.gmra.mrb[142].mxu1 %v1861_v3 }
 0x539   :  { %3756 = vmatprep.mubr.f32.mxu1 %v4638_v21 }
 0x53c   :  { %3757 = vmatmul.mubr.f32.vlgmr.msra.gmra.mrb[144].mxu1 %v4639_v23 }
 0x53d   :  { %3759 = vmatprep.mubr.f32.mxu1 %v4640_v25 }
 0x540   :  { %3760 = vmatmul.mubr.f32.gmra.mrb[146].mxu1 %v4641_v27 }
 0x541   :  { %3762 = vmatprep.mubr.f32.mxu1 %v4642_v30 }
 0x544   :  { %3763 = vmatmul.mubr.f32.gmra.mrb[148].mxu1 %v4643_v54 }
 0x545   :  { %3765 = vmatprep.mubr.f32.mxu1 %v4644_v31 }
 0x548   :  { %3766 = vmatmul.mubr.f32.gmra.mrb[150].mxu1 %v4645_v33 }
 0x549   :  { %3768 = vmatprep.mubr.f32.mxu1 %v5184_v20  ;;  %v2713_v20 = vld [vmem:[#allocation14] sm:$0xff] }
 0x54c   :  { %3769 = vmatmul.mubr.f32.gmra.mrb[152].mxu1 %v5189_v24  ;;  %v2714_v24 = vld [vmem:[#allocation14 + $0x8] sm:$0xff] }
 0x54d   :  { %3771 = vmatprep.mubr.f32.mxu1 %v5194_v29  ;;  %v4188_v29 = vpack.c.bf16 %v2714_v24, %v2713_v20 }
 0x54f   :  { %4189 = vmatprep.subr.bf16.mxu0 %v4188_v29 }
 0x550   :  { %3772 = vmatmul.mubr.f32.gmra.mrb[154].mxu1 %v5199_v32  ;;  %4191 = vmatpush3.bf16.msra.mxu0 %v4188_v29  ;;  %v2715_v32 = vld [vmem:[#allocation14 + $0x10] sm:$0xff] }
 0x551   :  { %3774 = vmatprep.mubr.f32.mxu1 %v5204_v35  ;;  %v2716_v35 = vld [vmem:[#allocation14 + $0x18] sm:$0xff] }
 0x554   :  { %3775 = vmatmul.mubr.f32.gmra.mrb[156].mxu1 %v5209_v5  ;;  %v4192_v5 = vpack.c.bf16 %v2716_v35, %v2715_v32 }
 0x555   :  { %3777 = vmatprep.mubr.f32.mxu1 %v5214_v42  ;;  %v2717_v42 = vld [vmem:[#allocation14 + $0x20] sm:$0xff] }
 0x556   :  { %4193 = vmatprep.subr.bf16.mxu0 %v4192_v5 }
 0x557   :  { %4195 = vmatpush3.bf16.msra.mxu0 %v4192_v5 }
 0x558   :  { %3778 = vmatmul.mubr.f32.gmra.mrb[158].mxu1 %v5219_v46  ;;  %v2718_v46 = vld [vmem:[#allocation14 + $0x28] sm:$0xff] }
 0x559   :  { %3780 = vmatprep.mubr.f32.mxu1 %v5224_v51  ;;  %v4196_v51 = vpack.c.bf16 %v2718_v46, %v2717_v42 }
 0x55b   :  { %4197 = vmatprep.subr.bf16.mxu0 %v4196_v51 }
 0x55c   :  { %3781 = vmatmul.mubr.f32.gmra.mrb[160].mxu1 %v5229_v57  ;;  %4199 = vmatpush3.bf16.msra.mxu0 %v4196_v51  ;;  %v2719_v57 = vld [vmem:[#allocation14 + $0x30] sm:$0xff] }
 0x55d   :  { %3783 = vmatprep.mubr.f32.mxu1 %v5234_v61  ;;  %v2720_v61 = vld [vmem:[#allocation14 + $0x38] sm:$0xff] }
 0x560   :  { %3784 = vmatmul.mubr.f32.gmra.mrb[162].mxu1 %v5239_v1  ;;  %v4200_v1 = vpack.c.bf16 %v2720_v61, %v2719_v57 }
 0x561   :  { %3786 = vmatprep.mubr.f32.mxu1 %v5244_v6  ;;  %v2721_v6 = vld [vmem:[#allocation14 + $0x40] sm:$0xff] }
 0x562   :  { %4201 = vmatprep.subr.bf16.mxu0 %v4200_v1 }
 0x563   :  { %4203 = vmatpush3.bf16.msra.mxu0 %v4200_v1 }
 0x564   :  { %3787 = vmatmul.mubr.f32.gmra.mrb[164].mxu1 %v5249_v10  ;;  %v2722_v10 = vld [vmem:[#allocation14 + $0x48] sm:$0xff] }
 0x565   :  { %3789 = vmatprep.mubr.f32.mxu1 %v5254_v14  ;;  %v4204_v14 = vpack.c.bf16 %v2722_v10, %v2721_v6 }
 0x567   :  { %4205 = vmatprep.subr.bf16.mxu0 %v4204_v14 }
 0x568   :  { %3790 = vmatmul.mubr.f32.gmra.mrb[166].mxu1 %v5259_v22  ;;  %4207 = vmatpush3.bf16.msra.mxu0 %v4204_v14  ;;  %v2723_v22 = vld [vmem:[#allocation14 + $0x50] sm:$0xff] }
 0x569   :  { %3792 = vmatprep.mubr.f32.mxu1 %v5264_v28  ;;  %v2724_v28 = vld [vmem:[#allocation14 + $0x58] sm:$0xff] }
 0x56c   :  { %3793 = vmatmul.mubr.f32.gmra.mrb[168].mxu1 %v5269_v55  ;;  %v4208_v55 = vpack.c.bf16 %v2724_v28, %v2723_v22 }
 0x56d   :  { %3795 = vmatprep.mubr.f32.mxu1 %v5274_v37  ;;  %v2725_v37 = vld [vmem:[#allocation14 + $0x60] sm:$0xff] }
 0x56e   :  { %4209 = vmatprep.subr.bf16.mxu0 %v4208_v55 }
 0x56f   :  { %4211 = vmatpush3.bf16.msra.mxu0 %v4208_v55 }
 0x570   :  { %3796 = vmatmul.mubr.f32.gmra.mrb[170].mxu1 %v5279_v41  ;;  %v2726_v41 = vld [vmem:[#allocation14 + $0x68] sm:$0xff] }
 0x571   :  { %3798 = vmatprep.mubr.f32.mxu1 %v5284_v47  ;;  %v4212_v47 = vpack.c.bf16 %v2726_v41, %v2725_v37 }
 0x573   :  { %4213 = vmatprep.subr.bf16.mxu0 %v4212_v47 }
 0x574   :  { %3799 = vmatmul.mubr.f32.gmra.mrb[172].mxu1 %v5289_v53  ;;  %v5406_v53 = vand.u32 127, %v418_v49  ;;  %4215 = vmatpush3.bf16.msra.mxu0 %v4212_v47 }
 0x575   :  { %3801 = vmatprep.mubr.f32.mxu1 %v5294_v60  ;;  %v2727_v60 = vld [vmem:[#allocation14 + $0x70] sm:$0xff] }
 0x576   :  { %vm2112_vm0 = vcmp.lt.s32.totalorder %v5406_v53, 16 }
 0x578   :  { %3802 = vmatmul.mubr.f32.gmra.mrb[174].mxu1 %v5299_v2  ;;  %v2728_v2 = vld [vmem:[#allocation14 + $0x78] sm:$0xff] }
 0x579   :  { %v4216_v16 = vpack.c.bf16 %v2728_v2, %v2727_v60 }
 0x57b   :  { %4217 = vmatprep.subr.bf16.mxu0 %v4216_v16 }
 0x57c   :  { %4219 = vmatpush3.bf16.msra.mxu0 %v4216_v16 }
 0x593   :  { %v3678_v36 = vpop.f32.mrb[64].mxu0 }
 0x594   :  { %v1957_v38 = vadd.f32 %v3678_v36, %v5411_v34  ;;  %v1951_v39 = vpop.f32.mrb[65].mxu0 }
 0x595   :  { %v1952_v49 = vadd.f32 %v5411_v34, %v1951_v39 }
 0x596   :  { %v5418_v40 = vsel %vm2112_vm0, %v1957_v38, -1e+30 }
 0x597   :  { %2147 = vmax.xlane.f32.xlu0 %v5418_v40  ;;  %v5423_v43 = vsel %vm2112_vm0, %v1952_v49, -1e+30 }
 0x59b   :  { %v3681_v44 = vpop.f32.mrb[66].mxu0  ;;  %2145 = vmax.xlane.f32.xlu0 %v5423_v43 }
 0x59c   :  { %v1967_v45 = vadd.f32 %v3681_v44, %v5411_v34  ;;  %v1961_v48 = vpop.f32.mrb[67].mxu0 }
 0x59d   :  { %v1962_v50 = vadd.f32 %v5411_v34, %v1961_v48 }
 0x59e   :  { %v5430_v52 = vsel %vm2112_vm0, %v1967_v45, -1e+30 }
 0x59f   :  { %2151 = vmax.xlane.f32.xlu1 %v5430_v52  ;;  %v5435_v56 = vsel %vm2112_vm0, %v1962_v50, -1e+30 }
 0x5a3   :  { %v3684_v58 = vpop.f32.mrb[68].mxu0  ;;  %2149 = vmax.xlane.f32.xlu1 %v5435_v56 }
 0x5a4   :  { %v1977_v59 = vadd.f32 %v3684_v58, %v5411_v34  ;;  %v1971_v62 = vpop.f32.mrb[69].mxu0 }
 0x5a5   :  { %v1972_v63 = vadd.f32 %v5411_v34, %v1971_v62 }
 0x5a6   :  { %v5442_v0 = vsel %vm2112_vm0, %v1977_v59, -1e+30 }
 0x5a7   :  { %2155 = vmax.xlane.f32.xlu1 %v5442_v0  ;;  %v5447_v4 = vsel %vm2112_vm0, %v1972_v63, -1e+30 }
 0x5a8   :  { %2153 = vmax.xlane.f32.xlu0 %v5447_v4 }
 0x5ab   :  { %v3687_v7 = vpop.f32.mrb[70].mxu0 }
 0x5ac   :  { %v1987_v8 = vadd.f32 %v3687_v7, %v5411_v34  ;;  %v1981_v9 = vpop.f32.mrb[71].mxu0 }
 0x5ad   :  { %v1982_v11 = vadd.f32 %v5411_v34, %v1981_v9 }
 0x5ae   :  { %v5454_v26 = vsel %vm2112_vm0, %v1987_v8, -1e+30 }
 0x5af   :  { %2159 = vmax.xlane.f32.xlu1 %v5454_v26  ;;  %v5459_v15 = vsel %vm2112_vm0, %v1982_v11, -1e+30 }
 0x5b0   :  { %2157 = vmax.xlane.f32.xlu0 %v5459_v15 }
 0x5b3   :  { %v3690_v12 = vpop.f32.mrb[72].mxu0 }
 0x5b4   :  { %v1997_v13 = vadd.f32 %v3690_v12, %v5411_v34  ;;  %v1991_v17 = vpop.f32.mrb[73].mxu0 }
 0x5b5   :  { %v1992_v18 = vadd.f32 %v5411_v34, %v1991_v17 }
 0x5b6   :  { %v5466_v19 = vsel %vm2112_vm0, %v1997_v13, -1e+30 }
 0x5b7   :  { %2163 = vmax.xlane.f32.xlu1 %v5466_v19  ;;  %v5471_v3 = vsel %vm2112_vm0, %v1992_v18, -1e+30 }
 0x5b8   :  { %2161 = vmax.xlane.f32.xlu0 %v5471_v3 }
 0x5bb   :  { %v3693_v21 = vpop.f32.mrb[74].mxu0 }
 0x5bc   :  { %v2007_v23 = vadd.f32 %v3693_v21, %v5411_v34  ;;  %v2001_v25 = vpop.f32.mrb[75].mxu0 }
 0x5bd   :  { %v2002_v27 = vadd.f32 %v5411_v34, %v2001_v25 }
 0x5be   :  { %v5478_v30 = vsel %vm2112_vm0, %v2007_v23, -1e+30 }
 0x5bf   :  { %2167 = vmax.xlane.f32.xlu1 %v5478_v30  ;;  %v5483_v54 = vsel %vm2112_vm0, %v2002_v27, -1e+30 }
 0x5c0   :  { %2165 = vmax.xlane.f32.xlu0 %v5483_v54 }
 0x5c3   :  { %v3696_v31 = vpop.f32.mrb[76].mxu0 }
 0x5c4   :  { %v2017_v33 = vadd.f32 %v3696_v31, %v5411_v34  ;;  %v2011_v20 = vpop.f32.mrb[77].mxu0 }
 0x5c5   :  { %v2012_v24 = vadd.f32 %v5411_v34, %v2011_v20 }
 0x5c6   :  { %v5490_v29 = vsel %vm2112_vm0, %v2017_v33, -1e+30 }
 0x5c7   :  { %2171 = vmax.xlane.f32.xlu1 %v5490_v29  ;;  %v5495_v32 = vsel %vm2112_vm0, %v2012_v24, -1e+30 }
 0x5c8   :  { %2169 = vmax.xlane.f32.xlu0 %v5495_v32 }
 0x5cb   :  { %v3699_v35 = vpop.f32.mrb[78].mxu0 }
 0x5cc   :  { %v2027_v5 = vadd.f32 %v3699_v35, %v5411_v34  ;;  %v2021_v42 = vpop.f32.mrb[79].mxu0 }
 0x5cd   :  { %v2022_v46 = vadd.f32 %v5411_v34, %v2021_v42 }
 0x5ce   :  { %v5502_v51 = vsel %vm2112_vm0, %v2027_v5, -1e+30 }
 0x5cf   :  { %2175 = vmax.xlane.f32.xlu1 %v5502_v51  ;;  %v5507_v57 = vsel %vm2112_vm0, %v2022_v46, -1e+30 }
 0x5d0   :  { %2173 = vmax.xlane.f32.xlu0 %v5507_v57 }
 0x5d3   :  { %v3702_v61 = vpop.f32.mrb[128].mxu1 }
 0x5d4   :  { %v2037_v1 = vadd.f32 %v3702_v61, %v5411_v34  ;;  %v2031_v6 = vpop.f32.mrb[129].mxu1  ;;  %v5599_v61 = vld [vmem:[%s5864_s12] ss:$0 sm:$0xff] }
 0x5d5   :  { %v2032_v10 = vadd.f32 %v5411_v34, %v2031_v6 }
 0x5d6   :  { %v5514_v14 = vsel %vm2112_vm0, %v2037_v1, -1e+30 }
 0x5d7   :  { %2179 = vmax.xlane.f32.xlu1 %v5514_v14  ;;  %v5519_v22 = vsel %vm2112_vm0, %v2032_v10, -1e+30 }
 0x5d8   :  { %2177 = vmax.xlane.f32.xlu0 %v5519_v22 }
 0x5db   :  { %v3705_v28 = vpop.f32.mrb[130].mxu1 }
 0x5dc   :  { %v2047_v55 = vadd.f32 %v3705_v28, %v5411_v34  ;;  %v2041_v37 = vpop.f32.mrb[131].mxu1 }
 0x5dd   :  { %v2042_v41 = vadd.f32 %v5411_v34, %v2041_v37 }
 0x5de   :  { %v5526_v47 = vsel %vm2112_vm0, %v2047_v55, -1e+30 }
 0x5df   :  { %2183 = vmax.xlane.f32.xlu1 %v5526_v47  ;;  %v5531_v60 = vsel %vm2112_vm0, %v2042_v41, -1e+30 }
 0x5e0   :  { %2181 = vmax.xlane.f32.xlu0 %v5531_v60 }
 0x5e3   :  { %v3708_v2 = vpop.f32.mrb[132].mxu1 }
 0x5e4   :  { %v2057_v16 = vadd.f32 %v3708_v2, %v5411_v34  ;;  %v2051_v36 = vpop.f32.mrb[133].mxu1 }
 0x5e5   :  { %v2052_v38 = vadd.f32 %v5411_v34, %v2051_v36 }
 0x5e6   :  { %v5538_v39 = vsel %vm2112_vm0, %v2057_v16, -1e+30 }
 0x5e7   :  { %2187 = vmax.xlane.f32.xlu1 %v5538_v39  ;;  %v5543_v49 = vsel %vm2112_vm0, %v2052_v38, -1e+30 }
 0x5e8   :  { %2185 = vmax.xlane.f32.xlu0 %v5543_v49 }
 0x5eb   :  { %v3711_v44 = vpop.f32.mrb[134].mxu1 }
 0x5ec   :  { %v2067_v45 = vadd.f32 %v3711_v44, %v5411_v34  ;;  %v2061_v48 = vpop.f32.mrb[135].mxu1 }
 0x5ed   :  { %v2062_v50 = vadd.f32 %v5411_v34, %v2061_v48 }
 0x5ee   :  { %v5550_v58 = vsel %vm2112_vm0, %v2067_v45, -1e+30 }
 0x5ef   :  { %2191 = vmax.xlane.f32.xlu1 %v5550_v58  ;;  %v5555_v59 = vsel %vm2112_vm0, %v2062_v50, -1e+30 }
 0x5f0   :  { %2189 = vmax.xlane.f32.xlu0 %v5555_v59 }
 0x5f3   :  { %v3714_v62 = vpop.f32.mrb[136].mxu1 }
 0x5f4   :  { %v2077_v63 = vadd.f32 %v3714_v62, %v5411_v34  ;;  %v2071_v7 = vpop.f32.mrb[137].mxu1 }
 0x5f5   :  { %v2072_v8 = vadd.f32 %v5411_v34, %v2071_v7 }
 0x5f6   :  { %v5562_v9 = vsel %vm2112_vm0, %v2077_v63, -1e+30 }
 0x5f7   :  { %2195 = vmax.xlane.f32.xlu1 %v5562_v9  ;;  %v5567_v11 = vsel %vm2112_vm0, %v2072_v8, -1e+30 }
 0x5f8   :  { %2193 = vmax.xlane.f32.xlu0 %v5567_v11 }
 0x5fb   :  { %v3717_v12 = vpop.f32.mrb[138].mxu1 }
 0x5fc   :  { %v2087_v13 = vadd.f32 %v3717_v12, %v5411_v34  ;;  %v2081_v17 = vpop.f32.mrb[139].mxu1 }
 0x5fd   :  { %v2082_v18 = vadd.f32 %v5411_v34, %v2081_v17 }
 0x5fe   :  { %v5574_v21 = vsel %vm2112_vm0, %v2087_v13, -1e+30 }
 0x5ff   :  { %2199 = vmax.xlane.f32.xlu1 %v5574_v21  ;;  %v5579_v23 = vsel %vm2112_vm0, %v2082_v18, -1e+30 }
 0x600   :  { %2197 = vmax.xlane.f32.xlu0 %v5579_v23 }
 0x603   :  { %v3720_v25 = vpop.f32.mrb[140].mxu1 }
 0x604   :  { %v2097_v27 = vadd.f32 %v3720_v25, %v5411_v34  ;;  %v2091_v31 = vpop.f32.mrb[141].mxu1 }
 0x605   :  { %v2092_v33 = vadd.f32 %v5411_v34, %v2091_v31 }
 0x606   :  { %v5586_v20 = vsel %vm2112_vm0, %v2097_v27, -1e+30 }
 0x607   :  { %2203 = vmax.xlane.f32.xlu1 %v5586_v20  ;;  %v5591_v24 = vsel %vm2112_vm0, %v2092_v33, -1e+30 }
 0x608   :  { %2201 = vmax.xlane.f32.xlu0 %v5591_v24 }
 0x60b   :  { %v3723_v35 = vpop.f32.mrb[142].mxu1 }
 0x60c   :  { %v2107_v5 = vadd.f32 %v3723_v35, %v5411_v34  ;;  %v2101_v42 = vpop.f32.mrb[143].mxu1 }
 0x60d   :  { %v2102_v46 = vadd.f32 %v5411_v34, %v2101_v42 }
 0x60e   :  { %v5603_v1 = vsel %vm2112_vm0, %v2107_v5, -1e+30 }
 0x60f   :  { %v3758_v6 = vpop.f32.mrb[144].mxu1  ;;  %2207 = vmax.xlane.f32.xlu1 %v5603_v1  ;;  %v5608_v10 = vsel %vm2112_vm0, %v2102_v46, -1e+30 }
 0x610   :  { %v2528_v28 = vadd.f32 %v3758_v6, %v5599_v61  ;;  %v2522_v55 = vpop.f32.mrb[145].mxu1  ;;  %2205 = vmax.xlane.f32.xlu0 %v5608_v10 }
 0x611   :  { %v2523_v34 = vadd.f32 %v5599_v61, %v2522_v55 }
 0x612   :  { %v2682_v2 = vmax.f32 %v2528_v28, 0.0 }
 0x613   :  { %v2681_v37 = vmax.f32 %v2523_v34, 0.0  ;;  %v3761_v41 = vpop.f32.mrb[146].mxu1 }
 0x614   :  { %v2538_v16 = vadd.f32 %v3761_v41, %v5599_v61  ;;  %v2532_v36 = vpop.f32.mrb[147].mxu1 }
 0x615   :  { %v2533_v38 = vadd.f32 %v5599_v61, %v2532_v36  ;;  %3836 = vmatprep.mubr.f32.mxu0 %v2681_v37 }
 0x616   :  { %3837 = vmatmul.mubr.f32.vlgmr.msra.gmra.mrb[80].mxu0 %v2682_v2  ;;  %v2684_v45 = vmax.f32 %v2538_v16, 0.0 }
 0x617   :  { %v2683_v53 = vmax.f32 %v2533_v38, 0.0  ;;  %v3764_v44 = vpop.f32.mrb[148].mxu1 }
 0x618   :  { %v2548_v48 = vadd.f32 %v3764_v44, %v5599_v61  ;;  %v2542_v50 = vpop.f32.mrb[149].mxu1 }
 0x619   :  { %v2543_v62 = vadd.f32 %v5599_v61, %v2542_v50  ;;  %3839 = vmatprep.mubr.f32.mxu0 %v2683_v53 }
 0x61a   :  { %3840 = vmatmul.mubr.f32.gmra.mrb[82].mxu0 %v2684_v45  ;;  %v2686_v8 = vmax.f32 %v2548_v48, 0.0 }
 0x61b   :  { %v2685_v63 = vmax.f32 %v2543_v62, 0.0  ;;  %v3767_v7 = vpop.f32.mrb[150].mxu1 }
 0x61c   :  { %v2558_v12 = vadd.f32 %v3767_v7, %v5599_v61  ;;  %v2552_v13 = vpop.f32.mrb[151].mxu1 }
 0x61d   :  { %v2553_v17 = vadd.f32 %v5599_v61, %v2552_v13  ;;  %3842 = vmatprep.mubr.f32.mxu0 %v2685_v63 }
 0x61e   :  { %3843 = vmatmul.mubr.f32.gmra.mrb[84].mxu0 %v2686_v8  ;;  %v2688_v27 = vmax.f32 %v2558_v12, 0.0 }
 0x61f   :  { %v2687_v18 = vmax.f32 %v2553_v17, 0.0  ;;  %v3770_v25 = vpop.f32.mrb[152].mxu1 }
 0x620   :  { %v2568_v31 = vadd.f32 %v3770_v25, %v5599_v61  ;;  %v2562_v33 = vpop.f32.mrb[153].mxu1 }
 0x621   :  { %v2563_v35 = vadd.f32 %v5599_v61, %v2562_v33  ;;  %3845 = vmatprep.mubr.f32.mxu0 %v2687_v18 }
 0x622   :  { %3846 = vmatmul.mubr.f32.gmra.mrb[86].mxu0 %v2688_v27  ;;  %v2690_v46 = vmax.f32 %v2568_v31, 0.0 }
 0x623   :  { %v2689_v5 = vmax.f32 %v2563_v35, 0.0  ;;  %v3773_v42 = vpop.f32.mrb[154].mxu1 }
 0x624   :  { %v2578_v6 = vadd.f32 %v3773_v42, %v5599_v61  ;;  %v2572_v28 = vpop.f32.mrb[155].mxu1  ;;  %v2148_v55 = vpop.xlane.xlu0 %2147 }
 0x625   :  { %v2573_v34 = vadd.f32 %v5599_v61, %v2572_v28  ;;  %v2210_v37 = vsub.f32 %v5418_v40, %v2148_v55  ;;  %3848 = vmatprep.mubr.f32.mxu0 %v2689_v5 }
 0x626   :  { %3849 = vmatmul.mubr.f32.gmra.mrb[88].mxu0 %v2690_v46  ;;  %v2692_v36 = vmax.f32 %v2578_v6, 0.0 }
 0x627   :  { %v2691_v41 = vmax.f32 %v2573_v34, 0.0  ;;  %v2243_v2 = vmul.f32 1.442695, %v2210_v37  ;;  %v3776_v16 = vpop.f32.mrb[156].mxu1 }
 0x628   :  { %v2588_v38 = vadd.f32 %v3776_v16, %v5599_v61  ;;  %v2582_v53 = vpop.f32.mrb[157].mxu1  ;;  %v2146_v44 = vpop.xlane.xlu0 %2145 }
 0x629   :  { %4382 = vpow2.f32 %v2243_v2  ;;  %v2583_v45 = vadd.f32 %v5599_v61, %v2582_v53  ;;  %v2209_v48 = vsub.f32 %v5423_v43, %v2146_v44  ;;  %3851 = vmatprep.mubr.f32.mxu0 %v2691_v41 }
 0x62a   :  { %3852 = vmatmul.mubr.f32.gmra.mrb[90].mxu0 %v2692_v36  ;;  %v2694_v63 = vmax.f32 %v2588_v38, 0.0 }
 0x62b   :  { %v2693_v50 = vmax.f32 %v2583_v45, 0.0  ;;  %v2241_v62 = vmul.f32 1.442695, %v2209_v48  ;;  %v3779_v40 = vpop.f32.mrb[158].mxu1 }
 0x62c   :  { %v2598_v7 = vadd.f32 %v3779_v40, %v5599_v61  ;;  %v2592_v8 = vpop.f32.mrb[159].mxu1  ;;  %v2152_v12 = vpop.xlane.xlu1 %2151 }
 0x62d   :  { %4384 = vpow2.f32 %v2241_v62  ;;  %v2593_v13 = vadd.f32 %v5599_v61, %v2592_v8  ;;  %v2212_v17 = vsub.f32 %v5430_v52, %v2152_v12  ;;  %3854 = vmatprep.mubr.f32.mxu0 %v2693_v50 }
 0x62e   :  { %3855 = vmatmul.mubr.f32.gmra.mrb[92].mxu0 %v2694_v63  ;;  %v2696_v27 = vmax.f32 %v2598_v7, 0.0 }
 0x62f   :  { %v2695_v18 = vmax.f32 %v2593_v13, 0.0  ;;  %v2247_v25 = vmul.f32 1.442695, %v2212_v17  ;;  %v3782_v43 = vpop.f32.mrb[160].mxu1 }
 0x630   :  { %v2608_v31 = vadd.f32 %v3782_v43, %v5599_v61  ;;  %v2602_v33 = vpop.f32.mrb[161].mxu1  ;;  %v2150_v35 = vpop.xlane.xlu1 %2149 }
 0x631   :  { %4386 = vpow2.f32 %v2247_v25  ;;  %v2603_v5 = vadd.f32 %v5599_v61, %v2602_v33  ;;  %v2211_v42 = vsub.f32 %v5435_v56, %v2150_v35  ;;  %3857 = vmatprep.mubr.f32.mxu0 %v2695_v18 }
 0x632   :  { %3858 = vmatmul.mubr.f32.gmra.mrb[94].mxu0 %v2696_v27  ;;  %v2698_v55 = vmax.f32 %v2608_v31, 0.0 }
 0x633   :  { %v5633_v46 = vpop.eup %4382  ;;  %v2697_v52 = vmax.f32 %v2603_v5, 0.0  ;;  %v2245_v6 = vmul.f32 1.442695, %v2211_v42  ;;  %v3785_v28 = vpop.f32.mrb[162].mxu1 }
 0x634   :  { %v2618_v34 = vadd.f32 %v3785_v28, %v5599_v61  ;;  %v2612_v37 = vpop.f32.mrb[163].mxu1  ;;  %2307 = vadd.xlane.f32.xlu1 %v5633_v46  ;;  %v2156_v41 = vpop.xlane.xlu1 %2155 }
 0x635   :  { %4388 = vpow2.f32 %v2245_v6  ;;  %v2613_v2 = vadd.f32 %v5599_v61, %v2612_v37  ;;  %v2214_v16 = vsub.f32 %v5442_v0, %v2156_v41  ;;  %3860 = vmatprep.mubr.f32.mxu0 %v2697_v52  ;;  %v2154_v56 = vpop.xlane.xlu0 %2153 }
 0x636   :  { %v2213_v36 = vsub.f32 %v5447_v4, %v2154_v56  ;;  %3861 = vmatmul.mubr.f32.gmra.mrb[96].mxu0 %v2698_v55  ;;  %v2700_v48 = vmax.f32 %v2618_v34, 0.0 }
 0x637   :  { %v5640_v38 = vpop.eup %4384  ;;  %v2699_v53 = vmax.f32 %v2613_v2, 0.0  ;;  %v2251_v44 = vmul.f32 1.442695, %v2214_v16  ;;  %v3788_v45 = vpop.f32.mrb[164].mxu1 }
 0x638   :  { %v2249_v50 = vmul.f32 1.442695, %v2213_v36  ;;  %v2628_v62 = vadd.f32 %v3788_v45, %v5599_v61  ;;  %v2622_v40 = vpop.f32.mrb[165].mxu1  ;;  %2305 = vadd.xlane.f32.xlu0 %v5640_v38 }
 0x639   :  { %4390 = vpow2.f32 %v2251_v44  ;;  %v2623_v0 = vadd.f32 %v5599_v61, %v2622_v40  ;;  %3863 = vmatprep.mubr.f32.mxu0 %v2699_v53 }
 0x63a   :  { %4392 = vpow2.f32 %v2249_v50  ;;  %3864 = vmatmul.mubr.f32.gmra.mrb[98].mxu0 %v2700_v48  ;;  %v2702_v8 = vmax.f32 %v2628_v62, 0.0 }
 0x63b   :  { %v5645_v4 = vpop.eup %4386  ;;  %v2701_v63 = vmax.f32 %v2623_v0, 0.0  ;;  %v3791_v7 = vpop.f32.mrb[166].mxu1 }
 0x63c   :  { %v2638_v12 = vadd.f32 %v3791_v7, %v5599_v61  ;;  %v2632_v13 = vpop.f32.mrb[167].mxu1  ;;  %2311 = vadd.xlane.f32.xlu1 %v5645_v4  ;;  %v2160_v17 = vpop.xlane.xlu1 %2159 }
 0x63d   :  { %v2633_v18 = vadd.f32 %v5599_v61, %v2632_v13  ;;  %v2216_v25 = vsub.f32 %v5454_v26, %v2160_v17  ;;  %3866 = vmatprep.mubr.f32.mxu0 %v2701_v63  ;;  %v2158_v43 = vpop.xlane.xlu0 %2157 }
 0x63e   :  { %v2215_v27 = vsub.f32 %v5459_v15, %v2158_v43  ;;  %3867 = vmatmul.mubr.f32.gmra.mrb[100].mxu0 %v2702_v8  ;;  %v2704_v42 = vmax.f32 %v2638_v12, 0.0 }
 0x63f   :  { %v5652_v31 = vpop.eup %4388  ;;  %v2703_v33 = vmax.f32 %v2633_v18, 0.0  ;;  %v2255_v35 = vmul.f32 1.442695, %v2216_v25  ;;  %v3794_v5 = vpop.f32.mrb[168].mxu1 }
 0x640   :  { %v2253_v52 = vmul.f32 1.442695, %v2215_v27  ;;  %v2648_v6 = vadd.f32 %v3794_v5, %v5599_v61  ;;  %v2642_v28 = vpop.f32.mrb[169].mxu1  ;;  %2309 = vadd.xlane.f32.xlu0 %v5652_v31 }
 0x641   :  { %4394 = vpow2.f32 %v2255_v35  ;;  %v2643_v26 = vadd.f32 %v5599_v61, %v2642_v28  ;;  %3869 = vmatprep.mubr.f32.mxu0 %v2703_v33 }
 0x642   :  { %4396 = vpow2.f32 %v2253_v52  ;;  %3870 = vmatmul.mubr.f32.gmra.mrb[102].mxu0 %v2704_v42  ;;  %v2706_v41 = vmax.f32 %v2648_v6, 0.0 }
 0x643   :  { %v5657_v15 = vpop.eup %4390  ;;  %v2705_v55 = vmax.f32 %v2643_v26, 0.0  ;;  %v3797_v34 = vpop.f32.mrb[170].mxu1 }
 0x644   :  { %v5659_v37 = vpop.eup %4392  ;;  %v2658_v2 = vadd.f32 %v3797_v34, %v5599_v61  ;;  %v2652_v16 = vpop.f32.mrb[171].mxu1  ;;  %2315 = vadd.xlane.f32.xlu1 %v5657_v15 }
 0x645   :  { %v2164_v56 = vpop.xlane.xlu1 %2163  ;;  %v2653_v36 = vadd.f32 %v5599_v61, %v2652_v16  ;;  %3872 = vmatprep.mubr.f32.mxu0 %v2705_v55  ;;  %2313 = vadd.xlane.f32.xlu0 %v5659_v37  ;;  %v2162_v44 = vpop.xlane.xlu0 %2161 }
 0x646   :  { %v2218_v53 = vsub.f32 %v5466_v19, %v2164_v56  ;;  %v2217_v45 = vsub.f32 %v5471_v3, %v2162_v44  ;;  %3873 = vmatmul.mubr.f32.gmra.mrb[104].mxu0 %v2706_v41  ;;  %v2708_v40 = vmax.f32 %v2658_v2, 0.0 }
 0x647   :  { %v2707_v48 = vmax.f32 %v2653_v36, 0.0  ;;  %v3800_v62 = vpop.f32.mrb[172].mxu1 }
 0x648   :  { %v2259_v50 = vmul.f32 1.442695, %v2218_v53  ;;  %v2257_v0 = vmul.f32 1.442695, %v2217_v45  ;;  %v2668_v63 = vadd.f32 %v3800_v62, %v5599_v61  ;;  %v2662_v7 = vpop.f32.mrb[173].mxu1 }
 0x649   :  { %v2663_v8 = vadd.f32 %v5599_v61, %v2662_v7  ;;  %3875 = vmatprep.mubr.f32.mxu0 %v2707_v48 }
 0x64a   :  { %4398 = vpow2.f32 %v2259_v50  ;;  %3876 = vmatmul.mubr.f32.gmra.mrb[106].mxu0 %v2708_v40  ;;  %v2710_v17 = vmax.f32 %v2668_v63, 0.0 }
 0x64b   :  { %4400 = vpow2.f32 %v2257_v0  ;;  %v5669_v19 = vpop.eup %4394  ;;  %v2709_v12 = vmax.f32 %v2663_v8, 0.0  ;;  %v3803_v13 = vpop.f32.mrb[174].mxu1 }
 0x64c   :  { %v5671_v3 = vpop.eup %4396  ;;  %v2678_v18 = vadd.f32 %v3803_v13, %v5599_v61  ;;  %v2672_v25 = vpop.f32.mrb[175].mxu1  ;;  %2319 = vadd.xlane.f32.xlu1 %v5669_v19 }
 0x64d   :  { %v2168_v43 = vpop.xlane.xlu1 %2167  ;;  %v2673_v27 = vadd.f32 %v5599_v61, %v2672_v25  ;;  %3878 = vmatprep.mubr.f32.mxu0 %v2709_v12  ;;  %2317 = vadd.xlane.f32.xlu0 %v5671_v3  ;;  %v2166_v35 = vpop.xlane.xlu0 %2165 }
 0x64e   :  { %v2220_v33 = vsub.f32 %v5478_v30, %v2168_v43  ;;  %v2219_v5 = vsub.f32 %v5483_v54, %v2166_v35  ;;  %3879 = vmatmul.mubr.f32.gmra.mrb[108].mxu0 %v2710_v17  ;;  %v2712_v6 = vmax.f32 %v2678_v18, 0.0 }
 0x64f   :  { %v2711_v42 = vmax.f32 %v2673_v27, 0.0 }
 0x650   :  { %v2263_v52 = vmul.f32 1.442695, %v2220_v33  ;;  %v2261_v28 = vmul.f32 1.442695, %v2219_v5 }
 0x651   :  { %3881 = vmatprep.mubr.f32.mxu0 %v2711_v42 }
 0x652   :  { %4402 = vpow2.f32 %v2263_v52  ;;  %3882 = vmatmul.mubr.f32.gmra.mrb[110].mxu0 %v2712_v6 }
 0x653   :  { %4404 = vpow2.f32 %v2261_v28 }
 0x654   :  { %v5679_v26 = vpop.eup %4398  ;;  %v2172_v30 = vpop.xlane.xlu1 %2171 }
 0x655   :  { %v5681_v61 = vpop.eup %4400  ;;  %2323 = vadd.xlane.f32.xlu1 %v5679_v26  ;;  %v2222_v55 = vsub.f32 %v5490_v29, %v2172_v30  ;;  %v2170_v54 = vpop.xlane.xlu0 %2169 }
 0x656   :  { %2321 = vadd.xlane.f32.xlu0 %v5681_v61  ;;  %v2221_v34 = vsub.f32 %v5495_v32, %v2170_v54 }
 0x657   :  { %v2267_v41 = vmul.f32 1.442695, %v2222_v55 }
 0x658   :  { %v2265_v2 = vmul.f32 1.442695, %v2221_v34 }
 0x659   :  { %4406 = vpow2.f32 %v2267_v41 }
 0x65a   :  { %4408 = vpow2.f32 %v2265_v2 }
 0x65c   :  { %v5687_v16 = vpop.eup %4402  ;;  %v2176_v36 = vpop.xlane.xlu1 %2175 }
 0x65d   :  { %v5689_v56 = vpop.eup %4404  ;;  %2327 = vadd.xlane.f32.xlu1 %v5687_v16  ;;  %v2224_v53 = vsub.f32 %v5502_v51, %v2176_v36  ;;  %v2174_v29 = vpop.xlane.xlu0 %2173 }
 0x65e   :  { %2325 = vadd.xlane.f32.xlu0 %v5689_v56  ;;  %v2223_v44 = vsub.f32 %v5507_v57, %v2174_v29 }
 0x65f   :  { %v2271_v45 = vmul.f32 1.442695, %v2224_v53 }
 0x660   :  { %v2269_v32 = vmul.f32 1.442695, %v2223_v44 }
 0x661   :  { %4410 = vpow2.f32 %v2271_v45 }
 0x662   :  { %4412 = vpow2.f32 %v2269_v32 }
 0x663   :  { %v5695_v48 = vpop.eup %4406 }
 0x664   :  { %v5697_v50 = vpop.eup %4408  ;;  %2331 = vadd.xlane.f32.xlu1 %v5695_v48  ;;  %v2180_v62 = vpop.xlane.xlu1 %2179 }
 0x665   :  { %v2226_v40 = vsub.f32 %v5514_v14, %v2180_v62  ;;  %2329 = vadd.xlane.f32.xlu0 %v5697_v50  ;;  %v2178_v51 = vpop.xlane.xlu0 %2177 }
 0x666   :  { %v2225_v0 = vsub.f32 %v5519_v22, %v2178_v51 }
 0x667   :  { %v2275_v63 = vmul.f32 1.442695, %v2226_v40 }
 0x668   :  { %v2273_v57 = vmul.f32 1.442695, %v2225_v0 }
 0x669   :  { %4414 = vpow2.f32 %v2275_v63 }
 0x66a   :  { %4416 = vpow2.f32 %v2273_v57 }
 0x66b   :  { %v5703_v7 = vpop.eup %4410 }
 0x66c   :  { %v5705_v8 = vpop.eup %4412  ;;  %2335 = vadd.xlane.f32.xlu1 %v5703_v7  ;;  %v2184_v12 = vpop.xlane.xlu1 %2183 }
 0x66d   :  { %v2228_v13 = vsub.f32 %v5526_v47, %v2184_v12  ;;  %2333 = vadd.xlane.f32.xlu0 %v5705_v8  ;;  %v2182_v14 = vpop.xlane.xlu0 %2181 }
 0x66e   :  { %v2227_v17 = vsub.f32 %v5531_v60, %v2182_v14 }
 0x66f   :  { %v2279_v18 = vmul.f32 1.442695, %v2228_v13 }
 0x670   :  { %v2277_v22 = vmul.f32 1.442695, %v2227_v17 }
 0x671   :  { %4418 = vpow2.f32 %v2279_v18 }
 0x672   :  { %4420 = vpow2.f32 %v2277_v22 }
 0x673   :  { %v5711_v25 = vpop.eup %4414 }
 0x674   :  { %v5713_v43 = vpop.eup %4416  ;;  %2339 = vadd.xlane.f32.xlu1 %v5711_v25  ;;  %v2188_v27 = vpop.xlane.xlu1 %2187 }
 0x675   :  { %v2230_v33 = vsub.f32 %v5538_v39, %v2188_v27  ;;  %2337 = vadd.xlane.f32.xlu0 %v5713_v43  ;;  %v2186_v47 = vpop.xlane.xlu0 %2185 }
 0x676   :  { %v2229_v35 = vsub.f32 %v5543_v49, %v2186_v47 }
 0x677   :  { %v2283_v5 = vmul.f32 1.442695, %v2230_v33 }
 0x678   :  { %v2281_v60 = vmul.f32 1.442695, %v2229_v35 }
 0x679   :  { %4422 = vpow2.f32 %v2283_v5 }
 0x67a   :  { %4424 = vpow2.f32 %v2281_v60 }
 0x67b   :  { %v5719_v42 = vpop.eup %4418 }
 0x67c   :  { %v5721_v52 = vpop.eup %4420  ;;  %2343 = vadd.xlane.f32.xlu1 %v5719_v42  ;;  %v2192_v6 = vpop.xlane.xlu1 %2191 }
 0x67d   :  { %v2232_v28 = vsub.f32 %v5550_v58, %v2192_v6  ;;  %2341 = vadd.xlane.f32.xlu0 %v5721_v52  ;;  %v2190_v39 = vpop.xlane.xlu0 %2189 }
 0x67e   :  { %v2231_v30 = vsub.f32 %v5555_v59, %v2190_v39 }
 0x67f   :  { %v2287_v55 = vmul.f32 1.442695, %v2232_v28 }
 0x680   :  { %v2285_v49 = vmul.f32 1.442695, %v2231_v30 }
 0x681   :  { %4426 = vpow2.f32 %v2287_v55 }
 0x682   :  { %4428 = vpow2.f32 %v2285_v49 }
 0x683   :  { %v5727_v54 = vpop.eup %4422 }
 0x684   :  { %v5729_v34 = vpop.eup %4424  ;;  %2347 = vadd.xlane.f32.xlu1 %v5727_v54  ;;  %v2196_v41 = vpop.xlane.xlu1 %2195 }
 0x685   :  { %v2234_v2 = vsub.f32 %v5562_v9, %v2196_v41  ;;  %2345 = vadd.xlane.f32.xlu0 %v5729_v34  ;;  %v2194_v58 = vpop.xlane.xlu0 %2193 }
 0x686   :  { %v2233_v36 = vsub.f32 %v5567_v11, %v2194_v58 }
 0x687   :  { %v2291_v53 = vmul.f32 1.442695, %v2234_v2 }
 0x688   :  { %v2289_v59 = vmul.f32 1.442695, %v2233_v36 }
 0x689   :  { %4430 = vpow2.f32 %v2291_v53 }
 0x68a   :  { %4432 = vpow2.f32 %v2289_v59 }
 0x68b   :  { %v5735_v29 = vpop.eup %4426 }
 0x68c   :  { %v5737_v44 = vpop.eup %4428  ;;  %2351 = vadd.xlane.f32.xlu1 %v5735_v29  ;;  %v2200_v45 = vpop.xlane.xlu1 %2199 }
 0x68d   :  { %v2236_v32 = vsub.f32 %v5574_v21, %v2200_v45  ;;  %2349 = vadd.xlane.f32.xlu0 %v5737_v44  ;;  %v2198_v9 = vpop.xlane.xlu0 %2197 }
 0x68e   :  { %v2235_v62 = vsub.f32 %v5579_v23, %v2198_v9 }
 0x68f   :  { %v2295_v40 = vmul.f32 1.442695, %v2236_v32 }
 0x690   :  { %v2293_v11 = vmul.f32 1.442695, %v2235_v62 }
 0x691   :  { %4434 = vpow2.f32 %v2295_v40 }
 0x692   :  { %4436 = vpow2.f32 %v2293_v11 }
 0x693   :  { %v5743_v51 = vpop.eup %4430 }
 0x694   :  { %v5745_v0 = vpop.eup %4432  ;;  %2355 = vadd.xlane.f32.xlu1 %v5743_v51  ;;  %v2204_v63 = vpop.xlane.xlu1 %2203 }
 0x695   :  { %v2238_v57 = vsub.f32 %v5586_v20, %v2204_v63  ;;  %2353 = vadd.xlane.f32.xlu0 %v5745_v0  ;;  %v2202_v21 = vpop.xlane.xlu0 %2201 }
 0x696   :  { %v2237_v12 = vsub.f32 %v5591_v24, %v2202_v21  ;;  %v5782_v21 = vld [vmem:[%s5866_s14] ss:$0 sm:$0xff]  ;;  %s4871_s14 = smov [#allocation16]  }
 0x697   :  { %v2299_v13 = vmul.f32 1.442695, %v2238_v57  ;;  %s3222_s9 = sshll.u32 %s4871_s14, 4  ;;  %s3223_s9 = int_to_ptr.vmem [resolvable:$true] %s3222_s9 }
 0x698   :  { %v2297_v23 = vmul.f32 1.442695, %v2237_v12  ;;  %s4822_s21 = scalar_lea.vmem %s3223_s9, 12288  ;;  %p4827_p9 = scmp.lt.s32.totalorder %s3223_s9, %s3223_s9 }
 0x699   :  { %4438 = vpow2.f32 %v2299_v13  ;;  %p4823_p8 = scmp.ne.s32.totalorder %s3223_s9, %s4822_s21  ;;  %p4828_p10 = scmp.lt.s32.totalorder %s4822_s21, %s4822_s21 }
 0x69a   :  { %4440 = vpow2.f32 %v2297_v23 }
 0x69b   :  { %v5751_v14 = vpop.eup %4434  ;;  %p4829_p11 = por %p4828_p10, %p4827_p9 }
 0x69c   :  { %v5753_v17 = vpop.eup %4436  ;;  %2359 = vadd.xlane.f32.xlu1 %v5751_v14  ;;  %v2208_v18 = vpop.xlane.xlu1 %2207 }
 0x69d   :  { %v2240_v22 = vsub.f32 %v5603_v1, %v2208_v18  ;;  %2357 = vadd.xlane.f32.xlu0 %v5753_v17  ;;  %v2206_v20 = vpop.xlane.xlu0 %2205  ;;  %p4830_p12 = pnand %p4829_p11, %p4823_p8 }
 0x69e   :  { %v2239_v27 = vsub.f32 %v5608_v10, %v2206_v20 }
 0x69f   :  { %v2303_v33 = vmul.f32 1.442695, %v2240_v22 }
 0x6a0   :  { %v2301_v24 = vmul.f32 1.442695, %v2239_v27 }
 0x6a1   :  { %4442 = vpow2.f32 %v2303_v33 }
 0x6a2   :  { %4444 = vpow2.f32 %v2301_v24 }
 0x6a3   :  { %v5759_v47 = vpop.eup %4438 }
 0x6a4   :  { %v5761_v35 = vpop.eup %4440  ;;  %2363 = vadd.xlane.f32.xlu1 %v5759_v47 }
 0x6a5   :  { %2361 = vadd.xlane.f32.xlu0 %v5761_v35 }
 0x6ab   :  { %v5765_v5 = vpop.eup %4442 }
 0x6ac   :  { %v5767_v1 = vpop.eup %4444  ;;  %2367 = vadd.xlane.f32.xlu1 %v5765_v5 }
 0x6ad   :  { %2365 = vadd.xlane.f32.xlu0 %v5767_v1 }
 0x6c1   :  { %v2308_v10 = vpop.xlane.xlu1 %2307 }
 0x6c2   :  { %4446 = vrcp.f32 %v2308_v10 }
 0x6c5   :  { %v2306_v60 = vpop.xlane.xlu0 %2305 }
 0x6c6   :  { %4448 = vrcp.f32 %v2306_v60 }
 0x6c9   :  { %v2312_v6 = vpop.xlane.xlu1 %2311 }
 0x6ca   :  { %4450 = vrcp.f32 %v2312_v6 }
 0x6cc   :  { %v4447_v28 = vpop.eup %4446 }
 0x6cd   :  { %v2402_v39 = vmul.f32 %v4447_v28, %v5633_v46  ;;  %v2310_v30 = vpop.xlane.xlu0 %2309 }
 0x6ce   :  { %4452 = vrcp.f32 %v2310_v30 }
 0x6cf   :  { %3154 = vst [vmem:[#allocation16 + $0x20] sm:$0xff] %v2402_v39 }
 0x6d0   :  { %v4449_v55 = vpop.eup %4448 }
 0x6d1   :  { %v2401_v49 = vmul.f32 %v4449_v55, %v5640_v38  ;;  %v2316_v41 = vpop.xlane.xlu1 %2315 }
 0x6d2   :  { %4454 = vrcp.f32 %v2316_v41  ;;  %v2314_v2 = vpop.xlane.xlu0 %2313 }
 0x6d3   :  { %3153 = vst [vmem:[#allocation16 + $0x8] sm:$0xff] %v2401_v49  ;;  %4456 = vrcp.f32 %v2314_v2 }
 0x6d4   :  { %v4451_v58 = vpop.eup %4450 }
 0x6d5   :  { %v2404_v36 = vmul.f32 %v4451_v58, %v5645_v4 }
 0x6d7   :  { %3156 = vst [vmem:[#allocation16 + $0x50] sm:$0xff] %v2404_v36 }
 0x6d8   :  { %v4453_v53 = vpop.eup %4452 }
 0x6d9   :  { %v2403_v59 = vmul.f32 %v4453_v53, %v5652_v31  ;;  %v2320_v45 = vpop.xlane.xlu1 %2319 }
 0x6da   :  { %4458 = vrcp.f32 %v2320_v45  ;;  %v2318_v46 = vpop.xlane.xlu0 %2317 }
 0x6db   :  { %3155 = vst [vmem:[#allocation16 + $0x38] sm:$0xff] %v2403_v59  ;;  %4460 = vrcp.f32 %v2318_v46 }
 0x6dc   :  { %v4455_v32 = vpop.eup %4454 }
 0x6dd   :  { %v4457_v9 = vpop.eup %4456  ;;  %v2406_v38 = vmul.f32 %v4455_v32, %v5657_v15 }
 0x6de   :  { %v2405_v62 = vmul.f32 %v4457_v9, %v5659_v37 }
 0x6df   :  { %3158 = vst [vmem:[#allocation16 + $0x80] sm:$0xff] %v2406_v38 }
 0x6e0   :  { %3157 = vst [vmem:[#allocation16 + $0x68] sm:$0xff] %v2405_v62 }
 0x6e2   :  { %v2324_v40 = vpop.xlane.xlu1 %2323 }
 0x6e3   :  { %4462 = vrcp.f32 %v2324_v40  ;;  %v2322_v4 = vpop.xlane.xlu0 %2321 }
 0x6e4   :  { %4464 = vrcp.f32 %v2322_v4  ;;  %v4459_v11 = vpop.eup %4458 }
 0x6e5   :  { %v4461_v63 = vpop.eup %4460  ;;  %v2408_v31 = vmul.f32 %v4459_v11, %v5669_v19 }
 0x6e6   :  { %v2407_v57 = vmul.f32 %v4461_v63, %v5671_v3 }
 0x6e7   :  { %3160 = vst [vmem:[#allocation16 + $0xb0] sm:$0xff] %v2408_v31 }
 0x6e8   :  { %3159 = vst [vmem:[#allocation16 + $0x98] sm:$0xff] %v2407_v57 }
 0x6e9   :  { %v3838_v15 = vpop.f32.mrb[80].mxu0 }
 0x6ea   :  { %v2328_v37 = vpop.xlane.xlu1 %2327  ;;  %v2808_v12 = vadd.f32 %v3838_v15, %v5782_v21  ;;  %v2802_v13 = vpop.f32.mrb[81].mxu0 }
 0x6eb   :  { %4466 = vrcp.f32 %v2328_v37  ;;  %v2326_v23 = vpop.xlane.xlu0 %2325  ;;  %v2803_v18 = vadd.f32 %v5782_v21, %v2802_v13 }
 0x6ec   :  { %4468 = vrcp.f32 %v2326_v23  ;;  %v2962_v22 = vsub.f32 0.0, %v2808_v12 }
 0x6ed   :  { %v4463_v19 = vpop.eup %4462  ;;  %v2961_v27 = vsub.f32 0.0, %v2803_v18  ;;  %v3841_v33 = vpop.f32.mrb[82].mxu0 }
 0x6ee   :  { %v4465_v3 = vpop.eup %4464  ;;  %v2410_v20 = vmul.f32 %v4463_v19, %v5679_v26  ;;  %v2995_v10 = vmul.f32 1.442695, %v2962_v22  ;;  %v2818_v60 = vadd.f32 %v3841_v33, %v5782_v21  ;;  %v2812_v6 = vpop.f32.mrb[83].mxu0 }
 0x6ef   :  { %v2409_v24 = vmul.f32 %v4465_v3, %v5681_v61  ;;  %v2993_v28 = vmul.f32 1.442695, %v2961_v27  ;;  %v2813_v39 = vadd.f32 %v5782_v21, %v2812_v6 }
 0x6f0   :  { %3162 = vst [vmem:[#allocation16 + $0xe0] sm:$0xff] %v2410_v20  ;;  %4470 = vpow2.f32 %v2995_v10  ;;  %v2964_v30 = vsub.f32 0.0, %v2818_v60 }
 0x6f1   :  { %3161 = vst [vmem:[#allocation16 + $0xc8] sm:$0xff] %v2409_v24  ;;  %4472 = vpow2.f32 %v2993_v28  ;;  %v2963_v55 = vsub.f32 0.0, %v2813_v39  ;;  %v3844_v49 = vpop.f32.mrb[84].mxu0  ;;  %v2332_v41 = vpop.xlane.xlu1 %2331 }
 0x6f2   :  { %v2999_v26 = vmul.f32 1.442695, %v2964_v30  ;;  %v2828_v2 = vadd.f32 %v3844_v49, %v5782_v21  ;;  %4474 = vrcp.f32 %v2332_v41  ;;  %v2822_v61 = vpop.f32.mrb[85].mxu0  ;;  %v2330_v58 = vpop.xlane.xlu0 %2329 }
 0x6f3   :  { %v2997_v36 = vmul.f32 1.442695, %v2963_v55  ;;  %v2823_v53 = vadd.f32 %v5782_v21, %v2822_v61  ;;  %4476 = vrcp.f32 %v2330_v58 }
 0x6f4   :  { %4478 = vpow2.f32 %v2999_v26  ;;  %v2966_v45 = vsub.f32 0.0, %v2828_v2 }
 0x6f5   :  { %v4467_v59 = vpop.eup %4466  ;;  %4480 = vpow2.f32 %v2997_v36  ;;  %v2965_v9 = vsub.f32 0.0, %v2823_v53  ;;  %v3847_v38 = vpop.f32.mrb[86].mxu0 }
 0x6f6   :  { %v4469_v46 = vpop.eup %4468  ;;  %v2412_v32 = vmul.f32 %v4467_v59, %v5687_v16  ;;  %v3003_v40 = vmul.f32 1.442695, %v2966_v45  ;;  %v2838_v4 = vadd.f32 %v3847_v38, %v5782_v21  ;;  %v2832_v11 = vpop.f32.mrb[87].mxu0 }
 0x6f7   :  { %v2411_v62 = vmul.f32 %v4469_v46, %v5689_v56  ;;  %v3001_v63 = vmul.f32 1.442695, %v2965_v9  ;;  %v2833_v31 = vadd.f32 %v5782_v21, %v2832_v11 }
 0x6f8   :  { %3164 = vst [vmem:[#allocation16 + $0x110] sm:$0xff] %v2412_v32  ;;  %4482 = vpow2.f32 %v3003_v40  ;;  %v2968_v57 = vsub.f32 0.0, %v2838_v4 }
 0x6f9   :  { %3163 = vst [vmem:[#allocation16 + $0xf8] sm:$0xff] %v2411_v62  ;;  %4484 = vpow2.f32 %v3001_v63  ;;  %v2967_v15 = vsub.f32 0.0, %v2833_v31  ;;  %v3850_v37 = vpop.f32.mrb[88].mxu0  ;;  %v2336_v16 = vpop.xlane.xlu1 %2335 }
 0x6fa   :  { %v4471_v12 = vpop.eup %4470  ;;  %v3007_v13 = vmul.f32 1.442695, %v2968_v57  ;;  %v2848_v23 = vadd.f32 %v3850_v37, %v5782_v21  ;;  %4486 = vrcp.f32 %v2336_v16  ;;  %v2842_v56 = vpop.f32.mrb[89].mxu0 }
 0x6fb   :  { %v2334_v18 = vpop.xlane.xlu0 %2333  ;;  %v4473_v19 = vpop.eup %4472  ;;  %v3058_v22 = vadd.f32 1.0, %v4471_v12  ;;  %v3005_v3 = vmul.f32 1.442695, %v2967_v15  ;;  %v2843_v20 = vadd.f32 %v5782_v21, %v2842_v56 }
 0x6fc   :  { %4488 = vrcp.f32 %v2334_v18  ;;  %v4475_v27 = vpop.eup %4474  ;;  %v3057_v33 = vadd.f32 1.0, %v4473_v19  ;;  %v2970_v24 = vsub.f32 0.0, %v2848_v23 }
 0x6fd   :  { %4490 = vpow2.f32 %v3007_v13  ;;  %v4477_v10 = vpop.eup %4476  ;;  %v2414_v60 = vmul.f32 %v4475_v27, %v5695_v48  ;;  %v2969_v6 = vsub.f32 0.0, %v2843_v20  ;;  %v3853_v28 = vpop.f32.mrb[90].mxu0 }
 0x6fe   :  { %4492 = vrcp.f32 %v3058_v22  ;;  %v4479_v39 = vpop.eup %4478  ;;  %v2413_v30 = vmul.f32 %v4477_v10, %v5697_v50  ;;  %v3011_v55 = vmul.f32 1.442695, %v2970_v24  ;;  %v2858_v49 = vadd.f32 %v3853_v28, %v5782_v21  ;;  %v2852_v41 = vpop.f32.mrb[91].mxu0 }
 0x6ff   :  { %4494 = vrcp.f32 %v3057_v33  ;;  %v4481_v26 = vpop.eup %4480  ;;  %v3060_v2 = vadd.f32 1.0, %v4479_v39  ;;  %3166 = vst [vmem:[#allocation16 + $0x140] sm:$0xff] %v2414_v60  ;;  %v3009_v61 = vmul.f32 1.442695, %v2969_v6  ;;  %v2853_v58 = vadd.f32 %v5782_v21, %v2852_v41 }
 0x700   :  { %4496 = vpow2.f32 %v3005_v3  ;;  %v3059_v36 = vadd.f32 1.0, %v4481_v26  ;;  %3165 = vst [vmem:[#allocation16 + $0x128] sm:$0xff] %v2413_v30  ;;  %v2972_v48 = vsub.f32 0.0, %v2858_v49 }
 0x701   :  { %4498 = vpow2.f32 %v3011_v55  ;;  %v2971_v53 = vsub.f32 0.0, %v2853_v58  ;;  %v3856_v59 = vpop.f32.mrb[92].mxu0  ;;  %v2340_v22 = vpop.xlane.xlu1 %2339 }
 0x702   :  { %4500 = vrcp.f32 %v3060_v2  ;;  %v4483_v45 = vpop.eup %4482  ;;  %v3015_v50 = vmul.f32 1.442695, %v2972_v48  ;;  %v2868_v46 = vadd.f32 %v3856_v59, %v5782_v21  ;;  %v2862_v32 = vpop.f32.mrb[93].mxu0 }
 0x703   :  { %4502 = vrcp.f32 %v3059_v36  ;;  %v4485_v9 = vpop.eup %4484  ;;  %v3062_v38 = vadd.f32 1.0, %v4483_v45  ;;  %v3013_v62 = vmul.f32 1.442695, %v2971_v53  ;;  %v2863_v40 = vadd.f32 %v5782_v21, %v2862_v32  ;;  %v2338_v55 = vpop.xlane.xlu0 %2337 }
 0x704   :  { %4504 = vpow2.f32 %v3009_v61  ;;  %v4487_v4 = vpop.eup %4486  ;;  %v3061_v11 = vadd.f32 1.0, %v4485_v9  ;;  %v2974_v63 = vsub.f32 0.0, %v2868_v46 }
 0x705   :  { %4506 = vpow2.f32 %v3015_v50  ;;  %v2416_v57 = vmul.f32 %v4487_v4, %v5703_v7  ;;  %v2973_v15 = vsub.f32 0.0, %v2863_v40  ;;  %v3859_v37 = vpop.f32.mrb[94].mxu0 }
 0x706   :  { %v4489_v31 = vpop.eup %4488  ;;  %4508 = vrcp.f32 %v3062_v38  ;;  %v3019_v13 = vmul.f32 1.442695, %v2974_v63  ;;  %v2878_v23 = vadd.f32 %v3859_v37, %v5782_v21  ;;  %v2872_v56 = vpop.f32.mrb[95].mxu0 }
 0x707   :  { %v4491_v16 = vpop.eup %4490  ;;  %4510 = vrcp.f32 %v3061_v11  ;;  %v2415_v12 = vmul.f32 %v4489_v31, %v5705_v8  ;;  %3168 = vst [vmem:[#allocation16 + $0x170] sm:$0xff] %v2416_v57  ;;  %v3017_v3 = vmul.f32 1.442695, %v2973_v15  ;;  %v2873_v20 = vadd.f32 %v5782_v21, %v2872_v56 }
 0x708   :  { %v4493_v18 = vpop.eup %4492  ;;  %v3064_v19 = vadd.f32 1.0, %v4491_v16  ;;  %4512 = vpow2.f32 %v3013_v62  ;;  %v2976_v7 = vsub.f32 0.0, %v2878_v23 }
 0x709   :  { %v4495_v27 = vpop.eup %4494  ;;  %3186 = vst [vmem:[#allocation16 + $0x28] sm:$0xff] %v4493_v18  ;;  %3167 = vst [vmem:[#allocation16 + $0x158] sm:$0xff] %v2415_v12  ;;  %4514 = vpow2.f32 %v3019_v13  ;;  %v2975_v8 = vsub.f32 0.0, %v2873_v20  ;;  %v3862_v24 = vpop.f32.mrb[96].mxu0 }
 0x70a   :  { %v4497_v33 = vpop.eup %4496  ;;  %3185 = vst [vmem:[#allocation16 + $0x10] sm:$0xff] %v4495_v27  ;;  %4516 = vrcp.f32 %v3064_v19  ;;  %v2888_v6 = vadd.f32 %v3862_v24, %v5782_v21  ;;  %v2882_v28 = vpop.f32.mrb[97].mxu0  ;;  %v3023_v49 = vmul.f32 1.442695, %v2976_v7 }
 0x70b   :  { %v4499_v10 = vpop.eup %4498  ;;  %v3063_v60 = vadd.f32 1.0, %v4497_v33  ;;  %4518 = vrcp.f32 %v2340_v22  ;;  %v2883_v41 = vadd.f32 %v5782_v21, %v2882_v28  ;;  %v3021_v58 = vmul.f32 1.442695, %v2975_v8  ;;  %v2344_v12 = vpop.xlane.xlu1 %2343 }
 0x70c   :  { %v4501_v39 = vpop.eup %4500  ;;  %v3066_v30 = vadd.f32 1.0, %v4499_v10  ;;  %4520 = vpow2.f32 %v3017_v3  ;;  %v2978_v2 = vsub.f32 0.0, %v2888_v6  ;;  %v2342_v33 = vpop.xlane.xlu0 %2341 }
 0x70d   :  { %v4503_v26 = vpop.eup %4502  ;;  %3188 = vst [vmem:[#allocation16 + $0x58] sm:$0xff] %v4501_v39  ;;  %4522 = vrcp.f32 %v3063_v60  ;;  %v3865_v36 = vpop.f32.mrb[98].mxu0  ;;  %v2977_v59 = vsub.f32 0.0, %v2883_v41 }
 0x70e   :  { %v4505_v61 = vpop.eup %4504  ;;  %3187 = vst [vmem:[#allocation16 + $0x40] sm:$0xff] %v4503_v26  ;;  %4524 = vrcp.f32 %v3066_v30  ;;  %v2898_v45 = vadd.f32 %v3865_v36, %v5782_v21  ;;  %v2892_v50 = vpop.f32.mrb[99].mxu0  ;;  %v3027_v9 = vmul.f32 1.442695, %v2978_v2 }
 0x70f   :  { %v4507_v48 = vpop.eup %4506  ;;  %v3065_v53 = vadd.f32 1.0, %v4505_v61  ;;  %4526 = vrcp.f32 %v2338_v55  ;;  %v2893_v38 = vadd.f32 %v5782_v21, %v2892_v50  ;;  %v3025_v13 = vmul.f32 1.442695, %v2977_v59 }
 0x710   :  { %v4509_v46 = vpop.eup %4508  ;;  %v3068_v32 = vadd.f32 1.0, %v4507_v48  ;;  %4528 = vpow2.f32 %v3023_v49  ;;  %v2980_v31 = vsub.f32 0.0, %v2898_v45 }
 0x711   :  { %v4511_v62 = vpop.eup %4510  ;;  %3190 = vst [vmem:[#allocation16 + $0x88] sm:$0xff] %v4509_v46  ;;  %4530 = vrcp.f32 %v3065_v53  ;;  %v3868_v4 = vpop.f32.mrb[100].mxu0  ;;  %v2979_v23 = vsub.f32 0.0, %v2893_v38 }
 0x712   :  { %v4513_v40 = vpop.eup %4512  ;;  %3189 = vst [vmem:[#allocation16 + $0x70] sm:$0xff] %v4511_v62  ;;  %4532 = vrcp.f32 %v3068_v32  ;;  %v2908_v57 = vadd.f32 %v3868_v4, %v5782_v21  ;;  %v2902_v15 = vpop.f32.mrb[101].mxu0  ;;  %v3031_v8 = vmul.f32 1.442695, %v2980_v31 }
 0x713   :  { %v4515_v11 = vpop.eup %4514  ;;  %v3067_v63 = vadd.f32 1.0, %v4513_v40  ;;  %4534 = vpow2.f32 %v3021_v58  ;;  %v2903_v18 = vadd.f32 %v5782_v21, %v2902_v15  ;;  %v3029_v60 = vmul.f32 1.442695, %v2979_v23  ;;  %v2348_v48 = vpop.xlane.xlu1 %2347 }
 0x714   :  { %v4517_v37 = vpop.eup %4516  ;;  %v3070_v16 = vadd.f32 1.0, %v4515_v11  ;;  %4536 = vpow2.f32 %v3027_v9  ;;  %v2982_v3 = vsub.f32 0.0, %v2908_v57  ;;  %v2346_v11 = vpop.xlane.xlu0 %2345 }
 0x715   :  { %v4519_v56 = vpop.eup %4518  ;;  %3192 = vst [vmem:[#allocation16 + $0xb8] sm:$0xff] %v4517_v37  ;;  %4538 = vrcp.f32 %v3067_v63  ;;  %v3871_v20 = vpop.f32.mrb[102].mxu0  ;;  %v2981_v39 = vsub.f32 0.0, %v2903_v18 }
 0x716   :  { %v4521_v19 = vpop.eup %4520  ;;  %4540 = vrcp.f32 %v3070_v16  ;;  %v2418_v22 = vmul.f32 %v4519_v56, %v5711_v25  ;;  %v2912_v24 = vpop.f32.mrb[103].mxu0  ;;  %v2918_v6 = vadd.f32 %v3871_v20, %v5782_v21  ;;  %v3035_v55 = vmul.f32 1.442695, %v2982_v3 }
 0x717   :  { %v4523_v27 = vpop.eup %4522  ;;  %v3069_v7 = vadd.f32 1.0, %v4521_v19  ;;  %4542 = vrcp.f32 %v2344_v12  ;;  %v2913_v49 = vadd.f32 %v5782_v21, %v2912_v24  ;;  %v3033_v50 = vmul.f32 1.442695, %v2981_v39 }
 0x718   :  { %v4525_v10 = vpop.eup %4524  ;;  %3191 = vst [vmem:[#allocation16 + $0xa0] sm:$0xff] %v4523_v27  ;;  %3170 = vst [vmem:[#allocation16 + $0x1a0] sm:$0xff] %v2418_v22  ;;  %4544 = vpow2.f32 %v3025_v13  ;;  %v2984_v53 = vsub.f32 0.0, %v2918_v6 }
 0x719   :  { %v4527_v28 = vpop.eup %4526  ;;  %3194 = vst [vmem:[#allocation16 + $0xe8] sm:$0xff] %v4525_v10  ;;  %4546 = vrcp.f32 %v3069_v7  ;;  %v3874_v41 = vpop.f32.mrb[104].mxu0  ;;  %v2983_v46 = vsub.f32 0.0, %v2913_v49 }
 0x71a   :  { %v4529_v25 = vpop.eup %4528  ;;  %v2417_v30 = vmul.f32 %v4527_v28, %v5713_v43  ;;  %4548 = vrcp.f32 %v2342_v33  ;;  %v2928_v61 = vadd.f32 %v3874_v41, %v5782_v21  ;;  %v2922_v58 = vpop.f32.mrb[105].mxu0  ;;  %v3039_v63 = vmul.f32 1.442695, %v2984_v53 }
 0x71b   :  { %v4531_v26 = vpop.eup %4530  ;;  %v3072_v2 = vadd.f32 1.0, %v4529_v25  ;;  %4550 = vpow2.f32 %v3031_v8  ;;  %v2923_v31 = vadd.f32 %v5782_v21, %v2922_v58  ;;  %v3037_v16 = vmul.f32 1.442695, %v2983_v46  ;;  %v2352_v39 = vpop.xlane.xlu1 %2351 }
 0x71c   :  { %v4533_v36 = vpop.eup %4532  ;;  %3193 = vst [vmem:[#allocation16 + $0xd0] sm:$0xff] %v4531_v26  ;;  %3169 = vst [vmem:[#allocation16 + $0x188] sm:$0xff] %v2417_v30  ;;  %4552 = vpow2.f32 %v3029_v60  ;;  %v2986_v62 = vsub.f32 0.0, %v2928_v61 }
 0x71d   :  { %v4535_v59 = vpop.eup %4534  ;;  %3196 = vst [vmem:[#allocation16 + $0x118] sm:$0xff] %v4533_v36  ;;  %4554 = vrcp.f32 %v3072_v2  ;;  %v3877_v32 = vpop.f32.mrb[106].mxu0  ;;  %v2985_v20 = vsub.f32 0.0, %v2923_v31 }
 0x71e   :  { %v4537_v43 = vpop.eup %4536  ;;  %v3071_v45 = vadd.f32 1.0, %v4535_v59  ;;  %4556 = vpow2.f32 %v3035_v55  ;;  %v2932_v40 = vpop.f32.mrb[107].mxu0  ;;  %v2938_v12 = vadd.f32 %v3877_v32, %v5782_v21  ;;  %v3043_v18 = vmul.f32 1.442695, %v2986_v62 }
 0x71f   :  { %v4539_v9 = vpop.eup %4538  ;;  %v3074_v38 = vadd.f32 1.0, %v4537_v43  ;;  %4558 = vrcp.f32 %v2348_v48  ;;  %v2933_v27 = vadd.f32 %v5782_v21, %v2932_v40  ;;  %v3041_v49 = vmul.f32 1.442695, %v2985_v20  ;;  %v2350_v36 = vpop.xlane.xlu0 %2349 }
 0x720   :  { %v4541_v4 = vpop.eup %4540  ;;  %3195 = vst [vmem:[#allocation16 + $0x100] sm:$0xff] %v4539_v9  ;;  %4560 = vrcp.f32 %v3071_v45  ;;  %v2988_v10 = vsub.f32 0.0, %v2938_v12 }
 0x721   :  { %v4543_v57 = vpop.eup %4542  ;;  %3198 = vst [vmem:[#allocation16 + $0x148] sm:$0xff] %v4541_v4  ;;  %4562 = vrcp.f32 %v3074_v38  ;;  %v3880_v13 = vpop.f32.mrb[108].mxu0  ;;  %v2987_v41 = vsub.f32 0.0, %v2933_v27 }
 0x722   :  { %v4545_v15 = vpop.eup %4544  ;;  %v2420_v37 = vmul.f32 %v4543_v57, %v5719_v42  ;;  %4564 = vpow2.f32 %v3033_v50  ;;  %v2948_v19 = vadd.f32 %v3880_v13, %v5782_v21  ;;  %v2942_v22 = vpop.f32.mrb[109].mxu0  ;;  %v3047_v48 = vmul.f32 1.442695, %v2988_v10 }
 0x723   :  { %v4547_v23 = vpop.eup %4546  ;;  %v3073_v56 = vadd.f32 1.0, %v4545_v15  ;;  %4566 = vrcp.f32 %v2346_v11  ;;  %v2943_v42 = vadd.f32 %v5782_v21, %v2942_v22  ;;  %v3045_v45 = vmul.f32 1.442695, %v2987_v41  ;;  %v2356_v15 = vpop.xlane.xlu1 %2355 }
 0x724   :  { %v4549_v3 = vpop.eup %4548  ;;  %3197 = vst [vmem:[#allocation16 + $0x130] sm:$0xff] %v4547_v23  ;;  %3172 = vst [vmem:[#allocation16 + $0x1d0] sm:$0xff] %v2420_v37  ;;  %4568 = vpow2.f32 %v3039_v63  ;;  %v2990_v53 = vsub.f32 0.0, %v2948_v19  ;;  %v2354_v13 = vpop.xlane.xlu0 %2353 }
 0x725   :  { %v4551_v7 = vpop.eup %4550  ;;  %4570 = vrcp.f32 %v3073_v56  ;;  %v2419_v33 = vmul.f32 %v4549_v3, %v5721_v52  ;;  %v3883_v60 = vpop.f32.mrb[110].mxu0  ;;  %v2989_v9 = vsub.f32 0.0, %v2943_v42 }
 0x726   :  { %v4553_v8 = vpop.eup %4552  ;;  %v3076_v24 = vadd.f32 1.0, %v4551_v7  ;;  %4572 = vpow2.f32 %v3037_v16  ;;  %v2958_v25 = vadd.f32 %v3883_v60, %v5782_v21  ;;  %v2952_v30 = vpop.f32.mrb[111].mxu0 }
 0x727   :  { %v4555_v6 = vpop.eup %4554  ;;  %3171 = vst [vmem:[#allocation16 + $0x1b8] sm:$0xff] %v2419_v33  ;;  %v3075_v28 = vadd.f32 1.0, %v4553_v8  ;;  %4574 = vpow2.f32 %v3043_v18  ;;  %v2953_v52 = vadd.f32 %v5782_v21, %v2952_v30  ;;  %v3049_v37 = vmul.f32 1.442695, %v2989_v9 }
 0x728   :  { %v4557_v55 = vpop.eup %4556  ;;  %3200 = vst [vmem:[#allocation16 + $0x178] sm:$0xff] %v4555_v6  ;;  %4576 = vrcp.f32 %v3076_v24  ;;  %v2992_v4 = vsub.f32 0.0, %v2958_v25 }
 0x729   :  { %v4559_v26 = vpop.eup %4558  ;;  %4578 = vrcp.f32 %v3075_v28  ;;  %v3078_v2 = vadd.f32 1.0, %v4557_v55  ;;  %v2360_v27 = vpop.xlane.xlu1 %2359 }
 0x72a   :  { %v4561_v61 = vpop.eup %4560  ;;  %v2422_v58 = vmul.f32 %v4559_v26, %v5727_v54  ;;  %4580 = vrcp.f32 %v2352_v39  ;;  %v3051_v54 = vmul.f32 1.442695, %v2990_v53  ;;  %v3055_v23 = vmul.f32 1.442695, %v2992_v4  ;;  %v2358_v24 = vpop.xlane.xlu0 %2357 }
 0x72b   :  { %v4563_v59 = vpop.eup %4562  ;;  %3199 = vst [vmem:[#allocation16 + $0x160] sm:$0xff] %v4561_v61  ;;  %4582 = vrcp.f32 %v3078_v2 }
 0x72c   :  { %v4565_v43 = vpop.eup %4564  ;;  %3202 = vst [vmem:[#allocation16 + $0x1a8] sm:$0xff] %v4563_v59  ;;  %3174 = vst [vmem:[#allocation16 + $0x200] sm:$0xff] %v2422_v58  ;;  %4584 = vpow2.f32 %v3041_v49 }
 0x72d   :  { %v4567_v50 = vpop.eup %4566  ;;  %v3077_v21 = vadd.f32 1.0, %v4565_v43  ;;  %4586 = vrcp.f32 %v2350_v36 }
 0x72e   :  { %v4569_v46 = vpop.eup %4568  ;;  %v2421_v32 = vmul.f32 %v4567_v50, %v5729_v34  ;;  %4588 = vpow2.f32 %v3047_v48  ;;  %v2991_v34 = vsub.f32 0.0, %v2953_v52 }
 0x72f   :  { %v4571_v38 = vpop.eup %4570  ;;  %4590 = vrcp.f32 %v3077_v21  ;;  %v3080_v62 = vadd.f32 1.0, %v4569_v46 }
 0x730   :  { %v4573_v40 = vpop.eup %4572  ;;  %3201 = vst [vmem:[#allocation16 + $0x190] sm:$0xff] %v4571_v38  ;;  %3173 = vst [vmem:[#allocation16 + $0x1e8] sm:$0xff] %v2421_v32  ;;  %4592 = vpow2.f32 %v3045_v45  ;;  %v3053_v22 = vmul.f32 1.442695, %v2991_v34 }
 0x731   :  { %v4575_v11 = vpop.eup %4574  ;;  %4594 = vrcp.f32 %v3080_v62  ;;  %v3079_v63 = vadd.f32 1.0, %v4573_v40  ;;  %v2364_v6 = vpop.xlane.xlu1 %2363 }
 0x732   :  { %v4577_v31 = vpop.eup %4576  ;;  %v3082_v57 = vadd.f32 1.0, %v4575_v11  ;;  %4596 = vpow2.f32 %v3051_v54 }
 0x733   :  { %v4579_v16 = vpop.eup %4578  ;;  %3204 = vst [vmem:[#allocation16 + $0x1d8] sm:$0xff] %v4577_v31  ;;  %4598 = vrcp.f32 %v3079_v63 }
 0x734   :  { %v4581_v12 = vpop.eup %4580  ;;  %3203 = vst [vmem:[#allocation16 + $0x1c0] sm:$0xff] %v4579_v16  ;;  %4600 = vrcp.f32 %v3082_v57 }
 0x735   :  { %v4583_v56 = vpop.eup %4582  ;;  %v2424_v18 = vmul.f32 %v4581_v12, %v5735_v29  ;;  %4602 = vrcp.f32 %v2356_v15 }
 0x736   :  { %v4585_v19 = vpop.eup %4584  ;;  %3206 = vst [vmem:[#allocation16 + $0x208] sm:$0xff] %v4583_v56  ;;  %4604 = vpow2.f32 %v3049_v37 }
 0x737   :  { %v4587_v3 = vpop.eup %4586  ;;  %3176 = vst [vmem:[#allocation16 + $0x230] sm:$0xff] %v2424_v18  ;;  %v3081_v20 = vadd.f32 1.0, %v4585_v19  ;;  %4606 = vrcp.f32 %v2354_v13 }
 0x738   :  { %v4589_v42 = vpop.eup %4588  ;;  %v2423_v7 = vmul.f32 %v4587_v3, %v5737_v44  ;;  %4608 = vpow2.f32 %v3055_v23  ;;  %v2362_v44 = vpop.xlane.xlu0 %2361 }
 0x739   :  { %v4591_v33 = vpop.eup %4590  ;;  %4610 = vrcp.f32 %v3081_v20  ;;  %v3084_v8 = vadd.f32 1.0, %v4589_v42  ;;  %v2368_v49 = vpop.xlane.xlu1 %2367 }
 0x73a   :  { %v4593_v10 = vpop.eup %4592  ;;  %3205 = vst [vmem:[#allocation16 + $0x1f0] sm:$0xff] %v4591_v33  ;;  %3175 = vst [vmem:[#allocation16 + $0x218] sm:$0xff] %v2423_v7  ;;  %4612 = vpow2.f32 %v3053_v22 }
 0x73b   :  { %v4595_v29 = vpop.eup %4594  ;;  %4614 = vrcp.f32 %v3084_v8  ;;  %v3083_v60 = vadd.f32 1.0, %v4593_v10 }
 0x73c   :  { %v4597_v28 = vpop.eup %4596  ;;  %3208 = vst [vmem:[#allocation16 + $0x238] sm:$0xff] %v4595_v29  ;;  %4616 = vrcp.f32 %v2360_v27  ;;  %v2366_v61 = vpop.xlane.xlu0 %2365 }
 0x73d   :  { %v4599_v39 = vpop.eup %4598  ;;  %4618 = vrcp.f32 %v3083_v60  ;;  %v3086_v25 = vadd.f32 1.0, %v4597_v28 }
 0x73e   :  { %v4601_v30 = vpop.eup %4600  ;;  %3207 = vst [vmem:[#allocation16 + $0x220] sm:$0xff] %v4599_v39  ;;  %4620 = vrcp.f32 %v2358_v24 }
 0x73f   :  { %v4603_v55 = vpop.eup %4602  ;;  %3210 = vst [vmem:[#allocation16 + $0x268] sm:$0xff] %v4601_v30  ;;  %4622 = vrcp.f32 %v3086_v25 }
 0x740   :  { %v4605_v41 = vpop.eup %4604  ;;  %v2426_v52 = vmul.f32 %v4603_v55, %v5743_v51  ;;  %4624 = vrcp.f32 %v2364_v6 }
 0x741   :  { %v4607_v26 = vpop.eup %4606  ;;  %v3085_v2 = vadd.f32 1.0, %v4605_v41  ;;  %4626 = vrcp.f32 %v2362_v44 }
 0x742   :  { %v4609_v58 = vpop.eup %4608  ;;  %3178 = vst [vmem:[#allocation16 + $0x260] sm:$0xff] %v2426_v52  ;;  %v2425_v36 = vmul.f32 %v4607_v26, %v5745_v0  ;;  %4628 = vrcp.f32 %v2368_v49 }
 0x743   :  { %v4611_v48 = vpop.eup %4610  ;;  %4630 = vrcp.f32 %v3085_v2  ;;  %v3088_v53 = vadd.f32 1.0, %v4609_v58 }
 0x744   :  { %v4613_v59 = vpop.eup %4612  ;;  %3209 = vst [vmem:[#allocation16 + $0x250] sm:$0xff] %v4611_v48  ;;  %3177 = vst [vmem:[#allocation16 + $0x248] sm:$0xff] %v2425_v36  ;;  %4632 = vrcp.f32 %v2366_v61 }
 0x745   :  { %v4615_v43 = vpop.eup %4614  ;;  %4634 = vrcp.f32 %v3088_v53  ;;  %v3087_v51 = vadd.f32 1.0, %v4613_v59 }
 0x746   :  { %v4617_v45 = vpop.eup %4616  ;;  %3212 = vst [vmem:[#allocation16 + $0x298] sm:$0xff] %v4615_v43 }
 0x747   :  { %v4619_v50 = vpop.eup %4618  ;;  %4636 = vrcp.f32 %v3087_v51  ;;  %v2428_v21 = vmul.f32 %v4617_v45, %v5751_v14 }
 0x748   :  { %v4621_v46 = vpop.eup %4620  ;;  %3211 = vst [vmem:[#allocation16 + $0x280] sm:$0xff] %v4619_v50 }
 0x749   :  { %v4623_v0 = vpop.eup %4622  ;;  %3180 = vst [vmem:[#allocation16 + $0x290] sm:$0xff] %v2428_v21  ;;  %v2427_v32 = vmul.f32 %v4621_v46, %v5753_v17 }
 0x74a   :  { %v4625_v54 = vpop.eup %4624  ;;  %3214 = vst [vmem:[#allocation16 + $0x2c8] sm:$0xff] %v4623_v0 }
 0x74b   :  { %v4627_v9 = vpop.eup %4626  ;;  %3179 = vst [vmem:[#allocation16 + $0x278] sm:$0xff] %v2427_v32  ;;  %v2430_v38 = vmul.f32 %v4625_v54, %v5759_v47 }
 0x74c   :  { %v4629_v62 = vpop.eup %4628  ;;  %v2429_v40 = vmul.f32 %v4627_v9, %v5761_v35 }
 0x74d   :  { %v4631_v4 = vpop.eup %4630  ;;  %3182 = vst [vmem:[#allocation16 + $0x2c0] sm:$0xff] %v2430_v38  ;;  %v2432_v11 = vmul.f32 %v4629_v62, %v5765_v5 }
 0x74e   :  { %v4633_v14 = vpop.eup %4632  ;;  %3213 = vst [vmem:[#allocation16 + $0x2b0] sm:$0xff] %v4631_v4  ;;  %3181 = vst [vmem:[#allocation16 + $0x2a8] sm:$0xff] %v2429_v40 }
 0x74f   :  { %v4635_v63 = vpop.eup %4634  ;;  %3184 = vst [vmem:[#allocation16 + $0x2f0] sm:$0xff] %v2432_v11  ;;  %v2431_v17 = vmul.f32 %v4633_v14, %v5767_v1 }
 0x750   :  { %3216 = vst [vmem:[#allocation16 + $0x2f8] sm:$0xff] %v4635_v63 }
 0x751   :  { %v4637_v31 = vpop.eup %4636  ;;  %3183 = vst [vmem:[#allocation16 + $0x2d8] sm:$0xff] %v2431_v17 }
 0x752   :  { %3215 = vst [vmem:[#allocation16 + $0x2e0] sm:$0xff] %v4637_v31 }
 0x753   :  { %4833 = shalt.err (!%p4830_p12)
}
 0x754   :  { %s5870_s26 = sld [smem:[#allocation23_spill]] }
 0x75a   :  { %s4834_s24 = scalar_lea.hbm %s5870_s26, 12288 }
 0x75b   :  { %p4835_p13 = scmp.ne.s32.totalorder %s5870_s26, %s4834_s24  ;;  %p4838_p0 = scmp.lt.u32.totalorder %s4834_s24, %s5870_s26 }
 0x75d   :  { %p4840_p1 = pnand %p4838_p0, %p4835_p13 }
 0x75f   :  { %4843 = shalt.err (!%p4840_p1)
}
 0x760   :  { %s4872_s3 = smov 384   ;;  %s4873_s5 = smov 24  }
 0x761   :  { %3228 = dma.vmem_to_hbm [thread:$0]  %s3223_s9, 12288, %s5870_s26, [#allocation4], %s4872_s3, %s4872_s3, %s4873_s5  }
 0x762   :  { %4854 = dma.done.wait [#allocation4], 12288  }
 0x763   :  { %4855 = vsyncadd [#allocation4], 4294955008 }
 0x764   :  { %3232 = vsyncpa [#allocation3], 1 }
 0x765   :  { %3233 = vsyncpa [#allocation6], 1 }
 0x766   :  { %3234 = vsyncpa [#allocation9], 1 }
 0x767   :  { %3235 = vsyncpa [#allocation12], 1 }
 0x768   :  { %3236 = vsyncpa [#allocation15], 1 }
 0x769   :  { %3237 = vsyncpa [#allocation4], 1 }

</bundles_post_ra>
